<compile_context>
chip_gen: v5e
topology: v5e:2x2
jax: 0.10.0
libtpu: 0.0.40
codegen_flags: <defaults>
</compile_context>

<pallas_src>
import functools

import numpy as np
import jax
import jax.numpy as jnp
from jax.experimental import pallas as pl
from jax.experimental.pallas import tpu as pltpu


# ------------------------- fused FQF forward kernel -------------------------
def _fqf_kernel(s_ref, w_pre_ref, b_pre_ref, w_frac_ref, b_frac_ref,
                g_frac_ref, g_all_ref, entcol_ref, ipi_ref,
                w_cos_ref, b_cos_ref, w_last_ref, b_last_ref,
                q_ref, frac_ref):
    f32 = jnp.float32
    bf16 = jnp.bfloat16

    # ---- preprocess net: Linear + ReLU (bf16 MXU operands, f32 accumulate) ----
    logits = jnp.dot(s_ref[...], w_pre_ref[...], preferred_element_type=f32) + b_pre_ref[...]
    logits = jnp.maximum(logits, 0.0)                                    # (bt, E) f32

    # ---- fraction proposal: Linear -> softmax -> cumsum -> entropy (f32) ----
    # (PyTorch runs this on logits.detach(); forward values are identical.)
    fl = jnp.dot(logits, w_frac_ref[...], preferred_element_type=f32) + b_frac_ref[...]
    m = jnp.max(fl, axis=-1, keepdims=True)
    z = fl - m
    ez = jnp.exp(z)
    ssum = jnp.sum(ez, axis=-1, keepdims=True)
    probs = ez / ssum                                                    # (bt, F)
    logp = z - jnp.log(ssum)
    ent = -jnp.sum(probs * logp, axis=-1, keepdims=True)                 # (bt, 1)

    # taus / tau_hats via one matmul against the hoisted cumsum/midpoint matrices;
    # the entropy is folded into the last column of the same output slab.
    frac_ref[...] = (jnp.dot(probs, g_frac_ref[...], preferred_element_type=f32)
                     + ent * entcol_ref[...])                            # (bt, 2F+2)

    # taus the quantile head is evaluated on: [tau_hats | taus[:, 1:-1]]
    taus_all = jnp.dot(probs, g_all_ref[...], preferred_element_type=f32)  # (bt, Ntot)

    # ---- quantile head: static unrolled loop over the Ntot taus ----
    # No row replication: logits (bt, E) is reused directly per tau group.
    ipi = ipi_ref[...]                                                   # (1, C) f32
    w_cos = w_cos_ref[...]                                               # (C, E) bf16
    b_cos = b_cos_ref[...]                                               # (1, E) f32
    w_last = w_last_ref[...]                                             # (E, A_pad) bf16
    b_last = b_last_ref[...]                                             # (1, A_pad) f32
    n_tot = q_ref.shape[0]
    for n in range(n_tot):                                               # Ntot = 2F-1, small
        tau_n = taus_all[:, n:n + 1]                                     # (bt, 1) f32
        # TODO(synk): if jnp.cos lowers to a VPU polynomial on v5e, switch to the
        # Chebyshev recurrence cos(k*t) = 2*cos(t)*cos((k-1)t) - cos((k-2)t).
        cosf = jnp.cos(tau_n * ipi).astype(bf16)                         # (bt, C)
        phi = jnp.dot(cosf, w_cos, preferred_element_type=f32) + b_cos
        phi = jnp.maximum(phi, 0.0)                                      # (bt, E) f32
        emb = (logits * phi).astype(bf16)                                # (bt, E)
        q_ref[n] = jnp.dot(emb, w_last, preferred_element_type=f32) + b_last


# --------------------------- hoisted constants -------------------------------
@functools.lru_cache(maxsize=None)
def _fqf_constants(F_, C, training):
    k = np.arange(F_)
    tri_taus = (k[:, None] < np.arange(F_ + 1)[None, :]).astype(np.float32)   # (F, F+1) strict cumsum
    tri_hat = tri_taus[:, 1:] - 0.5 * np.eye(F_, dtype=np.float32)            # (F, F) midpoints
    # [taus | tau_hats | 0]; the zero column receives the entropy in-kernel.
    g_frac = np.concatenate([tri_taus, tri_hat, np.zeros((F_, 1), np.float32)], axis=1)  # (F, 2F+2)
    g_all = (np.concatenate([tri_hat, tri_taus[:, 1:-1]], axis=1)
             if training else tri_hat)                                        # (F, Ntot)
    entcol = np.zeros((1, 2 * F_ + 2), np.float32)
    entcol[0, -1] = 1.0
    ipi = (np.pi * np.arange(1, C + 1, dtype=np.float32))[None, :]            # (1, C)
    return (jnp.asarray(g_frac), jnp.asarray(g_all), jnp.asarray(entcol), jnp.asarray(ipi))


def _pick_batch_tile(B):
    if B <= 8:
        return B                      # single full-dim block
    # Multiple of 8 sublanes; >= 2 grid steps once B >= 16 so the "parallel"
    # grid axis feeds both v7x TensorCores; tiles up to 256 rows so single-TC
    # v5e/v6e amortise the ~0.35us/step pipeline overhead on large batches.
    half = -(-B // 2)
    return min(256, -(-half // 8) * 8)


# ------------------------------- host wrapper -------------------------------
def full_quantile_function_forward(s, params, training=True, batch_tile=None):
    B, S = s.shape
    E = params["w_pre"].shape[1]
    F_ = params["w_frac"].shape[1]
    C = params["w_cos"].shape[0]
    A = params["w_last"].shape[1]
    n_tot = 2 * F_ - 1 if training else F_            # merged tau_hats + taus[:, 1:-1]
    a_pad = ((A + 127) // 128) * 128                  # lane-dense q output -> unmasked vst

    bt = batch_tile if batch_tile is not None else _pick_batch_tile(B)
    assert bt == B or bt % 8 == 0, "batch tile must be a multiple of 8 (or the full batch)"
    grid = (pl.cdiv(B, bt),)
    # NOTE: a ragged last tile (B % bt != 0) is safe here: every in-kernel op is
    # strictly row-independent and padded output rows are dropped on writeback.

    g_frac, g_all, entcol, ipi = _fqf_constants(F_, C, bool(training))

    bf16, f32 = jnp.bfloat16, jnp.float32
    w_last_p = jnp.zeros((E, a_pad), bf16).at[:, :A].set(params["w_last"].astype(bf16))
    b_last_p = jnp.zeros((1, a_pad), f32).at[:, :A].set(params["b_last"].reshape(1, -1).astype(f32))

    # Crude footprint estimate -> tight VMEM reservation (headroom on v7x).
    est = 4 * (bt * S + S * E + 2 * E + E * F_ + F_ + F_ * (2 * F_ + 2)
               + F_ * n_tot + 2 * (2 * F_ + 2) + C + C * E + E * a_pad + a_pad
               + n_tot * bt * a_pad + bt * (2 * F_ + 2))
    vmem_limit = int(min(64 << 20, max(4 << 20, 4 * est)))

    const2 = lambda b: (0, 0)
    q_flat, frac = pl.pallas_call(
        _fqf_kernel,
        out_shape=(
            jax.ShapeDtypeStruct((n_tot, B, a_pad), jnp.float32),
            jax.ShapeDtypeStruct((B, 2 * F_ + 2), jnp.float32),
        ),
        grid=grid,
        in_specs=[
            pl.BlockSpec((bt, S), lambda b: (b, 0)),
            pl.BlockSpec((S, E), const2), pl.BlockSpec((1, E), const2),
            pl.BlockSpec((E, F_), const2), pl.BlockSpec((1, F_), const2),
            pl.BlockSpec((F_, 2 * F_ + 2), const2), pl.BlockSpec((F_, n_tot), const2),
            pl.BlockSpec((1, 2 * F_ + 2), const2), pl.BlockSpec((1, C), const2),
            pl.BlockSpec((C, E), const2), pl.BlockSpec((1, E), const2),
            pl.BlockSpec((E, a_pad), const2), pl.BlockSpec((1, a_pad), const2),
        ],
        out_specs=(
            pl.BlockSpec((n_tot, bt, a_pad), lambda b: (0, b, 0)),
            pl.BlockSpec((bt, 2 * F_ + 2), lambda b: (b, 0)),
        ),
        compiler_params=pltpu.CompilerParams(
            dimension_semantics=("parallel",),
            vmem_limit_bytes=vmem_limit,
        ),
    )(
        s.astype(bf16),
        params["w_pre"].astype(bf16), params["b_pre"].reshape(1, -1).astype(f32),
        params["w_frac"].astype(f32), params["b_frac"].reshape(1, -1).astype(f32),
        g_frac, g_all, entcol, ipi,
        params["w_cos"].astype(bf16), params["b_cos"].reshape(1, -1).astype(f32),
        w_last_p, b_last_p,
    )

    # Present the torch-style (B, A, N) layout; consumers happy with (N, B, A)
    # could skip this small transpose entirely.
    q_all = jnp.transpose(q_flat[:, :, :A], (1, 2, 0))                   # (B, A, Ntot)
    if training:
        quantiles = q_all[:, :, :F_]                                     # (B, A, F)
        quantiles_tau = q_all[:, :, F_:]                                 # (B, A, F-1)
    else:
        quantiles, quantiles_tau = q_all, None
    taus = frac[:, :F_ + 1]
    tau_hats = frac[:, F_ + 1:2 * F_ + 1]
    entropies = frac[:, 2 * F_ + 1]
    fractions = {"taus": taus, "tau_hats": tau_hats, "entropies": entropies}
    h = None  # the simple preprocess net carries no recurrent state
    return (quantiles, fractions, quantiles_tau), h


# ------------------------------- init & checks -------------------------------
def init_params(key, S, E, C, F_, A):
    ks = jax.random.split(key, 7)
    w_pre = jax.random.uniform(ks[0], (S, E), jnp.float32, -1.0 / np.sqrt(S), 1.0 / np.sqrt(S))
    b_pre = jax.random.uniform(ks[1], (E,), jnp.float32, -1.0 / np.sqrt(S), 1.0 / np.sqrt(S))
    bound = 0.01 * np.sqrt(6.0 / (E + F_))           # xavier_uniform(gain=0.01), zero bias
    w_frac = jax.random.uniform(ks[2], (E, F_), jnp.float32, -bound, bound)
    b_frac = jnp.zeros((F_,), jnp.float32)
    w_cos = jax.random.uniform(ks[3], (C, E), jnp.float32, -1.0 / np.sqrt(C), 1.0 / np.sqrt(C))
    b_cos = jax.random.uniform(ks[4], (E,), jnp.float32, -1.0 / np.sqrt(C), 1.0 / np.sqrt(C))
    w_last = jax.random.uniform(ks[5], (E, A), jnp.float32, -1.0 / np.sqrt(E), 1.0 / np.sqrt(E))
    b_last = jax.random.uniform(ks[6], (A,), jnp.float32, -1.0 / np.sqrt(E), 1.0 / np.sqrt(E))
    return {"w_pre": w_pre, "b_pre": b_pre, "w_frac": w_frac, "b_frac": b_frac,
            "w_cos": w_cos, "b_cos": b_cos, "w_last": w_last, "b_last": b_last}


def _reference_forward(s, params, training=True):
    """Pure-JAX (f32) reference mirroring the PyTorch forward."""
    logits = jax.nn.relu(s @ params["w_pre"] + params["b_pre"])
    fl = logits @ params["w_frac"] + params["b_frac"]
    probs = jax.nn.softmax(fl, axis=-1)
    taus = jnp.concatenate(
        [jnp.zeros((s.shape[0], 1), jnp.float32), jnp.cumsum(probs, axis=-1)], axis=-1)
    tau_hats = 0.5 * (taus[:, :-1] + taus[:, 1:])
    entropies = -jnp.sum(probs * jax.nn.log_softmax(fl, axis=-1), axis=-1)

    def compute_q(obs, t):
        C = params["w_cos"].shape[0]
        ipi = jnp.pi * jnp.arange(1, C + 1, dtype=jnp.float32)
        cosf = jnp.cos(t[:, :, None] * ipi[None, None, :])
        phi = jax.nn.relu(jnp.einsum("bnc,ce->bne", cosf, params["w_cos"]) + params["b_cos"])
        emb = obs[:, None, :] * phi
        q = jnp.einsum("bne,ea->bna", emb, params["w_last"]) + params["b_last"]
        return jnp.swapaxes(q, 1, 2)

    quantiles = compute_q(logits, tau_hats)
    quantiles_tau = compute_q(logits, taus[:, 1:-1]) if training else None
    return quantiles, taus, tau_hats, entropies, quantiles_tau


if __name__ == "__main__":
    B, S, E, C, F_, A = 2, 32, 32, 64, 8, 4
    key = jax.random.PRNGKey(0)
    pkey, skey = jax.random.split(key)
    params = init_params(pkey, S, E, C, F_, A)
    s = jax.random.normal(skey, (B, S), dtype=jnp.float32)

    (quantiles, fractions, quantiles_tau), h = full_quantile_function_forward(
        s, params, training=True)

    quantiles = jax.block_until_ready(quantiles)
    quantiles_tau = jax.block_until_ready(quantiles_tau)
    taus = jax.block_until_ready(fractions["taus"])
    tau_hats = jax.block_until_ready(fractions["tau_hats"])
    entropies = jax.block_until_ready(fractions["entropies"])

    # shape checks
    assert quantiles.shape == (B, A, F_)
    assert quantiles_tau.shape == (B, A, F_ - 1)
    assert taus.shape == (B, F_ + 1)
    assert tau_hats.shape == (B, F_)
    assert entropies.shape == (B,)

    # structural checks: taus is a valid CDF grid
    assert np.allclose(np.asarray(taus[:, 0]), 0.0, atol=1e-6)
    assert np.allclose(np.asarray(taus[:, -1]), 1.0, atol=1e-5)
    assert bool(np.all(np.diff(np.asarray(taus), axis=1) >= -1e-6))
    assert bool(np.all(np.isfinite(np.asarray(quantiles))))
    assert bool(np.all(np.isfinite(np.asarray(quantiles_tau))))

    # numerical check against a pure-JAX f32 reference of the same forward
    r_q, r_taus, r_tauh, r_ent, r_qt = _reference_forward(s, params, training=True)
    assert np.allclose(np.asarray(taus), np.asarray(r_taus), atol=5e-3, rtol=5e-3)
    assert np.allclose(np.asarray(tau_hats), np.asarray(r_tauh), atol=5e-3, rtol=5e-3)
    assert np.allclose(np.asarray(entropies), np.asarray(r_ent), atol=5e-3, rtol=5e-3)
    # quantile head runs with bf16 MXU operands (f32 accumulate) -> looser tolerance
    assert np.allclose(np.asarray(quantiles), np.asarray(r_q), atol=5e-2, rtol=5e-2)
    assert np.allclose(np.asarray(quantiles_tau), np.asarray(r_qt), atol=5e-2, rtol=5e-2)

    print("KERNEL_OK")
</pallas_src>

<mosaic_0001>
module attributes {stable_mosaic.version = 11 : i64} {
  func.func @_fqf_kernel(%arg0: i32, %arg1: memref<2x32xbf16, #tpu.memory_space<vmem>>, %arg2: memref<32x32xbf16, #tpu.memory_space<vmem>>, %arg3: memref<1x32xf32, #tpu.memory_space<vmem>>, %arg4: memref<32x8xf32, #tpu.memory_space<vmem>>, %arg5: memref<1x8xf32, #tpu.memory_space<vmem>>, %arg6: memref<8x18xf32, #tpu.memory_space<vmem>>, %arg7: memref<8x15xf32, #tpu.memory_space<vmem>>, %arg8: memref<1x18xf32, #tpu.memory_space<vmem>>, %arg9: memref<1x64xf32, #tpu.memory_space<vmem>>, %arg10: memref<64x32xbf16, #tpu.memory_space<vmem>>, %arg11: memref<1x32xf32, #tpu.memory_space<vmem>>, %arg12: memref<32x128xbf16, #tpu.memory_space<vmem>>, %arg13: memref<1x128xf32, #tpu.memory_space<vmem>>, %arg14: memref<15x2x128xf32, #tpu.memory_space<vmem>>, %arg15: memref<2x18xf32, #tpu.memory_space<vmem>>) attributes {dimension_semantics = [#tpu.dimension_semantics<parallel>], iteration_bounds = array<i64: 1>, scalar_prefetch = 0 : i64, scratch_operands = 0 : i64, tpu.core_type = #tpu.core_type<tc>, window_params = [{transform_indices = @transform_0, window_bounds = array<i64: 2, 32>}, {pipeline_mode = #tpu.pipeline_mode<synchronous>, transform_indices = @transform_1, window_bounds = array<i64: 32, 32>}, {pipeline_mode = #tpu.pipeline_mode<synchronous>, transform_indices = @transform_2, window_bounds = array<i64: 1, 32>}, {pipeline_mode = #tpu.pipeline_mode<synchronous>, transform_indices = @transform_3, window_bounds = array<i64: 32, 8>}, {pipeline_mode = #tpu.pipeline_mode<synchronous>, transform_indices = @transform_4, window_bounds = array<i64: 1, 8>}, {pipeline_mode = #tpu.pipeline_mode<synchronous>, transform_indices = @transform_5, window_bounds = array<i64: 8, 18>}, {pipeline_mode = #tpu.pipeline_mode<synchronous>, transform_indices = @transform_6, window_bounds = array<i64: 8, 15>}, {pipeline_mode = #tpu.pipeline_mode<synchronous>, transform_indices = @transform_7, window_bounds = array<i64: 1, 18>}, {pipeline_mode = #tpu.pipeline_mode<synchronous>, transform_indices = @transform_8, window_bounds = array<i64: 1, 64>}, {pipeline_mode = #tpu.pipeline_mode<synchronous>, transform_indices = @transform_9, window_bounds = array<i64: 64, 32>}, {pipeline_mode = #tpu.pipeline_mode<synchronous>, transform_indices = @transform_10, window_bounds = array<i64: 1, 32>}, {pipeline_mode = #tpu.pipeline_mode<synchronous>, transform_indices = @transform_11, window_bounds = array<i64: 32, 128>}, {pipeline_mode = #tpu.pipeline_mode<synchronous>, transform_indices = @transform_12, window_bounds = array<i64: 1, 128>}, {transform_indices = @transform_13, window_bounds = array<i64: 15, 2, 128>}, {transform_indices = @transform_14, window_bounds = array<i64: 2, 18>}]} {
    %c0 = arith.constant 0 : index
    %c0_0 = arith.constant 0 : index
    %0 = vector.load %arg1[%c0, %c0_0] : memref<2x32xbf16, #tpu.memory_space<vmem>>, vector<2x32xbf16>
    %c0_1 = arith.constant 0 : index
    %c0_2 = arith.constant 0 : index
    %1 = vector.load %arg2[%c0_1, %c0_2] : memref<32x32xbf16, #tpu.memory_space<vmem>>, vector<32x32xbf16>
    %cst = arith.constant dense<0.000000e+00> : vector<2x32xf32>
    %2 = tpu.matmul %0, %1, %cst {dimension_numbers = #tpu.dot_dimension_numbers<[1], [0], [0], [1], [0, 0, 1, 1], [], []>} : vector<2x32xbf16>, vector<32x32xbf16>, vector<2x32xf32> -> vector<2x32xf32>
    %c0_3 = arith.constant 0 : index
    %c0_4 = arith.constant 0 : index
    %3 = vector.load %arg3[%c0_3, %c0_4] : memref<1x32xf32, #tpu.memory_space<vmem>>, vector<1x32xf32>
    %4 = vector.broadcast %3 : vector<1x32xf32> to vector<2x32xf32>
    %5 = arith.addf %2, %4 : vector<2x32xf32>
    %cst_5 = arith.constant 0.000000e+00 : f32
    %6 = vector.broadcast %cst_5 : f32 to vector<2x32xf32>
    %7 = arith.maximumf %5, %6 : vector<2x32xf32>
    %c0_6 = arith.constant 0 : index
    %c0_7 = arith.constant 0 : index
    %8 = vector.load %arg4[%c0_6, %c0_7] : memref<32x8xf32, #tpu.memory_space<vmem>>, vector<32x8xf32>
    %cst_8 = arith.constant dense<0.000000e+00> : vector<2x8xf32>
    %9 = tpu.matmul %7, %8, %cst_8 {dimension_numbers = #tpu.dot_dimension_numbers<[1], [0], [0], [1], [0, 0, 1, 1], [], []>} : vector<2x32xf32>, vector<32x8xf32>, vector<2x8xf32> -> vector<2x8xf32>
    %c0_9 = arith.constant 0 : index
    %c0_10 = arith.constant 0 : index
    %10 = vector.load %arg5[%c0_9, %c0_10] : memref<1x8xf32, #tpu.memory_space<vmem>>, vector<1x8xf32>
    %11 = vector.broadcast %10 : vector<1x8xf32> to vector<2x8xf32>
    %12 = arith.addf %9, %11 : vector<2x8xf32>
    %cst_11 = arith.constant dense<0xFF800000> : vector<2xf32>
    %13 = vector.multi_reduction <maximumf>, %12, %cst_11 [1] : vector<2x8xf32> to vector<2xf32>
    %14 = vector.shape_cast %13 : vector<2xf32> to vector<2x1xf32>
    %15 = vector.broadcast %14 : vector<2x1xf32> to vector<2x8xf32>
    %16 = arith.subf %12, %15 : vector<2x8xf32>
    %17 = math.exp %16 : vector<2x8xf32>
    %cst_12 = arith.constant dense<0.000000e+00> : vector<2xf32>
    %18 = vector.multi_reduction <add>, %17, %cst_12 [1] : vector<2x8xf32> to vector<2xf32>
    %19 = vector.shape_cast %18 : vector<2xf32> to vector<2x1xf32>
    %20 = vector.broadcast %19 : vector<2x1xf32> to vector<2x8xf32>
    %21 = arith.divf %17, %20 : vector<2x8xf32>
    %22 = math.log %19 : vector<2x1xf32>
    %23 = vector.broadcast %22 : vector<2x1xf32> to vector<2x8xf32>
    %24 = arith.subf %16, %23 : vector<2x8xf32>
    %25 = arith.mulf %21, %24 : vector<2x8xf32>
    %cst_13 = arith.constant dense<0.000000e+00> : vector<2xf32>
    %26 = vector.multi_reduction <add>, %25, %cst_13 [1] : vector<2x8xf32> to vector<2xf32>
    %27 = vector.shape_cast %26 : vector<2xf32> to vector<2x1xf32>
    %cst_14 = arith.constant 0.000000e+00 : f32
    %28 = vector.broadcast %cst_14 : f32 to vector<2x1xf32>
    %29 = arith.subf %28, %27 : vector<2x1xf32>
    %c0_15 = arith.constant 0 : index
    %c0_16 = arith.constant 0 : index
    %30 = vector.load %arg6[%c0_15, %c0_16] : memref<8x18xf32, #tpu.memory_space<vmem>>, vector<8x18xf32>
    %cst_17 = arith.constant dense<0.000000e+00> : vector<2x18xf32>
    %31 = tpu.matmul %21, %30, %cst_17 {dimension_numbers = #tpu.dot_dimension_numbers<[1], [0], [0], [1], [0, 0, 1, 1], [], []>} : vector<2x8xf32>, vector<8x18xf32>, vector<2x18xf32> -> vector<2x18xf32>
    %c0_18 = arith.constant 0 : index
    %c0_19 = arith.constant 0 : index
    %32 = vector.load %arg8[%c0_18, %c0_19] : memref<1x18xf32, #tpu.memory_space<vmem>>, vector<1x18xf32>
    %33 = vector.broadcast %29 : vector<2x1xf32> to vector<2x18xf32>
    %34 = vector.broadcast %32 : vector<1x18xf32> to vector<2x18xf32>
    %35 = arith.mulf %33, %34 : vector<2x18xf32>
    %36 = arith.addf %31, %35 : vector<2x18xf32>
    %c0_20 = arith.constant 0 : index
    %c0_21 = arith.constant 0 : index
    %37 = vector.load %arg15[%c0_20, %c0_21] : memref<2x18xf32, #tpu.memory_space<vmem>>, vector<2x18xf32>
    tpu.vector_store %arg15[%c0_20, %c0_21], %36 {strides = array<i32>} : memref<2x18xf32, #tpu.memory_space<vmem>>, vector<2x18xf32>,
    %c0_22 = arith.constant 0 : index
    %c0_23 = arith.constant 0 : index
    %38 = vector.load %arg7[%c0_22, %c0_23] : memref<8x15xf32, #tpu.memory_space<vmem>>, vector<8x15xf32>
    %cst_24 = arith.constant dense<0.000000e+00> : vector<2x15xf32>
    %39 = tpu.matmul %21, %38, %cst_24 {dimension_numbers = #tpu.dot_dimension_numbers<[1], [0], [0], [1], [0, 0, 1, 1], [], []>} : vector<2x8xf32>, vector<8x15xf32>, vector<2x15xf32> -> vector<2x15xf32>
    %c0_25 = arith.constant 0 : index
    %c0_26 = arith.constant 0 : index
    %40 = vector.load %arg9[%c0_25, %c0_26] : memref<1x64xf32, #tpu.memory_space<vmem>>, vector<1x64xf32>
    %c0_27 = arith.constant 0 : index
    %c0_28 = arith.constant 0 : index
    %41 = vector.load %arg10[%c0_27, %c0_28] : memref<64x32xbf16, #tpu.memory_space<vmem>>, vector<64x32xbf16>
    %c0_29 = arith.constant 0 : index
    %c0_30 = arith.constant 0 : index
    %42 = vector.load %arg11[%c0_29, %c0_30] : memref<1x32xf32, #tpu.memory_space<vmem>>, vector<1x32xf32>
    %c0_31 = arith.constant 0 : index
    %c0_32 = arith.constant 0 : index
    %43 = vector.load %arg12[%c0_31, %c0_32] : memref<32x128xbf16, #tpu.memory_space<vmem>>, vector<32x128xbf16>
    %c0_33 = arith.constant 0 : index
    %c0_34 = arith.constant 0 : index
    %44 = vector.load %arg13[%c0_33, %c0_34] : memref<1x128xf32, #tpu.memory_space<vmem>>, vector<1x128xf32>
    %45 = vector.extract_strided_slice %39 {offsets = [0, 0], sizes = [2, 1], strides = [1, 1]} : vector<2x15xf32> to vector<2x1xf32>
    %46 = vector.broadcast %45 : vector<2x1xf32> to vector<2x64xf32>
    %47 = vector.broadcast %40 : vector<1x64xf32> to vector<2x64xf32>
    %48 = arith.mulf %46, %47 : vector<2x64xf32>
    %49 = math.cos %48 : vector<2x64xf32>
    %50 = arith.truncf %49 : vector<2x64xf32> to vector<2x64xbf16>
    %cst_35 = arith.constant dense<0.000000e+00> : vector<2x32xf32>
    %51 = tpu.matmul %50, %41, %cst_35 {dimension_numbers = #tpu.dot_dimension_numbers<[1], [0], [0], [1], [0, 0, 1, 1], [], []>} : vector<2x64xbf16>, vector<64x32xbf16>, vector<2x32xf32> -> vector<2x32xf32>
    %52 = vector.broadcast %42 : vector<1x32xf32> to vector<2x32xf32>
    %53 = arith.addf %51, %52 : vector<2x32xf32>
    %cst_36 = arith.constant 0.000000e+00 : f32
    %54 = vector.broadcast %cst_36 : f32 to vector<2x32xf32>
    %55 = arith.maximumf %53, %54 : vector<2x32xf32>
    %56 = arith.mulf %7, %55 : vector<2x32xf32>
    %57 = arith.truncf %56 : vector<2x32xf32> to vector<2x32xbf16>
    %cst_37 = arith.constant dense<0.000000e+00> : vector<2x128xf32>
    %58 = tpu.matmul %57, %43, %cst_37 {dimension_numbers = #tpu.dot_dimension_numbers<[1], [0], [0], [1], [0, 0, 1, 1], [], []>} : vector<2x32xbf16>, vector<32x128xbf16>, vector<2x128xf32> -> vector<2x128xf32>
    %59 = vector.broadcast %44 : vector<1x128xf32> to vector<2x128xf32>
    %60 = arith.addf %58, %59 : vector<2x128xf32>
    %c0_38 = arith.constant 0 : index
    %c0_39 = arith.constant 0 : index
    %c0_40 = arith.constant 0 : index
    %61 = vector.load %arg14[%c0_38, %c0_39, %c0_40] : memref<15x2x128xf32, #tpu.memory_space<vmem>>, vector<1x2x128xf32>
    %62 = vector.shape_cast %61 : vector<1x2x128xf32> to vector<2x128xf32>
    %63 = vector.shape_cast %60 : vector<2x128xf32> to vector<1x2x128xf32>
    tpu.vector_store %arg14[%c0_38, %c0_39, %c0_40], %63 {strides = array<i32>} : memref<15x2x128xf32, #tpu.memory_space<vmem>>, vector<1x2x128xf32>,
    %64 = vector.extract_strided_slice %39 {offsets = [0, 1], sizes = [2, 1], strides = [1, 1]} : vector<2x15xf32> to vector<2x1xf32>
    %65 = vector.broadcast %64 : vector<2x1xf32> to vector<2x64xf32>
    %66 = vector.broadcast %40 : vector<1x64xf32> to vector<2x64xf32>
    %67 = arith.mulf %65, %66 : vector<2x64xf32>
    %68 = math.cos %67 : vector<2x64xf32>
    %69 = arith.truncf %68 : vector<2x64xf32> to vector<2x64xbf16>
    %cst_41 = arith.constant dense<0.000000e+00> : vector<2x32xf32>
    %70 = tpu.matmul %69, %41, %cst_41 {dimension_numbers = #tpu.dot_dimension_numbers<[1], [0], [0], [1], [0, 0, 1, 1], [], []>} : vector<2x64xbf16>, vector<64x32xbf16>, vector<2x32xf32> -> vector<2x32xf32>
    %71 = vector.broadcast %42 : vector<1x32xf32> to vector<2x32xf32>
    %72 = arith.addf %70, %71 : vector<2x32xf32>
    %cst_42 = arith.constant 0.000000e+00 : f32
    %73 = vector.broadcast %cst_42 : f32 to vector<2x32xf32>
    %74 = arith.maximumf %72, %73 : vector<2x32xf32>
    %75 = arith.mulf %7, %74 : vector<2x32xf32>
    %76 = arith.truncf %75 : vector<2x32xf32> to vector<2x32xbf16>
    %cst_43 = arith.constant dense<0.000000e+00> : vector<2x128xf32>
    %77 = tpu.matmul %76, %43, %cst_43 {dimension_numbers = #tpu.dot_dimension_numbers<[1], [0], [0], [1], [0, 0, 1, 1], [], []>} : vector<2x32xbf16>, vector<32x128xbf16>, vector<2x128xf32> -> vector<2x128xf32>
    %78 = vector.broadcast %44 : vector<1x128xf32> to vector<2x128xf32>
    %79 = arith.addf %77, %78 : vector<2x128xf32>
    %c1 = arith.constant 1 : index
    %c0_44 = arith.constant 0 : index
    %c0_45 = arith.constant 0 : index
    %80 = vector.load %arg14[%c1, %c0_44, %c0_45] : memref<15x2x128xf32, #tpu.memory_space<vmem>>, vector<1x2x128xf32>
    %81 = vector.shape_cast %80 : vector<1x2x128xf32> to vector<2x128xf32>
    %82 = vector.shape_cast %79 : vector<2x128xf32> to vector<1x2x128xf32>
    tpu.vector_store %arg14[%c1, %c0_44, %c0_45], %82 {strides = array<i32>} : memref<15x2x128xf32, #tpu.memory_space<vmem>>, vector<1x2x128xf32>,
    %83 = vector.extract_strided_slice %39 {offsets = [0, 2], sizes = [2, 1], strides = [1, 1]} : vector<2x15xf32> to vector<2x1xf32>
    %84 = vector.broadcast %83 : vector<2x1xf32> to vector<2x64xf32>
    %85 = vector.broadcast %40 : vector<1x64xf32> to vector<2x64xf32>
    %86 = arith.mulf %84, %85 : vector<2x64xf32>
    %87 = math.cos %86 : vector<2x64xf32>
    %88 = arith.truncf %87 : vector<2x64xf32> to vector<2x64xbf16>
    %cst_46 = arith.constant dense<0.000000e+00> : vector<2x32xf32>
    %89 = tpu.matmul %88, %41, %cst_46 {dimension_numbers = #tpu.dot_dimension_numbers<[1], [0], [0], [1], [0, 0, 1, 1], [], []>} : vector<2x64xbf16>, vector<64x32xbf16>, vector<2x32xf32> -> vector<2x32xf32>
    %90 = vector.broadcast %42 : vector<1x32xf32> to vector<2x32xf32>
    %91 = arith.addf %89, %90 : vector<2x32xf32>
    %cst_47 = arith.constant 0.000000e+00 : f32
    %92 = vector.broadcast %cst_47 : f32 to vector<2x32xf32>
    %93 = arith.maximumf %91, %92 : vector<2x32xf32>
    %94 = arith.mulf %7, %93 : vector<2x32xf32>
    %95 = arith.truncf %94 : vector<2x32xf32> to vector<2x32xbf16>
    %cst_48 = arith.constant dense<0.000000e+00> : vector<2x128xf32>
    %96 = tpu.matmul %95, %43, %cst_48 {dimension_numbers = #tpu.dot_dimension_numbers<[1], [0], [0], [1], [0, 0, 1, 1], [], []>} : vector<2x32xbf16>, vector<32x128xbf16>, vector<2x128xf32> -> vector<2x128xf32>
    %97 = vector.broadcast %44 : vector<1x128xf32> to vector<2x128xf32>
    %98 = arith.addf %96, %97 : vector<2x128xf32>
    %c2 = arith.constant 2 : index
    %c0_49 = arith.constant 0 : index
    %c0_50 = arith.constant 0 : index
    %99 = vector.load %arg14[%c2, %c0_49, %c0_50] : memref<15x2x128xf32, #tpu.memory_space<vmem>>, vector<1x2x128xf32>
    %100 = vector.shape_cast %99 : vector<1x2x128xf32> to vector<2x128xf32>
    %101 = vector.shape_cast %98 : vector<2x128xf32> to vector<1x2x128xf32>
    tpu.vector_store %arg14[%c2, %c0_49, %c0_50], %101 {strides = array<i32>} : memref<15x2x128xf32, #tpu.memory_space<vmem>>, vector<1x2x128xf32>,
    %102 = vector.extract_strided_slice %39 {offsets = [0, 3], sizes = [2, 1], strides = [1, 1]} : vector<2x15xf32> to vector<2x1xf32>
    %103 = vector.broadcast %102 : vector<2x1xf32> to vector<2x64xf32>
    %104 = vector.broadcast %40 : vector<1x64xf32> to vector<2x64xf32>
    %105 = arith.mulf %103, %104 : vector<2x64xf32>
    %106 = math.cos %105 : vector<2x64xf32>
    %107 = arith.truncf %106 : vector<2x64xf32> to vector<2x64xbf16>
    %cst_51 = arith.constant dense<0.000000e+00> : vector<2x32xf32>
    %108 = tpu.matmul %107, %41, %cst_51 {dimension_numbers = #tpu.dot_dimension_numbers<[1], [0], [0], [1], [0, 0, 1, 1], [], []>} : vector<2x64xbf16>, vector<64x32xbf16>, vector<2x32xf32> -> vector<2x32xf32>
    %109 = vector.broadcast %42 : vector<1x32xf32> to vector<2x32xf32>
    %110 = arith.addf %108, %109 : vector<2x32xf32>
    %cst_52 = arith.constant 0.000000e+00 : f32
    %111 = vector.broadcast %cst_52 : f32 to vector<2x32xf32>
    %112 = arith.maximumf %110, %111 : vector<2x32xf32>
    %113 = arith.mulf %7, %112 : vector<2x32xf32>
    %114 = arith.truncf %113 : vector<2x32xf32> to vector<2x32xbf16>
    %cst_53 = arith.constant dense<0.000000e+00> : vector<2x128xf32>
    %115 = tpu.matmul %114, %43, %cst_53 {dimension_numbers = #tpu.dot_dimension_numbers<[1], [0], [0], [1], [0, 0, 1, 1], [], []>} : vector<2x32xbf16>, vector<32x128xbf16>, vector<2x128xf32> -> vector<2x128xf32>
    %116 = vector.broadcast %44 : vector<1x128xf32> to vector<2x128xf32>
    %117 = arith.addf %115, %116 : vector<2x128xf32>
    %c3 = arith.constant 3 : index
    %c0_54 = arith.constant 0 : index
    %c0_55 = arith.constant 0 : index
    %118 = vector.load %arg14[%c3, %c0_54, %c0_55] : memref<15x2x128xf32, #tpu.memory_space<vmem>>, vector<1x2x128xf32>
    %119 = vector.shape_cast %118 : vector<1x2x128xf32> to vector<2x128xf32>
    %120 = vector.shape_cast %117 : vector<2x128xf32> to vector<1x2x128xf32>
    tpu.vector_store %arg14[%c3, %c0_54, %c0_55], %120 {strides = array<i32>} : memref<15x2x128xf32, #tpu.memory_space<vmem>>, vector<1x2x128xf32>,
    %121 = vector.extract_strided_slice %39 {offsets = [0, 4], sizes = [2, 1], strides = [1, 1]} : vector<2x15xf32> to vector<2x1xf32>
    %122 = vector.broadcast %121 : vector<2x1xf32> to vector<2x64xf32>
    %123 = vector.broadcast %40 : vector<1x64xf32> to vector<2x64xf32>
    %124 = arith.mulf %122, %123 : vector<2x64xf32>
    %125 = math.cos %124 : vector<2x64xf32>
    %126 = arith.truncf %125 : vector<2x64xf32> to vector<2x64xbf16>
    %cst_56 = arith.constant dense<0.000000e+00> : vector<2x32xf32>
    %127 = tpu.matmul %126, %41, %cst_56 {dimension_numbers = #tpu.dot_dimension_numbers<[1], [0], [0], [1], [0, 0, 1, 1], [], []>} : vector<2x64xbf16>, vector<64x32xbf16>, vector<2x32xf32> -> vector<2x32xf32>
    %128 = vector.broadcast %42 : vector<1x32xf32> to vector<2x32xf32>
    %129 = arith.addf %127, %128 : vector<2x32xf32>
    %cst_57 = arith.constant 0.000000e+00 : f32
    %130 = vector.broadcast %cst_57 : f32 to vector<2x32xf32>
    %131 = arith.maximumf %129, %130 : vector<2x32xf32>
    %132 = arith.mulf %7, %131 : vector<2x32xf32>
    %133 = arith.truncf %132 : vector<2x32xf32> to vector<2x32xbf16>
    %cst_58 = arith.constant dense<0.000000e+00> : vector<2x128xf32>
    %134 = tpu.matmul %133, %43, %cst_58 {dimension_numbers = #tpu.dot_dimension_numbers<[1], [0], [0], [1], [0, 0, 1, 1], [], []>} : vector<2x32xbf16>, vector<32x128xbf16>, vector<2x128xf32> -> vector<2x128xf32>
    %135 = vector.broadcast %44 : vector<1x128xf32> to vector<2x128xf32>
    %136 = arith.addf %134, %135 : vector<2x128xf32>
    %c4 = arith.constant 4 : index
    %c0_59 = arith.constant 0 : index
    %c0_60 = arith.constant 0 : index
    %137 = vector.load %arg14[%c4, %c0_59, %c0_60] : memref<15x2x128xf32, #tpu.memory_space<vmem>>, vector<1x2x128xf32>
    %138 = vector.shape_cast %137 : vector<1x2x128xf32> to vector<2x128xf32>
    %139 = vector.shape_cast %136 : vector<2x128xf32> to vector<1x2x128xf32>
    tpu.vector_store %arg14[%c4, %c0_59, %c0_60], %139 {strides = array<i32>} : memref<15x2x128xf32, #tpu.memory_space<vmem>>, vector<1x2x128xf32>,
    %140 = vector.extract_strided_slice %39 {offsets = [0, 5], sizes = [2, 1], strides = [1, 1]} : vector<2x15xf32> to vector<2x1xf32>
    %141 = vector.broadcast %140 : vector<2x1xf32> to vector<2x64xf32>
    %142 = vector.broadcast %40 : vector<1x64xf32> to vector<2x64xf32>
    %143 = arith.mulf %141, %142 : vector<2x64xf32>
    %144 = math.cos %143 : vector<2x64xf32>
    %145 = arith.truncf %144 : vector<2x64xf32> to vector<2x64xbf16>
    %cst_61 = arith.constant dense<0.000000e+00> : vector<2x32xf32>
    %146 = tpu.matmul %145, %41, %cst_61 {dimension_numbers = #tpu.dot_dimension_numbers<[1], [0], [0], [1], [0, 0, 1, 1], [], []>} : vector<2x64xbf16>, vector<64x32xbf16>, vector<2x32xf32> -> vector<2x32xf32>
    %147 = vector.broadcast %42 : vector<1x32xf32> to vector<2x32xf32>
    %148 = arith.addf %146, %147 : vector<2x32xf32>
    %cst_62 = arith.constant 0.000000e+00 : f32
    %149 = vector.broadcast %cst_62 : f32 to vector<2x32xf32>
    %150 = arith.maximumf %148, %149 : vector<2x32xf32>
    %151 = arith.mulf %7, %150 : vector<2x32xf32>
    %152 = arith.truncf %151 : vector<2x32xf32> to vector<2x32xbf16>
    %cst_63 = arith.constant dense<0.000000e+00> : vector<2x128xf32>
    %153 = tpu.matmul %152, %43, %cst_63 {dimension_numbers = #tpu.dot_dimension_numbers<[1], [0], [0], [1], [0, 0, 1, 1], [], []>} : vector<2x32xbf16>, vector<32x128xbf16>, vector<2x128xf32> -> vector<2x128xf32>
    %154 = vector.broadcast %44 : vector<1x128xf32> to vector<2x128xf32>
    %155 = arith.addf %153, %154 : vector<2x128xf32>
    %c5 = arith.constant 5 : index
    %c0_64 = arith.constant 0 : index
    %c0_65 = arith.constant 0 : index
    %156 = vector.load %arg14[%c5, %c0_64, %c0_65] : memref<15x2x128xf32, #tpu.memory_space<vmem>>, vector<1x2x128xf32>
    %157 = vector.shape_cast %156 : vector<1x2x128xf32> to vector<2x128xf32>
    %158 = vector.shape_cast %155 : vector<2x128xf32> to vector<1x2x128xf32>
    tpu.vector_store %arg14[%c5, %c0_64, %c0_65], %158 {strides = array<i32>} : memref<15x2x128xf32, #tpu.memory_space<vmem>>, vector<1x2x128xf32>,
    %159 = vector.extract_strided_slice %39 {offsets = [0, 6], sizes = [2, 1], strides = [1, 1]} : vector<2x15xf32> to vector<2x1xf32>
    %160 = vector.broadcast %159 : vector<2x1xf32> to vector<2x64xf32>
    %161 = vector.broadcast %40 : vector<1x64xf32> to vector<2x64xf32>
    %162 = arith.mulf %160, %161 : vector<2x64xf32>
    %163 = math.cos %162 : vector<2x64xf32>
    %164 = arith.truncf %163 : vector<2x64xf32> to vector<2x64xbf16>
    %cst_66 = arith.constant dense<0.000000e+00> : vector<2x32xf32>
    %165 = tpu.matmul %164, %41, %cst_66 {dimension_numbers = #tpu.dot_dimension_numbers<[1], [0], [0], [1], [0, 0, 1, 1], [], []>} : vector<2x64xbf16>, vector<64x32xbf16>, vector<2x32xf32> -> vector<2x32xf32>
    %166 = vector.broadcast %42 : vector<1x32xf32> to vector<2x32xf32>
    %167 = arith.addf %165, %166 : vector<2x32xf32>
    %cst_67 = arith.constant 0.000000e+00 : f32
    %168 = vector.broadcast %cst_67 : f32 to vector<2x32xf32>
    %169 = arith.maximumf %167, %168 : vector<2x32xf32>
    %170 = arith.mulf %7, %169 : vector<2x32xf32>
    %171 = arith.truncf %170 : vector<2x32xf32> to vector<2x32xbf16>
    %cst_68 = arith.constant dense<0.000000e+00> : vector<2x128xf32>
    %172 = tpu.matmul %171, %43, %cst_68 {dimension_numbers = #tpu.dot_dimension_numbers<[1], [0], [0], [1], [0, 0, 1, 1], [], []>} : vector<2x32xbf16>, vector<32x128xbf16>, vector<2x128xf32> -> vector<2x128xf32>
    %173 = vector.broadcast %44 : vector<1x128xf32> to vector<2x128xf32>
    %174 = arith.addf %172, %173 : vector<2x128xf32>
    %c6 = arith.constant 6 : index
    %c0_69 = arith.constant 0 : index
    %c0_70 = arith.constant 0 : index
    %175 = vector.load %arg14[%c6, %c0_69, %c0_70] : memref<15x2x128xf32, #tpu.memory_space<vmem>>, vector<1x2x128xf32>
    %176 = vector.shape_cast %175 : vector<1x2x128xf32> to vector<2x128xf32>
    %177 = vector.shape_cast %174 : vector<2x128xf32> to vector<1x2x128xf32>
    tpu.vector_store %arg14[%c6, %c0_69, %c0_70], %177 {strides = array<i32>} : memref<15x2x128xf32, #tpu.memory_space<vmem>>, vector<1x2x128xf32>,
    %178 = vector.extract_strided_slice %39 {offsets = [0, 7], sizes = [2, 1], strides = [1, 1]} : vector<2x15xf32> to vector<2x1xf32>
    %179 = vector.broadcast %178 : vector<2x1xf32> to vector<2x64xf32>
    %180 = vector.broadcast %40 : vector<1x64xf32> to vector<2x64xf32>
    %181 = arith.mulf %179, %180 : vector<2x64xf32>
    %182 = math.cos %181 : vector<2x64xf32>
    %183 = arith.truncf %182 : vector<2x64xf32> to vector<2x64xbf16>
    %cst_71 = arith.constant dense<0.000000e+00> : vector<2x32xf32>
    %184 = tpu.matmul %183, %41, %cst_71 {dimension_numbers = #tpu.dot_dimension_numbers<[1], [0], [0], [1], [0, 0, 1, 1], [], []>} : vector<2x64xbf16>, vector<64x32xbf16>, vector<2x32xf32> -> vector<2x32xf32>
    %185 = vector.broadcast %42 : vector<1x32xf32> to vector<2x32xf32>
    %186 = arith.addf %184, %185 : vector<2x32xf32>
    %cst_72 = arith.constant 0.000000e+00 : f32
    %187 = vector.broadcast %cst_72 : f32 to vector<2x32xf32>
    %188 = arith.maximumf %186, %187 : vector<2x32xf32>
    %189 = arith.mulf %7, %188 : vector<2x32xf32>
    %190 = arith.truncf %189 : vector<2x32xf32> to vector<2x32xbf16>
    %cst_73 = arith.constant dense<0.000000e+00> : vector<2x128xf32>
    %191 = tpu.matmul %190, %43, %cst_73 {dimension_numbers = #tpu.dot_dimension_numbers<[1], [0], [0], [1], [0, 0, 1, 1], [], []>} : vector<2x32xbf16>, vector<32x128xbf16>, vector<2x128xf32> -> vector<2x128xf32>
    %192 = vector.broadcast %44 : vector<1x128xf32> to vector<2x128xf32>
    %193 = arith.addf %191, %192 : vector<2x128xf32>
    %c7 = arith.constant 7 : index
    %c0_74 = arith.constant 0 : index
    %c0_75 = arith.constant 0 : index
    %194 = vector.load %arg14[%c7, %c0_74, %c0_75] : memref<15x2x128xf32, #tpu.memory_space<vmem>>, vector<1x2x128xf32>
    %195 = vector.shape_cast %194 : vector<1x2x128xf32> to vector<2x128xf32>
    %196 = vector.shape_cast %193 : vector<2x128xf32> to vector<1x2x128xf32>
    tpu.vector_store %arg14[%c7, %c0_74, %c0_75], %196 {strides = array<i32>} : memref<15x2x128xf32, #tpu.memory_space<vmem>>, vector<1x2x128xf32>,
    %197 = vector.extract_strided_slice %39 {offsets = [0, 8], sizes = [2, 1], strides = [1, 1]} : vector<2x15xf32> to vector<2x1xf32>
    %198 = vector.broadcast %197 : vector<2x1xf32> to vector<2x64xf32>
    %199 = vector.broadcast %40 : vector<1x64xf32> to vector<2x64xf32>
    %200 = arith.mulf %198, %199 : vector<2x64xf32>
    %201 = math.cos %200 : vector<2x64xf32>
    %202 = arith.truncf %201 : vector<2x64xf32> to vector<2x64xbf16>
    %cst_76 = arith.constant dense<0.000000e+00> : vector<2x32xf32>
    %203 = tpu.matmul %202, %41, %cst_76 {dimension_numbers = #tpu.dot_dimension_numbers<[1], [0], [0], [1], [0, 0, 1, 1], [], []>} : vector<2x64xbf16>, vector<64x32xbf16>, vector<2x32xf32> -> vector<2x32xf32>
    %204 = vector.broadcast %42 : vector<1x32xf32> to vector<2x32xf32>
    %205 = arith.addf %203, %204 : vector<2x32xf32>
    %cst_77 = arith.constant 0.000000e+00 : f32
    %206 = vector.broadcast %cst_77 : f32 to vector<2x32xf32>
    %207 = arith.maximumf %205, %206 : vector<2x32xf32>
    %208 = arith.mulf %7, %207 : vector<2x32xf32>
    %209 = arith.truncf %208 : vector<2x32xf32> to vector<2x32xbf16>
    %cst_78 = arith.constant dense<0.000000e+00> : vector<2x128xf32>
    %210 = tpu.matmul %209, %43, %cst_78 {dimension_numbers = #tpu.dot_dimension_numbers<[1], [0], [0], [1], [0, 0, 1, 1], [], []>} : vector<2x32xbf16>, vector<32x128xbf16>, vector<2x128xf32> -> vector<2x128xf32>
    %211 = vector.broadcast %44 : vector<1x128xf32> to vector<2x128xf32>
    %212 = arith.addf %210, %211 : vector<2x128xf32>
    %c8 = arith.constant 8 : index
    %c0_79 = arith.constant 0 : index
    %c0_80 = arith.constant 0 : index
    %213 = vector.load %arg14[%c8, %c0_79, %c0_80] : memref<15x2x128xf32, #tpu.memory_space<vmem>>, vector<1x2x128xf32>
    %214 = vector.shape_cast %213 : vector<1x2x128xf32> to vector<2x128xf32>
    %215 = vector.shape_cast %212 : vector<2x128xf32> to vector<1x2x128xf32>
    tpu.vector_store %arg14[%c8, %c0_79, %c0_80], %215 {strides = array<i32>} : memref<15x2x128xf32, #tpu.memory_space<vmem>>, vector<1x2x128xf32>,
    %216 = vector.extract_strided_slice %39 {offsets = [0, 9], sizes = [2, 1], strides = [1, 1]} : vector<2x15xf32> to vector<2x1xf32>
    %217 = vector.broadcast %216 : vector<2x1xf32> to vector<2x64xf32>
    %218 = vector.broadcast %40 : vector<1x64xf32> to vector<2x64xf32>
    %219 = arith.mulf %217, %218 : vector<2x64xf32>
    %220 = math.cos %219 : vector<2x64xf32>
    %221 = arith.truncf %220 : vector<2x64xf32> to vector<2x64xbf16>
    %cst_81 = arith.constant dense<0.000000e+00> : vector<2x32xf32>
    %222 = tpu.matmul %221, %41, %cst_81 {dimension_numbers = #tpu.dot_dimension_numbers<[1], [0], [0], [1], [0, 0, 1, 1], [], []>} : vector<2x64xbf16>, vector<64x32xbf16>, vector<2x32xf32> -> vector<2x32xf32>
    %223 = vector.broadcast %42 : vector<1x32xf32> to vector<2x32xf32>
    %224 = arith.addf %222, %223 : vector<2x32xf32>
    %cst_82 = arith.constant 0.000000e+00 : f32
    %225 = vector.broadcast %cst_82 : f32 to vector<2x32xf32>
    %226 = arith.maximumf %224, %225 : vector<2x32xf32>
    %227 = arith.mulf %7, %226 : vector<2x32xf32>
    %228 = arith.truncf %227 : vector<2x32xf32> to vector<2x32xbf16>
    %cst_83 = arith.constant dense<0.000000e+00> : vector<2x128xf32>
    %229 = tpu.matmul %228, %43, %cst_83 {dimension_numbers = #tpu.dot_dimension_numbers<[1], [0], [0], [1], [0, 0, 1, 1], [], []>} : vector<2x32xbf16>, vector<32x128xbf16>, vector<2x128xf32> -> vector<2x128xf32>
    %230 = vector.broadcast %44 : vector<1x128xf32> to vector<2x128xf32>
    %231 = arith.addf %229, %230 : vector<2x128xf32>
    %c9 = arith.constant 9 : index
    %c0_84 = arith.constant 0 : index
    %c0_85 = arith.constant 0 : index
    %232 = vector.load %arg14[%c9, %c0_84, %c0_85] : memref<15x2x128xf32, #tpu.memory_space<vmem>>, vector<1x2x128xf32>
    %233 = vector.shape_cast %232 : vector<1x2x128xf32> to vector<2x128xf32>
    %234 = vector.shape_cast %231 : vector<2x128xf32> to vector<1x2x128xf32>
    tpu.vector_store %arg14[%c9, %c0_84, %c0_85], %234 {strides = array<i32>} : memref<15x2x128xf32, #tpu.memory_space<vmem>>, vector<1x2x128xf32>,
    %235 = vector.extract_strided_slice %39 {offsets = [0, 10], sizes = [2, 1], strides = [1, 1]} : vector<2x15xf32> to vector<2x1xf32>
    %236 = vector.broadcast %235 : vector<2x1xf32> to vector<2x64xf32>
    %237 = vector.broadcast %40 : vector<1x64xf32> to vector<2x64xf32>
    %238 = arith.mulf %236, %237 : vector<2x64xf32>
    %239 = math.cos %238 : vector<2x64xf32>
    %240 = arith.truncf %239 : vector<2x64xf32> to vector<2x64xbf16>
    %cst_86 = arith.constant dense<0.000000e+00> : vector<2x32xf32>
    %241 = tpu.matmul %240, %41, %cst_86 {dimension_numbers = #tpu.dot_dimension_numbers<[1], [0], [0], [1], [0, 0, 1, 1], [], []>} : vector<2x64xbf16>, vector<64x32xbf16>, vector<2x32xf32> -> vector<2x32xf32>
    %242 = vector.broadcast %42 : vector<1x32xf32> to vector<2x32xf32>
    %243 = arith.addf %241, %242 : vector<2x32xf32>
    %cst_87 = arith.constant 0.000000e+00 : f32
    %244 = vector.broadcast %cst_87 : f32 to vector<2x32xf32>
    %245 = arith.maximumf %243, %244 : vector<2x32xf32>
    %246 = arith.mulf %7, %245 : vector<2x32xf32>
    %247 = arith.truncf %246 : vector<2x32xf32> to vector<2x32xbf16>
    %cst_88 = arith.constant dense<0.000000e+00> : vector<2x128xf32>
    %248 = tpu.matmul %247, %43, %cst_88 {dimension_numbers = #tpu.dot_dimension_numbers<[1], [0], [0], [1], [0, 0, 1, 1], [], []>} : vector<2x32xbf16>, vector<32x128xbf16>, vector<2x128xf32> -> vector<2x128xf32>
    %249 = vector.broadcast %44 : vector<1x128xf32> to vector<2x128xf32>
    %250 = arith.addf %248, %249 : vector<2x128xf32>
    %c10 = arith.constant 10 : index
    %c0_89 = arith.constant 0 : index
    %c0_90 = arith.constant 0 : index
    %251 = vector.load %arg14[%c10, %c0_89, %c0_90] : memref<15x2x128xf32, #tpu.memory_space<vmem>>, vector<1x2x128xf32>
    %252 = vector.shape_cast %251 : vector<1x2x128xf32> to vector<2x128xf32>
    %253 = vector.shape_cast %250 : vector<2x128xf32> to vector<1x2x128xf32>
    tpu.vector_store %arg14[%c10, %c0_89, %c0_90], %253 {strides = array<i32>} : memref<15x2x128xf32, #tpu.memory_space<vmem>>, vector<1x2x128xf32>,
    %254 = vector.extract_strided_slice %39 {offsets = [0, 11], sizes = [2, 1], strides = [1, 1]} : vector<2x15xf32> to vector<2x1xf32>
    %255 = vector.broadcast %254 : vector<2x1xf32> to vector<2x64xf32>
    %256 = vector.broadcast %40 : vector<1x64xf32> to vector<2x64xf32>
    %257 = arith.mulf %255, %256 : vector<2x64xf32>
    %258 = math.cos %257 : vector<2x64xf32>
    %259 = arith.truncf %258 : vector<2x64xf32> to vector<2x64xbf16>
    %cst_91 = arith.constant dense<0.000000e+00> : vector<2x32xf32>
    %260 = tpu.matmul %259, %41, %cst_91 {dimension_numbers = #tpu.dot_dimension_numbers<[1], [0], [0], [1], [0, 0, 1, 1], [], []>} : vector<2x64xbf16>, vector<64x32xbf16>, vector<2x32xf32> -> vector<2x32xf32>
    %261 = vector.broadcast %42 : vector<1x32xf32> to vector<2x32xf32>
    %262 = arith.addf %260, %261 : vector<2x32xf32>
    %cst_92 = arith.constant 0.000000e+00 : f32
    %263 = vector.broadcast %cst_92 : f32 to vector<2x32xf32>
    %264 = arith.maximumf %262, %263 : vector<2x32xf32>
    %265 = arith.mulf %7, %264 : vector<2x32xf32>
    %266 = arith.truncf %265 : vector<2x32xf32> to vector<2x32xbf16>
    %cst_93 = arith.constant dense<0.000000e+00> : vector<2x128xf32>
    %267 = tpu.matmul %266, %43, %cst_93 {dimension_numbers = #tpu.dot_dimension_numbers<[1], [0], [0], [1], [0, 0, 1, 1], [], []>} : vector<2x32xbf16>, vector<32x128xbf16>, vector<2x128xf32> -> vector<2x128xf32>
    %268 = vector.broadcast %44 : vector<1x128xf32> to vector<2x128xf32>
    %269 = arith.addf %267, %268 : vector<2x128xf32>
    %c11 = arith.constant 11 : index
    %c0_94 = arith.constant 0 : index
    %c0_95 = arith.constant 0 : index
    %270 = vector.load %arg14[%c11, %c0_94, %c0_95] : memref<15x2x128xf32, #tpu.memory_space<vmem>>, vector<1x2x128xf32>
    %271 = vector.shape_cast %270 : vector<1x2x128xf32> to vector<2x128xf32>
    %272 = vector.shape_cast %269 : vector<2x128xf32> to vector<1x2x128xf32>
    tpu.vector_store %arg14[%c11, %c0_94, %c0_95], %272 {strides = array<i32>} : memref<15x2x128xf32, #tpu.memory_space<vmem>>, vector<1x2x128xf32>,
    %273 = vector.extract_strided_slice %39 {offsets = [0, 12], sizes = [2, 1], strides = [1, 1]} : vector<2x15xf32> to vector<2x1xf32>
    %274 = vector.broadcast %273 : vector<2x1xf32> to vector<2x64xf32>
    %275 = vector.broadcast %40 : vector<1x64xf32> to vector<2x64xf32>
    %276 = arith.mulf %274, %275 : vector<2x64xf32>
    %277 = math.cos %276 : vector<2x64xf32>
    %278 = arith.truncf %277 : vector<2x64xf32> to vector<2x64xbf16>
    %cst_96 = arith.constant dense<0.000000e+00> : vector<2x32xf32>
    %279 = tpu.matmul %278, %41, %cst_96 {dimension_numbers = #tpu.dot_dimension_numbers<[1], [0], [0], [1], [0, 0, 1, 1], [], []>} : vector<2x64xbf16>, vector<64x32xbf16>, vector<2x32xf32> -> vector<2x32xf32>
    %280 = vector.broadcast %42 : vector<1x32xf32> to vector<2x32xf32>
    %281 = arith.addf %279, %280 : vector<2x32xf32>
    %cst_97 = arith.constant 0.000000e+00 : f32
    %282 = vector.broadcast %cst_97 : f32 to vector<2x32xf32>
    %283 = arith.maximumf %281, %282 : vector<2x32xf32>
    %284 = arith.mulf %7, %283 : vector<2x32xf32>
    %285 = arith.truncf %284 : vector<2x32xf32> to vector<2x32xbf16>
    %cst_98 = arith.constant dense<0.000000e+00> : vector<2x128xf32>
    %286 = tpu.matmul %285, %43, %cst_98 {dimension_numbers = #tpu.dot_dimension_numbers<[1], [0], [0], [1], [0, 0, 1, 1], [], []>} : vector<2x32xbf16>, vector<32x128xbf16>, vector<2x128xf32> -> vector<2x128xf32>
    %287 = vector.broadcast %44 : vector<1x128xf32> to vector<2x128xf32>
    %288 = arith.addf %286, %287 : vector<2x128xf32>
    %c12 = arith.constant 12 : index
    %c0_99 = arith.constant 0 : index
    %c0_100 = arith.constant 0 : index
    %289 = vector.load %arg14[%c12, %c0_99, %c0_100] : memref<15x2x128xf32, #tpu.memory_space<vmem>>, vector<1x2x128xf32>
    %290 = vector.shape_cast %289 : vector<1x2x128xf32> to vector<2x128xf32>
    %291 = vector.shape_cast %288 : vector<2x128xf32> to vector<1x2x128xf32>
    tpu.vector_store %arg14[%c12, %c0_99, %c0_100], %291 {strides = array<i32>} : memref<15x2x128xf32, #tpu.memory_space<vmem>>, vector<1x2x128xf32>,
    %292 = vector.extract_strided_slice %39 {offsets = [0, 13], sizes = [2, 1], strides = [1, 1]} : vector<2x15xf32> to vector<2x1xf32>
    %293 = vector.broadcast %292 : vector<2x1xf32> to vector<2x64xf32>
    %294 = vector.broadcast %40 : vector<1x64xf32> to vector<2x64xf32>
    %295 = arith.mulf %293, %294 : vector<2x64xf32>
    %296 = math.cos %295 : vector<2x64xf32>
    %297 = arith.truncf %296 : vector<2x64xf32> to vector<2x64xbf16>
    %cst_101 = arith.constant dense<0.000000e+00> : vector<2x32xf32>
    %298 = tpu.matmul %297, %41, %cst_101 {dimension_numbers = #tpu.dot_dimension_numbers<[1], [0], [0], [1], [0, 0, 1, 1], [], []>} : vector<2x64xbf16>, vector<64x32xbf16>, vector<2x32xf32> -> vector<2x32xf32>
    %299 = vector.broadcast %42 : vector<1x32xf32> to vector<2x32xf32>
    %300 = arith.addf %298, %299 : vector<2x32xf32>
    %cst_102 = arith.constant 0.000000e+00 : f32
    %301 = vector.broadcast %cst_102 : f32 to vector<2x32xf32>
    %302 = arith.maximumf %300, %301 : vector<2x32xf32>
    %303 = arith.mulf %7, %302 : vector<2x32xf32>
    %304 = arith.truncf %303 : vector<2x32xf32> to vector<2x32xbf16>
    %cst_103 = arith.constant dense<0.000000e+00> : vector<2x128xf32>
    %305 = tpu.matmul %304, %43, %cst_103 {dimension_numbers = #tpu.dot_dimension_numbers<[1], [0], [0], [1], [0, 0, 1, 1], [], []>} : vector<2x32xbf16>, vector<32x128xbf16>, vector<2x128xf32> -> vector<2x128xf32>
    %306 = vector.broadcast %44 : vector<1x128xf32> to vector<2x128xf32>
    %307 = arith.addf %305, %306 : vector<2x128xf32>
    %c13 = arith.constant 13 : index
    %c0_104 = arith.constant 0 : index
    %c0_105 = arith.constant 0 : index
    %308 = vector.load %arg14[%c13, %c0_104, %c0_105] : memref<15x2x128xf32, #tpu.memory_space<vmem>>, vector<1x2x128xf32>
    %309 = vector.shape_cast %308 : vector<1x2x128xf32> to vector<2x128xf32>
    %310 = vector.shape_cast %307 : vector<2x128xf32> to vector<1x2x128xf32>
    tpu.vector_store %arg14[%c13, %c0_104, %c0_105], %310 {strides = array<i32>} : memref<15x2x128xf32, #tpu.memory_space<vmem>>, vector<1x2x128xf32>,
    %311 = vector.extract_strided_slice %39 {offsets = [0, 14], sizes = [2, 1], strides = [1, 1]} : vector<2x15xf32> to vector<2x1xf32>
    %312 = vector.broadcast %311 : vector<2x1xf32> to vector<2x64xf32>
    %313 = vector.broadcast %40 : vector<1x64xf32> to vector<2x64xf32>
    %314 = arith.mulf %312, %313 : vector<2x64xf32>
    %315 = math.cos %314 : vector<2x64xf32>
    %316 = arith.truncf %315 : vector<2x64xf32> to vector<2x64xbf16>
    %cst_106 = arith.constant dense<0.000000e+00> : vector<2x32xf32>
    %317 = tpu.matmul %316, %41, %cst_106 {dimension_numbers = #tpu.dot_dimension_numbers<[1], [0], [0], [1], [0, 0, 1, 1], [], []>} : vector<2x64xbf16>, vector<64x32xbf16>, vector<2x32xf32> -> vector<2x32xf32>
    %318 = vector.broadcast %42 : vector<1x32xf32> to vector<2x32xf32>
    %319 = arith.addf %317, %318 : vector<2x32xf32>
    %cst_107 = arith.constant 0.000000e+00 : f32
    %320 = vector.broadcast %cst_107 : f32 to vector<2x32xf32>
    %321 = arith.maximumf %319, %320 : vector<2x32xf32>
    %322 = arith.mulf %7, %321 : vector<2x32xf32>
    %323 = arith.truncf %322 : vector<2x32xf32> to vector<2x32xbf16>
    %cst_108 = arith.constant dense<0.000000e+00> : vector<2x128xf32>
    %324 = tpu.matmul %323, %43, %cst_108 {dimension_numbers = #tpu.dot_dimension_numbers<[1], [0], [0], [1], [0, 0, 1, 1], [], []>} : vector<2x32xbf16>, vector<32x128xbf16>, vector<2x128xf32> -> vector<2x128xf32>
    %325 = vector.broadcast %44 : vector<1x128xf32> to vector<2x128xf32>
    %326 = arith.addf %324, %325 : vector<2x128xf32>
    %c14 = arith.constant 14 : index
    %c0_109 = arith.constant 0 : index
    %c0_110 = arith.constant 0 : index
    %327 = vector.load %arg14[%c14, %c0_109, %c0_110] : memref<15x2x128xf32, #tpu.memory_space<vmem>>, vector<1x2x128xf32>
    %328 = vector.shape_cast %327 : vector<1x2x128xf32> to vector<2x128xf32>
    %329 = vector.shape_cast %326 : vector<2x128xf32> to vector<1x2x128xf32>
    tpu.vector_store %arg14[%c14, %c0_109, %c0_110], %329 {strides = array<i32>} : memref<15x2x128xf32, #tpu.memory_space<vmem>>, vector<1x2x128xf32>,
    return
  }
  func.func @transform_0(%arg0: i32) -> (i32, i32) {
    %c0_i32 = arith.constant 0 : i32
    %c0_i32_0 = arith.constant 0 : i32
    return %arg0, %c0_i32 : i32, i32
  }
  func.func @transform_1(%arg0: i32) -> (i32, i32) {
    %c0_i32 = arith.constant 0 : i32
    %c0_i32_0 = arith.constant 0 : i32
    %c0_i32_1 = arith.constant 0 : i32
    return %c0_i32, %c0_i32_0 : i32, i32
  }
  func.func @transform_2(%arg0: i32) -> (i32, i32) {
    %c0_i32 = arith.constant 0 : i32
    %c0_i32_0 = arith.constant 0 : i32
    %c0_i32_1 = arith.constant 0 : i32
    return %c0_i32, %c0_i32_0 : i32, i32
  }
  func.func @transform_3(%arg0: i32) -> (i32, i32) {
    %c0_i32 = arith.constant 0 : i32
    %c0_i32_0 = arith.constant 0 : i32
    %c0_i32_1 = arith.constant 0 : i32
    return %c0_i32, %c0_i32_0 : i32, i32
  }
  func.func @transform_4(%arg0: i32) -> (i32, i32) {
    %c0_i32 = arith.constant 0 : i32
    %c0_i32_0 = arith.constant 0 : i32
    %c0_i32_1 = arith.constant 0 : i32
    return %c0_i32, %c0_i32_0 : i32, i32
  }
  func.func @transform_5(%arg0: i32) -> (i32, i32) {
    %c0_i32 = arith.constant 0 : i32
    %c0_i32_0 = arith.constant 0 : i32
    %c0_i32_1 = arith.constant 0 : i32
    return %c0_i32, %c0_i32_0 : i32, i32
  }
  func.func @transform_6(%arg0: i32) -> (i32, i32) {
    %c0_i32 = arith.constant 0 : i32
    %c0_i32_0 = arith.constant 0 : i32
    %c0_i32_1 = arith.constant 0 : i32
    return %c0_i32, %c0_i32_0 : i32, i32
  }
  func.func @transform_7(%arg0: i32) -> (i32, i32) {
    %c0_i32 = arith.constant 0 : i32
    %c0_i32_0 = arith.constant 0 : i32
    %c0_i32_1 = arith.constant 0 : i32
    return %c0_i32, %c0_i32_0 : i32, i32
  }
  func.func @transform_8(%arg0: i32) -> (i32, i32) {
    %c0_i32 = arith.constant 0 : i32
    %c0_i32_0 = arith.constant 0 : i32
    %c0_i32_1 = arith.constant 0 : i32
    return %c0_i32, %c0_i32_0 : i32, i32
  }
  func.func @transform_9(%arg0: i32) -> (i32, i32) {
    %c0_i32 = arith.constant 0 : i32
    %c0_i32_0 = arith.constant 0 : i32
    %c0_i32_1 = arith.constant 0 : i32
    return %c0_i32, %c0_i32_0 : i32, i32
  }
  func.func @transform_10(%arg0: i32) -> (i32, i32) {
    %c0_i32 = arith.constant 0 : i32
    %c0_i32_0 = arith.constant 0 : i32
    %c0_i32_1 = arith.constant 0 : i32
    return %c0_i32, %c0_i32_0 : i32, i32
  }
  func.func @transform_11(%arg0: i32) -> (i32, i32) {
    %c0_i32 = arith.constant 0 : i32
    %c0_i32_0 = arith.constant 0 : i32
    %c0_i32_1 = arith.constant 0 : i32
    return %c0_i32, %c0_i32_0 : i32, i32
  }
  func.func @transform_12(%arg0: i32) -> (i32, i32) {
    %c0_i32 = arith.constant 0 : i32
    %c0_i32_0 = arith.constant 0 : i32
    %c0_i32_1 = arith.constant 0 : i32
    return %c0_i32, %c0_i32_0 : i32, i32
  }
  func.func @transform_13(%arg0: i32) -> (i32, i32, i32) {
    %c0_i32 = arith.constant 0 : i32
    %c0_i32_0 = arith.constant 0 : i32
    %c0_i32_1 = arith.constant 0 : i32
    return %c0_i32, %arg0, %c0_i32_0 : i32, i32, i32
  }
  func.func @transform_14(%arg0: i32) -> (i32, i32) {
    %c0_i32 = arith.constant 0 : i32
    %c0_i32_0 = arith.constant 0 : i32
    return %arg0, %c0_i32 : i32, i32
  }
}

</mosaic_0001>

<bundles_post_ra>
// kernel: tpu_custom_call.1
= control target key start
LH: loop header
LB: loop body
LE: loop exit
PB: predicated region body
PF: predicated region fallthrough
CT: control target
= control target key end

     0   :  { %20 = vsyncpa [#allocation3], 0  ;;  %s6727_s0 = inlined_call_operand.vmem [shape: bf16[2,32], index: 0, kind: input, shape index: {}]   ;;  %s6728_s1 = inlined_call_operand.vmem [shape: bf16[32,32], index: 1, kind: input, shape index: {}]   ;;  %s6729_s2 = inlined_call_operand.vmem [shape: f32[1,32], index: 2, kind: input, shape index: {}]   ;;  %s6730_s3 = inlined_call_operand.vmem [shape: f32[32,8], index: 3, kind: input, shape index: {}]   ;;  %s6731_s4 = inlined_call_operand.vmem [shape: f32[1,8], index: 4, kind: input, shape index: {}]   ;;  %s6732_s5 = inlined_call_operand.vmem [shape: f32[8,18], index: 5, kind: input, shape index: {}]   ;;  %s6733_s6 = inlined_call_operand.vmem [shape: f32[8,15], index: 6, kind: input, shape index: {}]   ;;  %s6734_s7 = inlined_call_operand.vmem [shape: f32[1,18], index: 7, kind: input, shape index: {}]   ;;  %s6735_s8 = inlined_call_operand.vmem [shape: f32[1,64], index: 8, kind: input, shape index: {}]   ;;  %s6736_s9 = inlined_call_operand.vmem [shape: bf16[64,32], index: 9, kind: input, shape index: {}]   ;;  %s6737_s10 = inlined_call_operand.vmem [shape: f32[1,32], index: 10, kind: input, shape index: {}]   ;;  %s6738_s11 = inlined_call_operand.vmem [shape: bf16[32,128], index: 11, kind: input, shape index: {}]   ;;  %s6739_s12 = inlined_call_operand.vmem [shape: f32[1,128], index: 12, kind: input, shape index: {}]   ;;  %s6740_s13 = inlined_call_operand.hbm [shape: f32[15,2,128], index: 13, kind: output, shape index: {0}]   ;;  %s6741_s14 = inlined_call_operand.hbm [shape: f32[2,18], index: 14, kind: output, shape index: {1}]  }
   0x1   :  { %v3367_v0 = vld [vmem:[%s6728_s1 + $0x8] sm:$0xff]  ;;  %v3366_v1 = vld [vmem:[%s6728_s1] sm:$0xff]  ;;  %v91_v2 = vld [vmem:[%s6730_s3 + $0x18] sm:$0xff] }
   0x2   :  { %80 = vmatpush.bf16.msra.mxu0 %v3367_v0  ;;  %111 = vmatpush.msra.mxu1 %v91_v2 }
   0x3   :  { %21 = vsyncpa [#allocation5], 0  ;;  %v49_v3 = vld [vmem:[%s6727_s0] sm:$0x1]  ;;  %vm6778_vm0 = vcmask 261120   ;;  %v90_v4 = vld [vmem:[%s6730_s3 + $0x10] sm:$0xff] }
   0x4   :  { %112 = vmatpush.msra.mxu1 %v90_v4  ;;  %v89_v5 = vld [vmem:[%s6730_s3 + $0x8] sm:$0xff]  ;;  %v88_v6 = vld [vmem:[%s6730_s3] sm:$0xff]  ;;  %vm119_vm1 = vcmask 58368   ;;  %v3492_v23 = vmov 4   ;;  %v3493_v24 = vmov 2   ;;  %v6759_v25 = vmov 0  }
   0x5   :  { %v3415_v7 = vld [vmem:[%s6729_s2] ss:$0 sm:$0xff]  ;;  %3403 = vset.pattern.permute.xlu0 %v3492_v23  ;;  %3401 = vset.pattern.permute.xlu2 %v3493_v24  ;;  %vm158_vm6 = vcmask 64512   ;;  %v3495_v39 = vmov 3   ;;  %v3496_v40 = vmov 1   ;;  %v3497_v41 = vmov 14  }
   0x6   :  { %81 = vmatpush.bf16.msra.mxu0 %v3366_v1  ;;  %113 = vmatpush.msra.mxu1 %v89_v5  ;;  %v3416_v12 = vld [vmem:[%s6731_s4] ss:$0 sm:$0xff]  ;;  %v3498_v42 = vmov 6   ;;  %v3499_v43 = vmov 5   ;;  %v3500_v44 = vmov 8   ;;  %v3501_v45 = vmov 7  }
   0x7   :  { %v152_v21 = vld [vmem:[%s6732_s5] sm:$0xff]  ;;  %3399 = vset.pattern.permute.xlu1 %v6759_v25  ;;  %v3502_v48 = vmov 10   ;;  %v3503_v50 = vmov 9   ;;  %v3504_v53 = vmov 12   ;;  %v3505_v54 = vmov 11   ;;  %s3241_s2 = sshll.u32 %s6741_s14, 4  ;;  %s3242_s2 = int_to_ptr.hbm [resolvable:$true] %s3241_s2 }
   0x8   :  { %114 = vmatpush.msra.mxu1 %v88_v6  ;;  %v184_v22 = vld [vmem:[%s6733_s6] sm:$0xff]  ;;  %177 = vmatpush.msra.mxu2 %v152_v21  ;;  %v3506_v55 = vmov 13   ;;  %v6750_v6 = vmov 920167782   ;;  %v6756_v24 = vmov 683565275  }
   0x9   :  { %3263 = vmatmul.msk.bf16.vlgmr.msra.gmra.mxu0 %vm6778_vm0, %v49_v3  ;;  %200 = vmatpush.msra.mxu3 %v184_v22  ;;  %v3641_v56 = vld [vmem:[%s6735_s8] ss:$0 sm:$0xff]  ;;  %s3514_s14 = smov [#allocation2]   ;;  %s3227_s5 = sshll.u32 %s6740_s13, 4  ;;  %s3228_s5 = int_to_ptr.hbm [resolvable:$true] %s3227_s5 }
   0xa   :  { %s3225_s3 = sshll.u32 %s3514_s14, 4  ;;  %s3515_s6 = smov 32   ;;  %s3226_s3 = int_to_ptr.vmem [resolvable:$true] %s3225_s3 }
   0xb   :  { %s3516_s30 = smov 2  }
  0x86   :  { %v83_v8 = vpop.f32.mrf.mxu0 }
  0x87   :  { %v84_v9 = vadd.f32 %v3415_v7, %v83_v8  ;;  %v6745_v8 = vmov 1326507024  }
  0x89   :  { %v3617_v10 = vmax.f32 %v84_v9, 0.0 }
  0x8b   :  { %6884 = vst [vmem:[#allocation8_spill] sm:$0xff] %v3617_v10  ;;  %3264 = vmatmul.msk.f32.vlgmr.msra.gmra.mxu1 %vm6778_vm0, %v3617_v10 }
  0x8e   :  { %v85_v11 = vpop.f32.mrf.mxu0 }
 0x108   :  { %v116_v13 = vpop.f32.mrf.mxu1 }
 0x109   :  { %v117_v14 = vadd.f32 %v3416_v12, %v116_v13  ;;  %v6748_v13 = vmov 2102212464  }
 0x10b   :  { %v120_v15 = vsel %vm119_vm1, %v117_v14, -inf }
 0x10c   :  { %121 = vmax.xlane.f32.xlu0 %v120_v15 }
 0x17f   :  { %v122_v16 = vpop.xlane.xlu0 %121 }
 0x180   :  { %v3625_v17 = vsub.f32 %v117_v14, %v122_v16 }
 0x182   :  { %v124_v18 = vmul.f32 1.442695, %v3625_v17 }
 0x184   :  { %3421 = vpow2.f32 %v124_v18 }
 0x18a   :  { %v3422_v19 = vpop.eup %3421 }
 0x18b   :  { %v126_v20 = vsel %vm119_vm1, %v3422_v19, 0.0 }
 0x18c   :  { %127 = vadd.xlane.f32.xlu0 %v126_v20 }
 0x1ff   :  { %v128_v26 = vpop.xlane.xlu0 %127 }
 0x200   :  { %3423 = vrcp.f32 %v128_v26  ;;  %v140_v30 = vand.u32 2147483648, %v128_v26  ;;  %v138_v32 = vand.u32 2147483647, %v128_v26  ;;  %vm134_vm3 = vweird.f32 %v128_v26 }
 0x201   :  { %3425 = vlog2.f32 %v128_v26 }
 0x202   :  { %v141_v34 = vor.u32 1.1754944e-38, %v140_v30  ;;  %vm139_vm5 = vcmp.eq.f32.partialorder %v138_v32, 8.507059e+37 }
 0x206   :  { %v3424_v27 = vpop.eup %3423 }
 0x207   :  { %v130_v28 = vmul.f32 %v3424_v27, %v128_v26  ;;  %vm135_vm2 = vweird.f32 %v3424_v27  ;;  %v3426_v46 = vpop.eup %3425 }
 0x208   :  { %vm136_vm4 = vmor %vm134_vm3, %vm135_vm2  ;;  %v145_v47 = vmul.f32 0.6931472, %v3426_v46 }
 0x209   :  { %v131_v29 = vsub.f32 1.0, %v130_v28 }
 0x20a   :  { %v146_v49 = vsub.f32 %v3625_v17, %v145_v47  ;;  %v6754_v17 = vmov 2475754826  }
 0x20b   :  { %v132_v31 = vmul.f32 %v3424_v27, %v131_v29 }
 0x20d   :  { %v133_v33 = vadd.f32 %v3424_v27, %v132_v31 }
 0x20f   :  { %v137_v35 = vsel %vm136_vm4, %v3424_v27, %v133_v33 }
 0x210   :  { %v142_v36 = vsel %vm139_vm5, %v141_v34, %v137_v35 }
 0x211   :  { %v143_v37 = vmul.f32 %v3422_v19, %v142_v36  ;;  %v6752_v19 = vmov 2131351028  }
 0x213   :  { %3265 = vmatmul.msk.f32.vlgmr.msra.gmra.mxu2 %vm158_vm6, %v143_v37  ;;  %3266 = vmatmul.msk.f32.vlgmr.msra.gmra.mxu3 %vm158_vm6, %v143_v37  ;;  %v147_v51 = vmul.f32 %v146_v49, %v143_v37 }
 0x215   :  { %v148_v52 = vsel %vm119_vm1, %v147_v51, 0.0 }
 0x296   :  { %v202_v38 = vpop.f32.mrf.mxu3 }
 0x297   :  { %1055 = vperm.xlu0 %3403, %v202_v38   ;;  %661 = vperm.xlu2 %3401, %v202_v38  }
 0x298   :  { %222 = vperm.xlu1 %3399, %v202_v38  }
 0x29f   :  { %3402 = vset.pattern.permute.xlu2 %v3495_v39  ;;  %3414 = vset.pattern.permute.xlu0 %v3497_v41 }
 0x2a0   :  { %3400 = vset.pattern.permute.xlu1 %v3496_v40  ;;  %858 = vperm.xlu2 %3402, %v202_v38  }
 0x2a1   :  { %464 = vperm.xlu1 %3400, %v202_v38  }
 0x2a8   :  { %3405 = vset.pattern.permute.xlu2 %v3498_v42 }
 0x2a9   :  { %3404 = vset.pattern.permute.xlu1 %v3499_v43  ;;  %1449 = vperm.xlu2 %3405, %v202_v38  }
 0x2aa   :  { %1252 = vperm.xlu1 %3404, %v202_v38  }
 0x2b1   :  { %3407 = vset.pattern.permute.xlu2 %v3500_v44 }
 0x2b2   :  { %3406 = vset.pattern.permute.xlu1 %v3501_v45  ;;  %1843 = vperm.xlu2 %3407, %v202_v38  }
 0x2b3   :  { %1646 = vperm.xlu1 %3406, %v202_v38  }
 0x2ba   :  { %3409 = vset.pattern.permute.xlu2 %v3502_v48 }
 0x2bb   :  { %3408 = vset.pattern.permute.xlu1 %v3503_v50  ;;  %2237 = vperm.xlu2 %3409, %v202_v38  }
 0x2bc   :  { %2040 = vperm.xlu1 %3408, %v202_v38  }
 0x2c1   :  { %149 = vadd.xlane.f32.xlu0 %v148_v52 }
 0x2c3   :  { %3411 = vset.pattern.permute.xlu2 %v3504_v53 }
 0x2c4   :  { %3410 = vset.pattern.permute.xlu1 %v3505_v54  ;;  %2631 = vperm.xlu2 %3411, %v202_v38  }
 0x2c5   :  { %2434 = vperm.xlu1 %3410, %v202_v38  }
 0x2cc   :  { %3413 = vset.pattern.permute.xlu2 %v3497_v41 }
 0x2cd   :  { %3412 = vset.pattern.permute.xlu1 %v3506_v55  ;;  %3025 = vperm.xlu2 %3413, %v202_v38  }
 0x2ce   :  { %2828 = vperm.xlu1 %3412, %v202_v38  }
 0x2f1   :  { %v662_v57 = vpop.permute.xlu2 %661 }
 0x2f2   :  { %v3644_v58 = vmul.f32 %v3641_v56, %v662_v57 }
 0x2f4   :  { %6885 = vst [vmem:[#allocation9_spill] sm:$0xff] %v3644_v58  ;;  %v668_v59 = vand.u32 2139095040, %v3644_v58  ;;  %v6744_v12 = vand.u32 2147483647, %v3644_v58 }
 0x2f6   :  { %v669_v60 = vshrl.u32 %v668_v59, 23  ;;  %v672_v30 = vand.u32 8388607, %v6744_v12 }
 0x2f8   :  { %v3301_v61 = vadd.s32 4294967169, %v669_v60  ;;  %v673_v36 = vor.u32 8388608, %v672_v30 }
 0x2fa   :  { %v675_v62 = vadd.s32 1, %v3301_v61  ;;  %v859_v63 = vpop.permute.xlu2 %858  ;;  %v3704_v44 = vshll.u32 %v673_v36, 8 }
 0x2fb   :  { %v3648_v1 = vmul.f32 %v3641_v56, %v859_v63 }
 0x2fc   :  { %vm676_vm7 = vcmp.gt.s32.totalorder %v675_v62, 0  ;;  %v714_v48 = vand.u32 65535, %v3704_v44  ;;  %v715_v57 = vshrl.u32 %v3704_v44, 16 }
 0x2fd   :  { %v677_v0 = vsel %vm676_vm7, %v675_v62, 0  ;;  %6886 = vst [vmem:[#allocation10_spill] sm:$0xff] %v3648_v1  ;;  %v865_v3 = vand.u32 2139095040, %v3648_v1  ;;  %v6758_v51 = vand.u32 2147483647, %v3648_v1 }
 0x2fe   :  { %v679_v2 = vand.u32 31, %v677_v0  ;;  %v3660_v16 = vshrl.u32 %v677_v0, 5 }
 0x2ff   :  { %v866_v5 = vshrl.u32 %v865_v3, 23  ;;  %v869_v60 = vand.u32 8388607, %v6758_v51 }
 0x300   :  { %v3651_v4 = vsub.s32 32, %v679_v2  ;;  %v691_v14 = vshll.u32 %v6748_v13, %v679_v2  ;;  %v694_v15 = vshll.u32 %v6750_v6, %v679_v2  ;;  %v682_v26 = vshll.u32 %v6756_v24, %v679_v2 }
 0x301   :  { %v3306_v11 = vadd.s32 4294967169, %v866_v5  ;;  %v685_v27 = vshll.u32 %v6754_v17, %v679_v2  ;;  %v688_v28 = vshll.u32 %v6752_v19, %v679_v2  ;;  %vm700_vm8 = vcmp.lt.s32.totalorder %v3660_v16, 4 }
 0x302   :  { %v692_v7 = vshrl.u32 %v6750_v6, %v3651_v4  ;;  %v695_v9 = vshrl.u32 %v6745_v8, %v3651_v4  ;;  %v683_v18 = vshrl.u32 %v6754_v17, %v3651_v4  ;;  %v686_v20 = vshrl.u32 %v6752_v19, %v3651_v4 }
 0x303   :  { %v689_v21 = vshrl.u32 %v6748_v13, %v3651_v4  ;;  %v872_v29 = vadd.s32 1, %v3306_v11  ;;  %vm697_vm10 = vcmp.lt.s32.totalorder %v3660_v16, 1  ;;  %vm699_vm11 = vcmp.lt.s32.totalorder %v3660_v16, 3 }
 0x304   :  { %v693_v22 = vor.u32 %v692_v7, %v691_v14  ;;  %v696_v23 = vor.u32 %v695_v9, %v694_v15  ;;  %v3673_v31 = vor.u32 %v683_v18, %v682_v26  ;;  %v3675_v32 = vor.u32 %v686_v20, %v685_v27 }
 0x305   :  { %v3677_v33 = vor.u32 %v689_v21, %v688_v28  ;;  %vm873_vm9 = vcmp.gt.s32.totalorder %v872_v29, 0  ;;  %vm698_vm12 = vcmp.lt.s32.totalorder %v3660_v16, 2 }
 0x306   :  { %v706_v34 = vsel %vm700_vm8, %v693_v22, 920167782  ;;  %v710_v35 = vsel %vm700_vm8, %v696_v23, 1326507024  ;;  %v705_v37 = vsel %vm697_vm10, %v3673_v31, %v3675_v32  ;;  %v874_v41 = vsel %vm873_vm9, %v872_v29, 0 }
 0x307   :  { %v707_v38 = vsel %vm699_vm11, %v3677_v33, %v706_v34  ;;  %v709_v39 = vsel %vm697_vm10, %v3675_v32, %v3677_v33  ;;  %v711_v40 = vsel %vm699_vm11, %v693_v22, %v710_v35  ;;  %v876_v45 = vand.u32 31, %v874_v41 }
 0x308   :  { %v708_v42 = vsel %vm698_vm12, %v705_v37, %v707_v38  ;;  %v712_v43 = vsel %vm698_vm12, %v709_v39, %v711_v40  ;;  %v3723_v0 = vshrl.u32 %v874_v41, 5  ;;  %v870_v35 = vor.u32 8388608, %v869_v60 }
 0x309   :  { %v717_v46 = vshrl.u32 %v712_v43, 16  ;;  %v739_v47 = vshrl.u32 %v708_v42, 16  ;;  %v3707_v49 = vsub.s32 32, %v876_v45  ;;  %v716_v50 = vand.u32 65535, %v712_v43 }
 0x30a   :  { %v738_v54 = vand.u32 65535, %v708_v42  ;;  %v888_v2 = vshll.u32 %v6748_v13, %v876_v45  ;;  %v891_v9 = vshll.u32 %v6750_v6, %v876_v45  ;;  %v879_v20 = vshll.u32 %v6756_v24, %v876_v45 }
 0x30b   :  { %v3710_v52 = vmul.u32 %v717_v46, %v714_v48  ;;  %v3712_v53 = vmul.u32 %v739_v47, %v714_v48  ;;  %v889_v55 = vshrl.u32 %v6750_v6, %v3707_v49  ;;  %v718_v59 = vmul.u32 %v716_v50, %v714_v48 }
 0x30c   :  { %v892_v61 = vshrl.u32 %v6745_v8, %v3707_v49  ;;  %v880_v3 = vshrl.u32 %v6754_v17, %v3707_v49  ;;  %v883_v5 = vshrl.u32 %v6752_v19, %v3707_v49  ;;  %v886_v7 = vshrl.u32 %v6748_v13, %v3707_v49 }
 0x30d   :  { %v722_v62 = vshll.u32 %v3710_v52, 16  ;;  %v744_v63 = vshll.u32 %v3712_v53, 16  ;;  %v720_v11 = vmul.u32 %v716_v50, %v715_v57  ;;  %v740_v14 = vmul.u32 %v738_v54, %v714_v48 }
 0x30e   :  { %v3733_v15 = vmul.u32 %v738_v54, %v715_v57  ;;  %v890_v18 = vor.u32 %v889_v55, %v888_v2  ;;  %v882_v21 = vshll.u32 %v6754_v17, %v876_v45  ;;  %v885_v22 = vshll.u32 %v6752_v19, %v876_v45 }
 0x30f   :  { %v893_v23 = vor.u32 %v892_v61, %v891_v9  ;;  %vm726_vm13 = vc.u32 %v718_v59, %v722_v62  ;;  %v728_v26 = vadd.s32 %v722_v62, %v718_v59  ;;  %vm748_vm14 = vc.u32 %v740_v14, %v744_v63 }
 0x310   :  { %v750_v27 = vadd.s32 %v744_v63, %v740_v14  ;;  %v3738_v28 = vor.u32 %v880_v3, %v879_v20  ;;  %v3740_v29 = vor.u32 %v883_v5, %v882_v21  ;;  %v3742_v30 = vor.u32 %v886_v7, %v885_v22 }
 0x311   :  { %vm897_vm15 = vcmp.lt.s32.totalorder %v3723_v0, 4  ;;  %v746_v34 = vshll.u32 %v3733_v15, 16  ;;  %v724_v37 = vshll.u32 %v720_v11, 16  ;;  %v743_v38 = vmul.u32 %v739_v47, %v715_v57 }
 0x312   :  { %v903_v36 = vsel %vm897_vm15, %v890_v18, 920167782  ;;  %v749_v39 = vsel %vm748_vm14, 1, %v6759_v25  ;;  %v907_v40 = vsel %vm897_vm15, %v893_v23, 1326507024  ;;  %v727_v41 = vsel %vm726_vm13, 1, %v6759_v25 }
 0x313   :  { %vm752_vm1 = vc.u32 %v750_v27, %v746_v34  ;;  %vm894_vm2 = vcmp.lt.s32.totalorder %v3723_v0, 1  ;;  %vm896_vm3 = vcmp.lt.s32.totalorder %v3723_v0, 3  ;;  %v721_v42 = vmul.u32 %v717_v46, %v715_v57 }
 0x314   :  { %vm730_vm4 = vc.u32 %v728_v26, %v724_v37  ;;  %v902_v43 = vsel %vm894_vm2, %v3738_v28, %v3740_v29  ;;  %v904_v45 = vsel %vm896_vm3, %v3742_v30, %v903_v36  ;;  %v751_v47 = vadd.s32 %v749_v39, %v743_v38 }
 0x315   :  { %v906_v48 = vsel %vm894_vm2, %v3740_v29, %v3742_v30  ;;  %v908_v50 = vsel %vm896_vm3, %v890_v18, %v907_v40  ;;  %v729_v46 = vadd.s32 %v727_v41, %v721_v42  ;;  %v753_v54 = vsel %vm752_vm1, 1, %v6759_v25 }
 0x316   :  { %vm895_vm5 = vcmp.lt.s32.totalorder %v3723_v0, 2  ;;  %v731_v55 = vsel %vm730_vm4, 1, %v6759_v25  ;;  %v3774_v60 = vshll.u32 %v870_v35, 8  ;;  %v755_v61 = vadd.s32 %v753_v54, %v751_v47 }
 0x317   :  { %v905_v57 = vsel %vm895_vm5, %v902_v43, %v904_v45  ;;  %v909_v59 = vsel %vm895_vm5, %v906_v48, %v908_v50  ;;  %v733_v62 = vadd.s32 %v731_v55, %v729_v46  ;;  %v745_v2 = vshrl.u32 %v3712_v53, 16 }
 0x318   :  { %v936_v63 = vshrl.u32 %v905_v57, 16  ;;  %v914_v3 = vshrl.u32 %v909_v59, 16  ;;  %v723_v5 = vshrl.u32 %v3710_v52, 16  ;;  %v911_v7 = vand.u32 65535, %v3774_v60 }
 0x319   :  { %v756_v9 = vadd.s32 %v755_v61, %v745_v2  ;;  %v747_v20 = vshrl.u32 %v3733_v15, 16  ;;  %v725_v22 = vshrl.u32 %v720_v11, 16  ;;  %v935_v23 = vand.u32 65535, %v905_v57  ;;  %v1450_v61 = vpop.permute.xlu2 %1449 }
 0x31a   :  { %v734_v14 = vadd.s32 %v733_v62, %v723_v5  ;;  %v938_v18 = vmul.u32 %v936_v63, %v911_v7  ;;  %v916_v21 = vmul.u32 %v914_v3, %v911_v7  ;;  %v681_v26 = vshrl.u32 %v6756_v24, %v3651_v4 }
 0x31b   :  { %v702_v53 = vsel %vm700_vm8, %v3677_v33, 2102212464  ;;  %v757_v35 = vadd.s32 %v756_v9, %v747_v20  ;;  %v913_v36 = vand.u32 65535, %v909_v59  ;;  %v912_v37 = vshrl.u32 %v3774_v60, 16 }
 0x31c   :  { %v3785_v52 = vadd.s32 %v734_v14, %v725_v22  ;;  %v941_v38 = vshll.u32 %v938_v18, 16  ;;  %v701_v15 = vsel %vm697_vm10, %v681_v26, %v3673_v31  ;;  %v919_v11 = vshll.u32 %v916_v21, 16 }
 0x31d   :  { %v703_v4 = vsel %vm699_vm11, %v3675_v32, %v702_v53  ;;  %v3794_v39 = vadd.s32 %v750_v27, %v746_v34  ;;  %v937_v40 = vmul.u32 %v935_v23, %v911_v7  ;;  %v939_v33 = vmul.u32 %v935_v23, %v912_v37 }
 0x31e   :  { %v761_v41 = vadd.s32 1, %v757_v35  ;;  %v915_v42 = vmul.u32 %v913_v36, %v911_v7  ;;  %v917_v43 = vmul.u32 %v913_v36, %v912_v37  ;;  %v704_v31 = vsel %vm698_vm12, %v701_v15, %v703_v4 }
 0x31f   :  { %vm760_vm6 = vc.u32 %v3785_v52, %v3794_v39  ;;  %vm945_vm7 = vc.u32 %v937_v40, %v941_v38  ;;  %v947_v45 = vadd.s32 %v941_v38, %v937_v40  ;;  %v943_v48 = vshll.u32 %v939_v33, 16 }
 0x320   :  { %vm923_vm8 = vc.u32 %v915_v42, %v919_v11  ;;  %v925_v47 = vadd.s32 %v919_v11, %v915_v42  ;;  %v762_v50 = vsel %vm760_vm6, %v761_v41, %v757_v35  ;;  %v921_v32 = vshll.u32 %v917_v43, 16  ;;  %v223_v41 = vpop.permute.xlu1 %222 }
 0x321   :  { %v946_v27 = vsel %vm945_vm7, 1, %v6759_v25  ;;  %v758_v34 = vmul.u32 %v3704_v44, %v704_v31  ;;  %v924_v46 = vsel %vm923_vm8, 1, %v6759_v25  ;;  %v940_v54 = vmul.u32 %v936_v63, %v912_v37 }
 0x322   :  { %vm949_vm9 = vc.u32 %v947_v45, %v943_v48  ;;  %v918_v55 = vmul.u32 %v914_v3, %v912_v37  ;;  %vm927_vm10 = vc.u32 %v925_v47, %v921_v32  ;;  %v3806_v5 = vmul.f32 %v3641_v56, %v1450_v61 }
 0x323   :  { %v763_v57 = vadd.s32 %v762_v50, %v758_v34  ;;  %v948_v59 = vadd.s32 %v946_v27, %v940_v54  ;;  %v950_v62 = vsel %vm949_vm9, 1, %v6759_v25  ;;  %v928_v2 = vsel %vm927_vm10, 1, %v6759_v25 }
 0x324   :  { %v926_v16 = vadd.s32 %v924_v46, %v918_v55  ;;  %6887 = vst [vmem:[#allocation11_spill] sm:$0xff] %v3806_v5  ;;  %v942_v14 = vshrl.u32 %v938_v18, 16  ;;  %v920_v20 = vshrl.u32 %v916_v21, 16  ;;  %v1456_v63 = vand.u32 2139095040, %v3806_v5 }
 0x325   :  { %v764_v7 = vadd.s32 536870912, %v763_v57  ;;  %v952_v9 = vadd.s32 %v950_v62, %v948_v59  ;;  %v944_v26 = vshrl.u32 %v939_v33, 16  ;;  %v922_v53 = vshrl.u32 %v917_v43, 16 }
 0x326   :  { %v930_v44 = vadd.s32 %v928_v2, %v926_v16  ;;  %v1457_v35 = vshrl.u32 %v1456_v63, 23  ;;  %v899_v37 = vsel %vm897_vm15, %v3742_v30, 2102212464  ;;  %v878_v18 = vshrl.u32 %v6756_v24, %v3707_v49 }
 0x327   :  { %v3809_v3 = vshrl.u32 %v764_v7, 30  ;;  %v953_v22 = vadd.s32 %v952_v9, %v942_v14  ;;  %v900_v11 = vsel %vm896_vm3, %v3740_v29, %v899_v37  ;;  %v3825_v4 = vadd.s32 %v947_v45, %v943_v48  ;;  %v1056_v45 = vpop.permute.xlu0 %1055 }
 0x328   :  { %v931_v23 = vadd.s32 %v930_v44, %v920_v20  ;;  %v898_v15 = vsel %vm894_vm2, %v878_v18, %v3738_v28  ;;  %v3321_v40 = vadd.s32 4294967169, %v1457_v35  ;;  %v3834_v28 = vmul.f32 %v3641_v56, %v223_v41 }
 0x329   :  { %6888 = vst [vmem:[#allocation12_spill] sm:$0xff] %v3809_v3  ;;  %v766_v36 = vshll.u32 %v3809_v3, 30  ;;  %v954_v38 = vadd.s32 %v953_v22, %v944_v26  ;;  %v901_v49 = vsel %vm895_vm5, %v898_v15, %v900_v11  ;;  %v3840_v48 = vmul.f32 %v3641_v56, %v1056_v45 }
 0x32a   :  { %v3817_v21 = vadd.s32 %v931_v23, %v922_v53  ;;  %v1463_v42 = vadd.s32 1, %v3321_v40  ;;  %6890 = vst [vmem:[#allocation14_spill] sm:$0xff] %v3834_v28  ;;  %v955_v31 = vmul.u32 %v3774_v60, %v901_v49  ;;  %v232_v0 = vand.u32 2139095040, %v3834_v28 }
 0x32b   :  { %v3827_v33 = vsub.s32 %v763_v57, %v766_v36  ;;  %v958_v30 = vadd.s32 1, %v954_v38  ;;  %6891 = vst [vmem:[#allocation15_spill] sm:$0xff] %v3840_v48  ;;  %v1062_v46 = vand.u32 2139095040, %v3840_v48  ;;  %v6742_v16 = vand.u32 2147483647, %v3806_v5 }
 0x32c   :  { %vm957_vm11 = vc.u32 %v3817_v21, %v3825_v4  ;;  %vm1464_vm13 = vcmp.gt.s32.totalorder %v1463_v42, 0  ;;  %v233_v54 = vshrl.u32 %v232_v0, 23  ;;  %v6743_v40 = vand.u32 2147483647, %v3840_v48 }
 0x32d   :  { %6889 = vst [vmem:[#allocation13_spill] sm:$0xff] %v3827_v33  ;;  %v769_v43 = vsub.s32 0, %v3827_v33  ;;  %v959_v29 = vsel %vm957_vm11, %v958_v30, %v954_v38  ;;  %vm768_vm12 = vcmp.lt.s32.totalorder %v3827_v33, 0  ;;  %v1465_v32 = vsel %vm1464_vm13, %v1463_v42, 0 }
 0x32e   :  { %v960_v47 = vadd.s32 %v959_v29, %v955_v31  ;;  %v1467_v55 = vand.u32 31, %v1465_v32  ;;  %v1063_v60 = vshrl.u32 %v1062_v46, 23  ;;  %v3267_v61 = vadd.s32 4294967169, %v233_v54 }
 0x32f   :  { %v770_v50 = vsel %vm768_vm12, %v769_v43, %v3827_v33  ;;  %v1460_v44 = vand.u32 8388607, %v6742_v16  ;;  %v3859_v35 = vshrl.u32 %v1465_v32, 5 }
 0x330   :  { %v771_v27 = vclz %v770_v50  ;;  %v961_v34 = vadd.s32 536870912, %v960_v47  ;;  %v1468_v62 = vsub.s32 32, %v1467_v55  ;;  %v3311_v7 = vadd.s32 4294967169, %v1063_v60 }
 0x331   :  { %v239_v9 = vadd.s32 1, %v3267_v61  ;;  %v1479_v63 = vshll.u32 %v6748_v13, %v1467_v55  ;;  %v1482_v38 = vshll.u32 %v6750_v6, %v1467_v55  ;;  %v1461_v18 = vor.u32 8388608, %v1460_v44 }
 0x332   :  { %v3302_v57 = vadd.s32 4294967294, %v771_v27  ;;  %v3845_v59 = vshrl.u32 %v961_v34, 30  ;;  %v1480_v14 = vshrl.u32 %v6750_v6, %v1468_v62  ;;  %v1483_v22 = vshrl.u32 %v6745_v8, %v1468_v62 }
 0x333   :  { %v1471_v26 = vshrl.u32 %v6754_v17, %v1468_v62  ;;  %v1069_v53 = vadd.s32 1, %v3311_v7  ;;  %vm240_vm15 = vcmp.gt.s32.totalorder %v239_v9, 0  ;;  %v1474_v36 = vshrl.u32 %v6752_v19, %v1468_v62 }
 0x334   :  { %6892 = vst [vmem:[#allocation16_spill] sm:$0xff] %v3845_v59  ;;  %vm3303_vm14 = vcmp.lt.s32.totalorder %v3302_v57, 0  ;;  %v963_v2 = vshll.u32 %v3845_v59, 30  ;;  %v1477_v37 = vshrl.u32 %v6748_v13, %v1468_v62  ;;  %v1470_v15 = vshll.u32 %v6756_v24, %v1467_v55 }
 0x335   :  { %v3852_v20 = vsel %vm3303_vm14, 0, %v3302_v57  ;;  %v1481_v11 = vor.u32 %v1480_v14, %v1479_v63  ;;  %v1473_v30 = vshll.u32 %v6754_v17, %v1467_v55  ;;  %v1476_v41 = vshll.u32 %v6752_v19, %v1467_v55 }
 0x336   :  { %6893 = vst [vmem:[#allocation17_spill] sm:$0xff] %v3852_v20  ;;  %v3856_v23 = vsub.s32 %v960_v47, %v963_v2  ;;  %v1484_v49 = vor.u32 %v1483_v22, %v1482_v38  ;;  %v241_v42 = vsel %vm240_vm15, %v239_v9, 0  ;;  %v779_v43 = vsub.s32 4294967266, %v3852_v20 }
 0x337   :  { %v1472_v45 = vor.u32 %v1471_v26, %v1470_v15  ;;  %vm1070_vm1 = vcmp.gt.s32.totalorder %v1069_v53, 0  ;;  %v3871_v31 = vor.u32 %v1474_v36, %v1473_v30  ;;  %v3873_v47 = vor.u32 %v1477_v37, %v1476_v41 }
 0x338   :  { %v966_v29 = vsub.s32 0, %v3856_v23  ;;  %vm965_vm2 = vcmp.lt.s32.totalorder %v3856_v23, 0  ;;  %vm1488_vm3 = vcmp.lt.s32.totalorder %v3859_v35, 4  ;;  %v243_v50 = vand.u32 31, %v241_v42 }
 0x339   :  { %v1494_v0 = vsel %vm1488_vm3, %v1481_v11, 920167782  ;;  %v1498_v32 = vsel %vm1488_vm3, %v1484_v49, 1326507024  ;;  %v3880_v27 = vshll.u32 %v1461_v18, 8  ;;  %v1071_v34 = vsel %vm1070_vm1, %v1069_v53, 0 }
 0x33a   :  { %v775_v46 = vsub.s32 32, %v3852_v20  ;;  %v967_v54 = vsel %vm965_vm2, %v966_v29, %v3856_v23  ;;  %vm1485_vm4 = vcmp.lt.s32.totalorder %v3859_v35, 1  ;;  %vm1487_vm5 = vcmp.lt.s32.totalorder %v3859_v35, 3 }
 0x33b   :  { %6894 = vst [vmem:[#allocation18_spill] sm:$0xff] %v3880_v27  ;;  %v3886_v55 = vadd.s32 127, %v779_v43  ;;  %v1493_v57 = vsel %vm1485_vm4, %v1472_v45, %v3871_v31  ;;  %v1495_v60 = vsel %vm1487_vm5, %v3873_v47, %v1494_v0  ;;  %v3896_v61 = vand.u32 8388607, %v6743_v40 }
 0x33c   :  { %v1497_v2 = vsel %vm1485_vm4, %v3871_v31, %v3873_v47  ;;  %v1499_v7 = vsel %vm1487_vm5, %v1481_v11, %v1498_v32  ;;  %v1073_v9 = vand.u32 31, %v1071_v34  ;;  %v3904_v44 = vsub.s32 32, %v243_v50 }
 0x33d   :  { %6895 = vst [vmem:[#allocation19_spill] sm:$0xff] %v3886_v55  ;;  %v759_v14 = vadd.s32 %v3794_v39, %v3785_v52  ;;  %v3910_v63 = vadd.s32 %v3825_v4, %v3817_v21  ;;  %v968_v22 = vclz %v967_v54  ;;  %vm6783_vm6 = vcmp.lt.s32.totalorder %v3859_v35, 2 }
 0x33e   :  { %v1469_v26 = vshrl.u32 %v6756_v24, %v1468_v62  ;;  %v3916_v53 = vsel %vm6783_vm6, %v1493_v57, %v1495_v60  ;;  %v3919_v36 = vand.u32 65535, %v3880_v27  ;;  %v3922_v37 = vshrl.u32 %v3880_v27, 16 }
 0x33f   :  { %v3926_v39 = vshrl.u32 %v759_v14, %v775_v46  ;;  %v3930_v21 = vsel %vm6783_vm6, %v1497_v2, %v1499_v7  ;;  %v1067_v4 = vor.u32 8388608, %v3896_v61  ;;  %v3938_v18 = vsub.s32 32, %v1073_v9 }
 0x340   :  { %v3936_v38 = vsel %vm1485_vm4, %v1469_v26, %v1472_v45  ;;  %v256_v15 = vshrl.u32 %v6750_v6, %v3904_v44  ;;  %v3942_v11 = vadd.s32 4294967294, %v968_v22  ;;  %v1526_v30 = vand.u32 65535, %v3916_v53 }
 0x341   :  { %6896 = vst [vmem:[#allocation20_spill] sm:$0xff] %v3926_v39  ;;  %v1527_v41 = vshrl.u32 %v3916_v53, 16  ;;  %v259_v49 = vshrl.u32 %v6745_v8, %v3904_v44  ;;  %v1505_v43 = vshrl.u32 %v3930_v21, 16  ;;  %v6747_v29 = vand.u32 2147483647, %v3834_v28 }
 0x342   :  { %6897 = vst [vmem:[#allocation21_spill] sm:$0xff] %v3936_v38  ;;  %v3950_v45 = vshrl.u32 %v241_v42, 5  ;;  %v255_v0 = vshll.u32 %v6748_v13, %v243_v50  ;;  %v247_v32 = vshrl.u32 %v6754_v17, %v3904_v44  ;;  %v250_v46 = vshrl.u32 %v6752_v19, %v3904_v44 }
 0x343   :  { %v253_v54 = vshrl.u32 %v6748_v13, %v3904_v44  ;;  %v258_v57 = vshll.u32 %v6750_v6, %v243_v50  ;;  %v3960_v60 = vshrl.u32 %v1071_v34, 5  ;;  %v1085_v2 = vshll.u32 %v6748_v13, %v1073_v9 }
 0x344   :  { %v1086_v42 = vshrl.u32 %v6750_v6, %v3938_v18  ;;  %v257_v7 = vor.u32 %v256_v15, %v255_v0  ;;  %v246_v14 = vshll.u32 %v6756_v24, %v243_v50  ;;  %v249_v22 = vshll.u32 %v6754_v17, %v243_v50 }
 0x345   :  { %v252_v26 = vshll.u32 %v6752_v19, %v243_v50  ;;  %v260_v16 = vor.u32 %v259_v49, %v258_v57  ;;  %v1077_v40 = vshrl.u32 %v6754_v17, %v3938_v18  ;;  %v1080_v34 = vshrl.u32 %v6752_v19, %v3938_v18 }
 0x346   :  { %v1089_v12 = vshrl.u32 %v6745_v8, %v3938_v18  ;;  %v236_v52 = vand.u32 8388607, %v6747_v29  ;;  %v3976_v15 = vor.u32 %v247_v32, %v246_v14  ;;  %v3978_v0 = vor.u32 %v250_v46, %v249_v22 }
 0x347   :  { %v3980_v62 = vor.u32 %v253_v54, %v252_v26  ;;  %vm264_vm7 = vcmp.lt.s32.totalorder %v3950_v45, 4  ;;  %v1076_v50 = vshll.u32 %v6756_v24, %v1073_v9  ;;  %v1083_v49 = vshrl.u32 %v6748_v13, %v3938_v18 }
 0x348   :  { %v1088_v57 = vshll.u32 %v6750_v6, %v1073_v9  ;;  %v270_v8 = vsel %vm264_vm7, %v257_v7, 920167782  ;;  %v1079_v29 = vshll.u32 %v6754_v17, %v1073_v9  ;;  %v1082_v32 = vshll.u32 %v6752_v19, %v1073_v9 }
 0x349   :  { %v1087_v46 = vor.u32 %v1086_v42, %v1085_v2  ;;  %v274_v54 = vsel %vm264_vm7, %v260_v16, 1326507024  ;;  %v3993_v14 = vor.u32 %v1077_v40, %v1076_v50  ;;  %vm261_vm8 = vcmp.lt.s32.totalorder %v3950_v45, 1 }
 0x34a   :  { %v1090_v22 = vor.u32 %v1089_v12, %v1088_v57  ;;  %vm263_vm9 = vcmp.lt.s32.totalorder %v3950_v45, 3  ;;  %v3997_v26 = vor.u32 %v1080_v34, %v1079_v29  ;;  %v237_v13 = vor.u32 8388608, %v236_v52 }
 0x34b   :  { %v269_v6 = vsel %vm261_vm8, %v3976_v15, %v3978_v0  ;;  %v271_v9 = vsel %vm263_vm9, %v3980_v62, %v270_v8  ;;  %v4006_v16 = vor.u32 %v1083_v49, %v1082_v32  ;;  %vm1094_vm10 = vcmp.lt.s32.totalorder %v3960_v60, 4 }
 0x34c   :  { %v273_v12 = vsel %vm261_vm8, %v3978_v0, %v3980_v62  ;;  %v275_v40 = vsel %vm263_vm9, %v257_v7, %v274_v54  ;;  %v1504_v52 = vand.u32 65535, %v3930_v21  ;;  %v4019_v29 = vmul.u32 %v1527_v41, %v3919_v36 }
 0x34d   :  { %v1100_v8 = vsel %vm1094_vm10, %v1087_v46, 920167782  ;;  %vm262_vm11 = vcmp.lt.s32.totalorder %v3950_v45, 2  ;;  %vm3308_vm12 = vcmp.lt.s32.totalorder %v3942_v11, 0  ;;  %v4028_v2 = vmul.u32 %v1505_v43, %v3919_v36 }
 0x34e   :  { %v1104_v42 = vsel %vm1094_vm10, %v1090_v22, 1326507024  ;;  %v4034_v7 = vsel %vm262_vm11, %v269_v6, %v271_v9  ;;  %vm1091_vm13 = vcmp.lt.s32.totalorder %v3960_v60, 1  ;;  %vm1093_vm14 = vcmp.lt.s32.totalorder %v3960_v60, 3 }
 0x34f   :  { %v4040_v34 = vsel %vm262_vm11, %v273_v12, %v275_v40  ;;  %v4042_v50 = vshll.u32 %v237_v13, 8  ;;  %v1528_v49 = vmul.u32 %v1526_v30, %v3919_v36  ;;  %v4046_v57 = vmul.u32 %v1526_v30, %v3922_v37 }
 0x350   :  { %v1099_v6 = vsel %vm1091_vm13, %v3993_v14, %v3997_v26  ;;  %v1101_v32 = vsel %vm1093_vm14, %v4006_v16, %v1100_v8  ;;  %v971_v54 = vsel %vm3308_vm12, 0, %v3942_v11  ;;  %v1103_v13 = vsel %vm1091_vm13, %v3997_v26, %v4006_v16 }
 0x351   :  { %v1105_v30 = vsel %vm1093_vm14, %v1087_v46, %v1104_v42  ;;  %v6762_v22 = vshrl.u32 %v4034_v7, 16  ;;  %v4066_v9 = vmul.u32 %v1527_v41, %v3922_v37  ;;  %v1532_v12 = vshll.u32 %v4019_v29, 16 }
 0x352   :  { %vm6779_vm15 = vcmp.lt.s32.totalorder %v3960_v60, 2  ;;  %v6761_v11 = vshrl.u32 %v4040_v34, 16  ;;  %v4072_v40 = vmul.u32 %v1504_v52, %v3922_v37  ;;  %v1510_v8 = vshll.u32 %v4028_v2, 16 }
 0x353   :  { %v4077_v46 = vsel %vm6779_vm15, %v1099_v6, %v1101_v32  ;;  %v278_v42 = vand.u32 65535, %v4042_v50  ;;  %v972_v53 = vsub.s32 32, %v971_v54  ;;  %v976_v41 = vsub.s32 4294967266, %v971_v54 }
 0x354   :  { %v4082_v19 = vsel %vm6779_vm15, %v1103_v13, %v1105_v30  ;;  %v4086_v17 = vshll.u32 %v1067_v4, 8  ;;  %v1506_v24 = vmul.u32 %v1504_v52, %v3919_v36  ;;  %v1509_v51 = vmul.u32 %v1505_v43, %v3922_v37 }
 0x355   :  { %v4095_v32 = vmul.u32 %v6762_v22, %v278_v42  ;;  %v973_v25 = vshll.u32 %v3856_v23, %v971_v54  ;;  %vm1536_vm1 = vc.u32 %v1528_v49, %v1532_v12  ;;  %v4101_v61 = vmul.u32 %v6761_v11, %v278_v42 }
 0x356   :  { %6898 = vst [vmem:[#allocation22_spill] sm:$0xff] %v4086_v17  ;;  %v1512_v36 = vshll.u32 %v4072_v40, 16  ;;  %vm1514_vm2 = vc.u32 %v1506_v24, %v1510_v8  ;;  %v302_v21 = vand.u32 65535, %v4034_v7  ;;  %v974_v4 = vshrl.u32 %v3910_v63, %v972_v53 }
 0x357   :  { %v977_v43 = vadd.s32 127, %v976_v41  ;;  %v1108_v52 = vand.u32 65535, %v4086_v17  ;;  %v280_v23 = vand.u32 65535, %v4040_v34  ;;  %v1516_v54 = vadd.s32 %v1510_v8, %v1506_v24 }
 0x358   :  { %v6899_v30 = vmov 0   ;;  %v279_v11 = vshrl.u32 %v4042_v50, 16  ;;  %v308_v22 = vshll.u32 %v4095_v32, 16  ;;  %v4113_v10 = vadd.s32 %v1532_v12, %v1528_v49 }
 0x359   :  { %v1537_v6 = vsel %vm1536_vm1, 1, %v6899_v30  ;;  %v1515_v13 = vsel %vm1514_vm2, 1, %v6899_v30  ;;  %v6900_v37 = vshrl.u32 %v4077_v46, 16  ;;  %v286_v63 = vshll.u32 %v4101_v61, 16 }
 0x35a   :  { %v6901_v53 = vshrl.u32 %v4082_v19, 16  ;;  %v1132_v24 = vand.u32 65535, %v4077_v46  ;;  %v304_v8 = vmul.u32 %v302_v21, %v278_v42  ;;  %v4125_v3 = vmul.u32 %v302_v21, %v279_v11 }
 0x35b   :  { %v4117_v5 = vmul.u32 %v6900_v37, %v1108_v52  ;;  %v4127_v48 = vor.u32 %v974_v4, %v973_v25  ;;  %v1110_v49 = vand.u32 65535, %v4082_v19  ;;  %v282_v12 = vmul.u32 %v280_v23, %v278_v42 }
 0x35c   :  { %v4122_v41 = vmul.u32 %v6901_v53, %v1108_v52  ;;  %v4130_v28 = vmul.u32 %v280_v23, %v279_v11  ;;  %v978_v37 = vshll.u32 %v977_v43, 23  ;;  %v1517_v58 = vadd.s32 %v1515_v13, %v1509_v51 }
 0x35d   :  { %vm312_vm4 = vc.u32 %v304_v8, %v308_v22  ;;  %v4132_v59 = vadd.s32 %v308_v22, %v304_v8  ;;  %v1109_v53 = vshrl.u32 %v4086_v17, 16  ;;  %v1138_v27 = vshll.u32 %v4117_v5, 16  ;;  %v465_v17 = vpop.permute.xlu1 %464 }
 0x35e   :  { %vm290_vm12 = vc.u32 %v282_v12, %v286_v63  ;;  %v292_v39 = vadd.s32 %v286_v63, %v282_v12  ;;  %vm4136_vm1 = vc.u32 %v1516_v54, %v1512_v36  ;;  %v1116_v25 = vshll.u32 %v4122_v41, 16 }
 0x35f   :  { %v1134_v42 = vmul.u32 %v1132_v24, %v1108_v52  ;;  %v6782_v4 = vshll.u32 %v4125_v3, 16  ;;  %v1112_v43 = vmul.u32 %v1110_v49, %v1108_v52  ;;  %v4142_v51 = vmul.u32 %v1132_v24, %v1109_v53 }
 0x360   :  { %v288_v22 = vshll.u32 %v4130_v28, 16  ;;  %v313_v13 = vsel %vm312_vm4, 1, %v6899_v30  ;;  %v4146_v23 = vmul.u32 %v1110_v49, %v1109_v53  ;;  %v291_v63 = vsel %vm290_vm12, 1, %v6899_v30 }
 0x361   :  { %v6904_v36 = vshrl.u32 %v4034_v7, 16  ;;  %vm316_vm2 = vc.u32 %v4132_v59, %v6782_v4  ;;  %vm1142_vm0 = vc.u32 %v1134_v42, %v1138_v27  ;;  %v4154_v8 = vadd.s32 %v1138_v27, %v1134_v42 }
 0x362   :  { %v6905_v52 = vshrl.u32 %v4040_v34, 16  ;;  %vm294_vm15 = vc.u32 %v292_v39, %v288_v22  ;;  %v6906_v12 = vshll.u32 %v4046_v57, 16  ;;  %vm1120_vm12 = vc.u32 %v1112_v43, %v1116_v25 }
 0x363   :  { %v307_v54 = vmul.u32 %v6904_v36, %v279_v11  ;;  %v1122_v7 = vadd.s32 %v1116_v25, %v1112_v43  ;;  %v979_v20 = vor.u32 4788187, %v978_v37  ;;  %v6785_v4 = vshll.u32 %v4142_v51, 16 }
 0x364   :  { %v285_v24 = vmul.u32 %v6905_v52, %v279_v11  ;;  %vm4161_vm4 = vc.u32 %v4113_v10, %v6906_v12  ;;  %v317_v42 = vsel %vm316_vm2, 1, %v6899_v30  ;;  %v1519_v39 = vsel %vm4136_vm1, 1, %v6899_v30 }
 0x365   :  { %v315_v36 = vadd.s32 %v313_v13, %v307_v54  ;;  %v1118_v34 = vshll.u32 %v4146_v23, 16  ;;  %v1143_v11 = vsel %vm1142_vm0, 1, %v6899_v30  ;;  %v295_v22 = vsel %vm294_vm15, 1, %v6899_v30 }
 0x366   :  { %v293_v27 = vadd.s32 %v291_v63, %v285_v24  ;;  %v1121_v25 = vsel %vm1120_vm12, 1, %v6899_v30  ;;  %v6909_v43 = vshrl.u32 %v4077_v46, 16  ;;  %vm1146_vm6 = vc.u32 %v4154_v8, %v6785_v4  ;;  %v1844_v24 = vpop.permute.xlu2 %1843 }
 0x367   :  { %v4180_v13 = vmul.f32 %v3641_v56, %v465_v17  ;;  %v1539_v21 = vadd.s32 %v1537_v6, %v4066_v9  ;;  %v6911_v63 = vshrl.u32 %v4082_v19, 16  ;;  %vm1124_vm0 = vc.u32 %v1122_v7, %v1118_v34 }
 0x368   :  { %v1137_v37 = vmul.u32 %v6909_v43, %v1109_v53  ;;  %v319_v52 = vadd.s32 %v317_v42, %v315_v36  ;;  %v1521_v12 = vadd.s32 %v1519_v39, %v1517_v58  ;;  %v1541_v46 = vsel %vm4161_vm4, 1, %v6899_v30 }
 0x369   :  { %6910 = vst [vmem:[#allocation23_spill] sm:$0xff] %v4180_v13  ;;  %v1115_v54 = vmul.u32 %v6911_v63, %v1109_v53  ;;  %v297_v33 = vadd.s32 %v295_v22, %v293_v27  ;;  %v980_v38 = vand.u32 2147483647, %v979_v20  ;;  %v1147_v17 = vsel %vm1146_vm6, 1, %v6899_v30 }
 0x36a   :  { %v1145_v43 = vadd.s32 %v1143_v11, %v1137_v37  ;;  %v309_v55 = vshrl.u32 %v4095_v32, 16  ;;  %v1125_v9 = vsel %vm1124_vm0, 1, %v6899_v30  ;;  %v287_v19 = vshrl.u32 %v4101_v61, 16 }
 0x36b   :  { %v1123_v4 = vadd.s32 %v1121_v25, %v1115_v54  ;;  %v4193_v6 = vmul.f32 %v3641_v56, %v1844_v24  ;;  %v471_v58 = vand.u32 2139095040, %v4180_v13  ;;  %v982_v53 = vcvt.s32.f32 %v4127_v48 }
 0x36c   :  { %v1511_v49 = vshrl.u32 %v4028_v2, 16  ;;  %v1533_v20 = vshrl.u32 %v4019_v29, 16  ;;  %v320_v7 = vadd.s32 %v319_v52, %v309_v55  ;;  %vm864_vm6 = vcmp.lt.s32.totalorder %v3648_v1, 0 }
 0x36d   :  { %6912 = vst [vmem:[#allocation24_spill] sm:$0xff] %v4193_v6  ;;  %v1535_v32 = vshrl.u32 %v4046_v57, 16  ;;  %v1543_v36 = vadd.s32 %v1541_v46, %v1539_v21  ;;  %v1149_v27 = vadd.s32 %v1147_v17, %v1145_v43  ;;  %v298_v42 = vadd.s32 %v297_v33, %v287_v19 }
 0x36e   :  { %v983_v61 = vmul.f32 %v982_v53, %v980_v38  ;;  %v1522_v39 = vadd.s32 %v1521_v12, %v1511_v49  ;;  %v1127_v56 = vadd.s32 %v1125_v9, %v1123_v4  ;;  %v311_v34 = vshrl.u32 %v4125_v3, 16 }
 0x36f   :  { %v1139_v11 = vshrl.u32 %v4117_v5, 16  ;;  %v289_v48 = vshrl.u32 %v4130_v28, 16  ;;  %v1850_v2 = vand.u32 2139095040, %v4193_v6  ;;  %v472_v29 = vshrl.u32 %v471_v58, 23 }
 0x370   :  { %v6913_v55 = vand.u32 2147483647, %v3648_v1  ;;  %v6914_v22 = vmov 0  ;;  %v1117_v33 = vshrl.u32 %v4122_v41, 16  ;;  %v6917_v38 = vmov 683565275  }
 0x371   :  { %v245_v4 = vshrl.u32 %v6917_v38, %v3904_v44  ;;  %v266_v5 = vsel %vm264_vm7, %v3980_v62, 2102212464  ;;  %v321_v25 = vadd.s32 %v320_v7, %v311_v34  ;;  %v1513_v28 = vshrl.u32 %v4072_v40, 16 }
 0x372   :  { %vm4207_vm15 = vcmp.le.f32.partialorder %v6913_v55, 0.7853982  ;;  %v1544_v37 = vadd.s32 %v1543_v36, %v1533_v20  ;;  %v1150_v21 = vadd.s32 %v1149_v27, %v1139_v11  ;;  %v4218_v63 = vadd.s32 %v298_v42, %v289_v48  ;;  %v6931_v11 = vld [vmem:[#allocation13_spill] sm:$0xff] }
 0x373   :  { %v6915_v22 = vsel %vm4207_vm15, 4294967295, %v6914_v22  ;;  %v984_v54 = vxor.u32 2147483648, %v983_v61  ;;  %v1128_v52 = vadd.s32 %v1127_v56, %v1117_v33  ;;  %v1141_v24 = vshrl.u32 %v4142_v51, 16  ;;  %v6927_v56 = vld [vmem:[#allocation21_spill] sm:$0xff] }
 0x374   :  { %6916 = vst [vmem:[#allocation25_spill] sm:$0xff] %v6915_v22  ;;  %v265_v41 = vsel %vm261_vm8, %v245_v4, %v3976_v15  ;;  %v267_v44 = vsel %vm263_vm9, %v3978_v0, %v266_v5  ;;  %v6918_v62 = vshll.u32 %v4125_v3, 16  ;;  %v1851_v12 = vshrl.u32 %v1850_v2, 23  ;;  %v6932_v48 = vld [vmem:[#allocation17_spill] sm:$0xff]  ;;  %v6934_v2 = vld [vmem:[#allocation20_spill] sm:$0xff]  ;;  %v6935_v4 = vld [vmem:[#allocation18_spill] sm:$0xff] }
 0x375   :  { %v3296_v46 = vadd.s32 4294967169, %v472_v29  ;;  %v1490_v43 = vsel %vm1488_vm3, %v3873_v47, 2102212464  ;;  %v4235_v17 = vadd.s32 %v1522_v39, %v1513_v28  ;;  %v1119_v9 = vshrl.u32 %v4146_v23, 16 }
 0x376   :  { %v4230_v40 = vadd.s32 %v4132_v59, %v6918_v62  ;;  %v325_v15 = vadd.s32 1, %v321_v25  ;;  %v1545_v19 = vadd.s32 %v1544_v37, %v1535_v32  ;;  %v1096_v0 = vsel %vm1094_vm10, %v4006_v16, 2102212464 }
 0x377   :  { %6919 = vst [vmem:[#allocation26_spill] sm:$0xff] %v4235_v17  ;;  %v1151_v3 = vadd.s32 %v1150_v21, %v1141_v24  ;;  %v985_v59 = vsel %vm864_vm6, %v984_v54, %v983_v61  ;;  %v1075_v47 = vshrl.u32 %v6917_v38, %v3938_v18  ;;  %v4247_v58 = vadd.s32 %v1128_v52, %v1119_v9 }
 0x378   :  { %vm324_vm7 = vc.u32 %v4218_v63, %v4230_v40  ;;  %v268_v23 = vsel %vm262_vm11, %v265_v41, %v267_v44  ;;  %v1491_v53 = vsel %vm1487_vm5, %v3871_v31, %v1490_v43  ;;  %v6921_v16 = vshll.u32 %v4046_v57, 16  ;;  %v1253_v41 = vpop.permute.xlu1 %1252 }
 0x379   :  { %6920 = vst [vmem:[#allocation27_spill] sm:$0xff] %v4247_v58  ;;  %v3331_v20 = vadd.s32 4294967169, %v1851_v12  ;;  %v478_v7 = vadd.s32 1, %v3296_v46  ;;  %v1095_v18 = vsel %vm1091_vm13, %v1075_v47, %v3993_v14  ;;  %v1097_v45 = vsel %vm1093_vm14, %v3997_v26, %v1096_v0  ;;  %v6925_v14 = vld [vmem:[#allocation19_spill] sm:$0xff]  ;;  %v6938_v0 = vld [vmem:[#allocation16_spill] sm:$0xff] }
 0x37a   :  { %v4257_v49 = vadd.s32 %v4113_v10, %v6921_v16  ;;  %v6923_v32 = vshll.u32 %v4142_v51, 16  ;;  %v326_v31 = vsel %vm324_vm7, %v325_v15, %v321_v25  ;;  %v4273_v10 = vsel %vm4207_vm15, %v3648_v1, %v985_v59  ;;  %v6936_v25 = vld [vmem:[#allocation22_spill] sm:$0xff]  ;;  %v4310_v15 = vld [vmem:[%s6735_s8] ss:$0 sm:$0xff] }
 0x37b   :  { %v1549_v57 = vadd.s32 1, %v1545_v19  ;;  %v1155_v27 = vadd.s32 1, %v1151_v3  ;;  %v322_v42 = vmul.u32 %v4042_v50, %v268_v23  ;;  %v6926_v61 = vshll.u32 %v6925_v14, 23 }
 0x37c   :  { %6922 = vst [vmem:[#allocation28_spill] sm:$0xff] %v4257_v49  ;;  %v4268_v36 = vadd.s32 %v4154_v8, %v6923_v32  ;;  %vm6928_vm3 = vcmp.lt.s32.totalorder %v3859_v35, 2  ;;  %vm1548_vm5 = vc.u32 %v4235_v17, %v4257_v49  ;;  %vm6929_vm9 = vcmp.lt.s32.totalorder %v3960_v60, 2 }
 0x37d   :  { %v782_v39 = vor.u32 4788187, %v6926_v61  ;;  %v1492_v26 = vsel %vm6928_vm3, %v6927_v56, %v1491_v53  ;;  %v1098_v51 = vsel %vm6929_vm9, %v1095_v18, %v1097_v45  ;;  %v327_v8 = vadd.s32 %v326_v31, %v322_v42 }
 0x37e   :  { %6924 = vst [vmem:[#allocation29_spill] sm:$0xff] %v4268_v36  ;;  %vm1154_vm8 = vc.u32 %v4247_v58, %v4268_v36  ;;  %v1857_v34 = vadd.s32 1, %v3331_v20  ;;  %vm479_vm10 = vcmp.gt.s32.totalorder %v478_v7, 0  ;;  %v4289_v50 = vmul.f32 %v4273_v10, %v4273_v10 }
 0x37f   :  { %v6933_v35 = vshll.u32 %v6931_v11, %v6932_v48  ;;  %v1550_v55 = vsel %vm1548_vm5, %v1549_v57, %v1545_v19  ;;  %v1156_v33 = vsel %vm1154_vm8, %v1155_v27, %v1151_v3  ;;  %v1546_v5 = vmul.u32 %v6935_v4, %v1492_v26 }
 0x380   :  { %6930 = vst [vmem:[#allocation19_spill] sm:$0xff] %v4289_v50  ;;  %v1152_v28 = vmul.u32 %v6936_v25, %v1098_v51  ;;  %v480_v60 = vsel %vm479_vm10, %v478_v7, 0  ;;  %v783_v37 = vand.u32 2147483647, %v782_v39  ;;  %v328_v21 = vadd.s32 536870912, %v327_v8 }
 0x381   :  { %v778_v29 = vor.u32 %v6934_v2, %v6933_v35  ;;  %vm1858_vm11 = vcmp.gt.s32.totalorder %v1857_v34, 0  ;;  %v998_v54 = vmul.f32 -0.00019511016, %v4289_v50  ;;  %v4298_v52 = vadd.s32 %v1550_v55, %v1546_v5 }
 0x382   :  { %v4300_v24 = vadd.s32 %v1156_v33, %v1152_v28  ;;  %v6788_v62 = vand.u32 2147483647, %v4180_v13  ;;  %v482_v12 = vand.u32 31, %v480_v60  ;;  %v1859_v46 = vsel %vm1858_vm11, %v1857_v34, 0 }
 0x383   :  { %v785_v44 = vcvt.s32.f32 %v778_v29  ;;  %v4305_v9 = vshrl.u32 %v328_v21, 30  ;;  %v4313_v19 = vmul.f32 %v4310_v15, %v1253_v41  ;;  %v986_v3 = vsub.s32 4, %v6938_v0 }
 0x384   :  { %v999_v59 = vadd.f32 0.008332121, %v998_v54  ;;  %v1552_v47 = vadd.s32 536870912, %v4298_v52  ;;  %v1158_v23 = vadd.s32 536870912, %v4300_v24  ;;  %v6787_v53 = vand.u32 2147483647, %v4193_v6 }
 0x385   :  { %v4303_v43 = vmul.f32 %v785_v44, %v783_v37  ;;  %6937 = vst [vmem:[#allocation21_spill] sm:$0xff] %v4305_v9  ;;  %v1861_v16 = vand.u32 31, %v1859_v46  ;;  %v4321_v20 = vand.u32 8388607, %v6788_v62  ;;  %v4323_v7 = vsub.s32 32, %v482_v12 }
 0x386   :  { %v330_v45 = vshll.u32 %v4305_v9, 30  ;;  %v1259_v32 = vand.u32 2139095040, %v4313_v19  ;;  %v4331_v31 = vsel %vm864_vm6, %v986_v3, %v6938_v0  ;;  %v1000_v57 = vmul.f32 %v999_v59, %v4289_v50 }
 0x387   :  { %v787_v18 = vxor.u32 2147483648, %v4303_v43  ;;  %6939 = vst [vmem:[#allocation13_spill] sm:$0xff] %v4331_v31  ;;  %v4334_v27 = vshrl.u32 %v1552_v47, 30  ;;  %v4336_v42 = vshrl.u32 %v1158_v23, 30  ;;  %v4340_v14 = vand.u32 8388607, %v6787_v53 }
 0x388   :  { %v4342_v61 = vsub.s32 32, %v1861_v16  ;;  %v476_v39 = vor.u32 8388608, %v4321_v20  ;;  %v6942_v56 = vmov 1326507024   ;;  %v4347_v51 = vshrl.u32 %v1859_v46, 5 }
 0x389   :  { %6940 = vst [vmem:[#allocation17_spill] sm:$0xff] %v4334_v27  ;;  %v498_v26 = vshrl.u32 %v6942_v56, %v4323_v7  ;;  %v1864_v34 = vshll.u32 %v6917_v38, %v1861_v16  ;;  %v6943_v11 = vmov 2475754826   ;;  %v6944_v35 = vmov 920167782  }
 0x38a   :  { %6941 = vst [vmem:[#allocation20_spill] sm:$0xff] %v4336_v42  ;;  %v1867_v48 = vshll.u32 %v6943_v11, %v1861_v16  ;;  %v495_v2 = vshrl.u32 %v6944_v35, %v4323_v7  ;;  %v4353_v29 = vsub.s32 %v327_v8, %v330_v45  ;;  %v6945_v55 = vmov 2102212464  }
 0x38b   :  { %v1873_v33 = vshll.u32 %v6945_v55, %v1861_v16  ;;  %v497_v4 = vshll.u32 %v6944_v35, %v482_v12  ;;  %v1260_v5 = vshrl.u32 %v1259_v32, 23  ;;  %v4357_v25 = vshrl.u32 %v480_v60, 5 }
 0x38c   :  { %v6946_v28 = vmov 2131351028   ;;  %v492_v21 = vshrl.u32 %v6945_v55, %v4323_v7  ;;  %v494_v54 = vshll.u32 %v6945_v55, %v482_v12  ;;  %v1865_v41 = vshrl.u32 %v6943_v11, %v4342_v61 }
 0x38d   :  { %v489_v37 = vshrl.u32 %v6946_v28, %v4323_v7  ;;  %v1868_v8 = vshrl.u32 %v6946_v28, %v4342_v61  ;;  %v486_v44 = vshrl.u32 %v6943_v11, %v4323_v7  ;;  %v499_v46 = vor.u32 %v498_v26, %v497_v4 }
 0x38e   :  { %v1874_v60 = vshrl.u32 %v6944_v35, %v4342_v61  ;;  %v488_v0 = vshll.u32 %v6943_v11, %v482_v12  ;;  %v491_v3 = vshll.u32 %v6946_v28, %v482_v12  ;;  %v496_v59 = vor.u32 %v495_v2, %v494_v54 }
 0x38f   :  { %v333_v47 = vsub.s32 0, %v4353_v29  ;;  %v1871_v23 = vshrl.u32 %v6945_v55, %v4342_v61  ;;  %v485_v45 = vshll.u32 %v6917_v38, %v482_v12  ;;  %v3316_v32 = vadd.s32 4294967169, %v1260_v5 }
 0x390   :  { %vm332_vm13 = vcmp.lt.s32.totalorder %v4353_v29, 0  ;;  %v4379_v53 = vor.u32 %v489_v37, %v488_v0  ;;  %v4381_v26 = vor.u32 %v492_v21, %v491_v3  ;;  %vm503_vm14 = vcmp.lt.s32.totalorder %v4357_v25, 4 }
 0x391   :  { %v1870_v4 = vshll.u32 %v6946_v28, %v1861_v16  ;;  %v1877_v2 = vshrl.u32 %v6942_v56, %v4342_v61  ;;  %v4387_v54 = vor.u32 %v486_v44, %v485_v45  ;;  %v513_v62 = vsel %vm503_vm14, %v499_v46, 1326507024  ;;  %v6947_v44 = vld [vmem:[#allocation9_spill] sm:$0xff] }
 0x392   :  { %v4391_v12 = vor.u32 %v1865_v41, %v1864_v34  ;;  %v1875_v5 = vor.u32 %v1874_v60, %v1873_v33  ;;  %v1876_v37 = vshll.u32 %v6944_v35, %v1861_v16  ;;  %v509_v21 = vsel %vm503_vm14, %v496_v59, 920167782 }
 0x393   :  { %v334_v0 = vsel %vm332_vm13, %v333_v47, %v4353_v29  ;;  %vm500_vm1 = vcmp.lt.s32.totalorder %v4357_v25, 1  ;;  %vm502_vm2 = vcmp.lt.s32.totalorder %v4357_v25, 3  ;;  %v1266_v3 = vadd.s32 1, %v3316_v32 }
 0x394   :  { %vm6814_vm4 = vcmp.lt.s32.totalorder %v6947_v44, 0  ;;  %v4400_v45 = vor.u32 %v1868_v8, %v1867_v48  ;;  %v4402_v46 = vor.u32 %v1871_v23, %v1870_v4  ;;  %v512_v16 = vsel %vm500_vm1, %v4379_v53, %v4381_v26 }
 0x395   :  { %v514_v34 = vsel %vm502_vm2, %v496_v59, %v513_v62  ;;  %v1878_v33 = vor.u32 %v1877_v2, %v1876_v37  ;;  %vm1882_vm12 = vcmp.lt.s32.totalorder %v4347_v51, 4  ;;  %v508_v41 = vsel %vm500_vm1, %v4387_v54, %v4379_v53 }
 0x396   :  { %v510_v48 = vsel %vm502_vm2, %v4381_v26, %v509_v21  ;;  %v1554_v8 = vshll.u32 %v4334_v27, 30  ;;  %v335_v60 = vclz %v334_v0  ;;  %v1888_v47 = vsel %vm1882_vm12, %v1875_v5, 920167782 }
 0x397   :  { %vm501_vm0 = vcmp.lt.s32.totalorder %v4357_v25, 2  ;;  %v1001_v62 = vadd.f32 -0.16666654, %v1000_v57  ;;  %v1160_v59 = vshll.u32 %v4336_v42, 30  ;;  %vm1267_vm6 = vcmp.gt.s32.totalorder %v1266_v3, 0 }
 0x398   :  { %v515_v23 = vsel %vm501_vm0, %v512_v16, %v514_v34  ;;  %vm1879_vm7 = vcmp.lt.s32.totalorder %v4347_v51, 1  ;;  %vm1881_vm3 = vcmp.lt.s32.totalorder %v4347_v51, 3  ;;  %v511_v32 = vsel %vm501_vm0, %v508_v41, %v510_v48 }
 0x399   :  { %v4431_v4 = vshll.u32 %v476_v39, 8  ;;  %v1855_v2 = vor.u32 8388608, %v4340_v14  ;;  %v1887_v57 = vsel %vm1879_vm7, %v4391_v12, %v4400_v45  ;;  %v1889_v37 = vsel %vm1881_vm3, %v4402_v46, %v1888_v47 }
 0x39a   :  { %v1892_v21 = vsel %vm1882_vm12, %v1878_v33, 1326507024  ;;  %v4444_v0 = vsub.s32 %v4298_v52, %v1554_v8  ;;  %v3268_v20 = vadd.s32 4294967294, %v335_v60  ;;  %v520_v39 = vshrl.u32 %v515_v23, 16 }
 0x39b   :  { %v1268_v16 = vsel %vm1267_vm6, %v1266_v3, 0  ;;  %v1002_v14 = vmul.f32 %v1001_v62, %v4289_v50  ;;  %v4448_v34 = vsub.s32 %v4300_v24, %v1160_v59  ;;  %vm6815_vm5 = vcmp.lt.s32.totalorder %v4347_v51, 2 }
 0x39c   :  { %6948 = vst [vmem:[#allocation18_spill] sm:$0xff] %v4444_v0  ;;  %v542_v41 = vshrl.u32 %v511_v32, 16  ;;  %v4453_v48 = vsel %vm6815_vm5, %v1887_v57, %v1889_v37  ;;  %v1891_v52 = vsel %vm1879_vm7, %v4400_v45, %v4402_v46  ;;  %v1893_v3 = vsel %vm1881_vm3, %v1875_v5, %v1892_v21 }
 0x39d   :  { %6949 = vst [vmem:[#allocation22_spill] sm:$0xff] %v4448_v34  ;;  %v517_v33 = vand.u32 65535, %v4431_v4  ;;  %v4467_v24 = vsel %vm6814_vm4, %v787_v18, %v4303_v43  ;;  %v4469_v8 = vshll.u32 %v1855_v2, 8  ;;  %v1270_v60 = vand.u32 31, %v1268_v16 }
 0x39e   :  { %6950 = vst [vmem:[#allocation16_spill] sm:$0xff] %v4467_v24  ;;  %vm3269_vm8 = vcmp.lt.s32.totalorder %v3268_v20, 0  ;;  %v4479_v59 = vsel %vm6815_vm5, %v1891_v52, %v1893_v3  ;;  %v1920_v57 = vand.u32 65535, %v4453_v48  ;;  %v4485_v2 = vadd.f32 1.0, %v1002_v14 }
 0x39f   :  { %6951 = vst [vmem:[#allocation30_spill] sm:$0xff] %v4469_v8  ;;  %v4475_v5 = vmul.u32 %v520_v39, %v517_v33  ;;  %v4483_v18 = vmul.u32 %v542_v41, %v517_v33  ;;  %v519_v21 = vand.u32 65535, %v515_v23  ;;  %v541_v47 = vand.u32 65535, %v511_v32 }
 0x3a0   :  { %v4490_v62 = vadd.s32 %v4230_v40, %v4218_v63  ;;  %v4492_v27 = vsel %vm3269_vm8, 0, %v3268_v20  ;;  %v4495_v52 = vand.u32 65535, %v4469_v8  ;;  %v4497_v3 = vsub.s32 32, %v1270_v60 }
 0x3a1   :  { %v4500_v43 = vshrl.u32 %v4469_v8, 16  ;;  %v525_v23 = vshll.u32 %v4475_v5, 16  ;;  %v6952_v63 = vshrl.u32 %v4453_v48, 16  ;;  %v518_v20 = vshrl.u32 %v4431_v4, 16  ;;  %v1647_v8 = vpop.permute.xlu1 %1646 }
 0x3a2   :  { %v4506_v32 = vmul.u32 %v1920_v57, %v4495_v52  ;;  %v547_v6 = vshll.u32 %v4483_v18, 16  ;;  %v343_v42 = vsub.s32 4294967266, %v4492_v27  ;;  %v521_v37 = vmul.u32 %v519_v21, %v517_v33 }
 0x3a3   :  { %v4511_v40 = vmul.u32 %v6952_v63, %v4495_v52  ;;  %v4517_v14 = vmul.u32 %v1920_v57, %v4500_v43  ;;  %v543_v49 = vmul.u32 %v541_v47, %v517_v33  ;;  %v4519_v17 = vmul.u32 %v519_v21, %v518_v20 }
 0x3a4   :  { %v4521_v24 = vmul.u32 %v541_v47, %v518_v20  ;;  %v546_v44 = vmul.u32 %v542_v41, %v518_v20  ;;  %v1286_v63 = vshrl.u32 %v6942_v56, %v4497_v3  ;;  %v524_v1 = vmul.u32 %v520_v39, %v518_v20 }
 0x3a5   :  { %vm4525_vm9 = vc.u32 %v521_v37, %v525_v23  ;;  %v531_v13 = vadd.s32 %v525_v23, %v521_v37  ;;  %v1283_v57 = vshrl.u32 %v6944_v35, %v4497_v3  ;;  %vm551_vm10 = vc.u32 %v543_v49, %v547_v6 }
 0x3a6   :  { %v4531_v9 = vadd.s32 %v547_v6, %v543_v49  ;;  %v1285_v47 = vshll.u32 %v6944_v35, %v1270_v60  ;;  %v4535_v41 = vshrl.u32 %v1268_v16, 5  ;;  %v1277_v39 = vshrl.u32 %v6946_v28, %v4497_v3 }
 0x3a7   :  { %v1280_v21 = vshrl.u32 %v6945_v55, %v4497_v3  ;;  %v1282_v37 = vshll.u32 %v6945_v55, %v1270_v60  ;;  %v527_v23 = vshll.u32 %v4519_v17, 16  ;;  %v6813_v20 = vshll.u32 %v4521_v24, 16 }
 0x3a8   :  { %v1274_v6 = vshrl.u32 %v6943_v11, %v4497_v3  ;;  %v1287_v49 = vor.u32 %v1286_v63, %v1285_v47  ;;  %v552_v33 = vsel %vm551_vm10, 1, %v6899_v30  ;;  %v1276_v16 = vshll.u32 %v6943_v11, %v1270_v60 }
 0x3a9   :  { %v1279_v36 = vshll.u32 %v6946_v28, %v1270_v60  ;;  %v1284_v58 = vor.u32 %v1283_v57, %v1282_v37  ;;  %v530_v31 = vsel %vm4525_vm9, 1, %v6899_v30  ;;  %vm4552_vm11 = vc.u32 %v531_v13, %v527_v23 }
 0x3aa   :  { %vm555_vm13 = vc.u32 %v4531_v9, %v6813_v20  ;;  %v1273_v63 = vshll.u32 %v6917_v38, %v1270_v60  ;;  %v6957_v47 = vand.u32 2147483647, %v4313_v19  ;;  %v4562_v28 = vor.u32 %v1277_v39, %v1276_v16 }
 0x3ab   :  { %v4564_v57 = vor.u32 %v1280_v21, %v1279_v36  ;;  %vm1291_vm6 = vcmp.lt.s32.totalorder %v4535_v41, 4  ;;  %v554_v50 = vadd.s32 %v552_v33, %v546_v44  ;;  %v4572_v23 = vmul.f32 %v4310_v15, %v1647_v8 }
 0x3ac   :  { %v1263_v11 = vand.u32 8388607, %v6957_v47  ;;  %v4567_v13 = vor.u32 %v1274_v6, %v1273_v63  ;;  %v1301_v37 = vsel %vm1291_vm6, %v1287_v49, 1326507024  ;;  %v339_v60 = vsub.s32 32, %v4492_v27 }
 0x3ad   :  { %6958 = vst [vmem:[#allocation31_spill] sm:$0xff] %v4572_v23  ;;  %v532_v20 = vadd.s32 %v530_v31, %v524_v1  ;;  %v556_v47 = vsel %vm555_vm13, 1, %v6899_v30  ;;  %v1297_v36 = vsel %vm1291_vm6, %v1284_v58, 920167782  ;;  %v344_v39 = vadd.s32 127, %v343_v42 }
 0x3ae   :  { %v534_v44 = vsel %vm4552_vm11, 1, %v6899_v30  ;;  %vm1288_vm8 = vcmp.lt.s32.totalorder %v4535_v41, 1  ;;  %vm1290_vm9 = vcmp.lt.s32.totalorder %v4535_v41, 3  ;;  %v6959_v8 = vshrl.u32 %v4479_v59, 16 }
 0x3af   :  { %v1264_v1 = vor.u32 8388608, %v1263_v11  ;;  %v1300_v31 = vsel %vm1288_vm8, %v4562_v28, %v4564_v57  ;;  %v1302_v42 = vsel %vm1290_vm9, %v1284_v58, %v1301_v37  ;;  %v558_v22 = vadd.s32 %v556_v47, %v554_v50 }
 0x3b0   :  { %v4586_v33 = vmul.u32 %v6959_v8, %v4495_v52  ;;  %v1296_v21 = vsel %vm1288_vm8, %v4567_v13, %v4562_v28  ;;  %v1298_v6 = vsel %vm1290_vm9, %v4564_v57, %v1297_v36  ;;  %v1653_v11 = vand.u32 2139095040, %v4572_v23 }
 0x3b1   :  { %v340_v49 = vshll.u32 %v4353_v29, %v4492_v27  ;;  %v6960_v16 = vand.u32 65535, %v4479_v59  ;;  %v536_v58 = vadd.s32 %v534_v44, %v532_v20  ;;  %vm6818_vm10 = vcmp.lt.s32.totalorder %v4535_v41, 2 }
 0x3b2   :  { %v345_v50 = vshll.u32 %v344_v39, 23  ;;  %v548_v36 = vshrl.u32 %v4483_v18, 16  ;;  %v4616_v8 = vsel %vm6818_vm10, %v1300_v31, %v1302_v42  ;;  %v341_v27 = vshrl.u32 %v4490_v62, %v339_v60 }
 0x3b3   :  { %v1900_v63 = vmul.u32 %v6960_v16, %v4495_v52  ;;  %v6961_v37 = vmov %v6960_v16  ;;  %v526_v29 = vshrl.u32 %v4475_v5, 16  ;;  %v4622_v52 = vsel %vm6818_vm10, %v1296_v21, %v1298_v6 }
 0x3b4   :  { %v4611_v47 = vmul.u32 %v6961_v37, %v4500_v43  ;;  %v4624_v20 = vshll.u32 %v1264_v1, 8  ;;  %v6962_v39 = vshrl.u32 %v4479_v59, 16  ;;  %v1904_v18 = vshll.u32 %v4586_v33, 16 }
 0x3b5   :  { %v559_v16 = vadd.s32 %v558_v22, %v548_v36  ;;  %v1654_v37 = vshrl.u32 %v1653_v11, 23  ;;  %v6963_v31 = vshrl.u32 %v4453_v48, 16  ;;  %v1926_v5 = vshll.u32 %v4511_v40, 16 }
 0x3b6   :  { %v1903_v44 = vmul.u32 %v6962_v39, %v4500_v43  ;;  %v537_v60 = vadd.s32 %v536_v58, %v526_v29  ;;  %v6817_v42 = vshrl.u32 %v4616_v8, 16  ;;  %v346_v21 = vor.u32 4788187, %v345_v50 }
 0x3b7   :  { %v1925_v62 = vmul.u32 %v6963_v31, %v4500_v43  ;;  %v1906_v1 = vshll.u32 %v4611_v47, 16  ;;  %v550_v6 = vshrl.u32 %v4521_v24, 16  ;;  %v6816_v59 = vshrl.u32 %v4622_v52, 16 }
 0x3b8   :  { %v342_v39 = vor.u32 %v341_v27, %v340_v49  ;;  %v528_v11 = vshrl.u32 %v4519_v17, 16  ;;  %v1305_v48 = vand.u32 65535, %v4624_v20  ;;  %vm4641_vm11 = vc.u32 %v1900_v63, %v1904_v18 }
 0x3b9   :  { %v505_v58 = vsel %vm503_vm14, %v4381_v26, 2102212464  ;;  %v560_v50 = vadd.s32 %v559_v16, %v550_v6  ;;  %v3326_v36 = vadd.s32 4294967169, %v1654_v37  ;;  %vm1162_vm13 = vcmp.lt.s32.totalorder %v4448_v34, 0 }
 0x3ba   :  { %v1910_v29 = vadd.s32 %v1904_v18, %v1900_v63  ;;  %v484_v49 = vshrl.u32 %v6917_v38, %v4323_v7  ;;  %v4651_v27 = vadd.s32 %v537_v60, %v528_v11  ;;  %v4655_v17 = vmul.u32 %v6817_v42, %v1305_v48 }
 0x3bb   :  { %v347_v31 = vand.u32 2147483647, %v346_v21  ;;  %vm4658_vm4 = vc.u32 %v4506_v32, %v1926_v5  ;;  %v4663_v26 = vadd.s32 %v1926_v5, %v4506_v32  ;;  %v4667_v63 = vmul.u32 %v6816_v59, %v1305_v48 }
 0x3bc   :  { %v504_v7 = vsel %vm500_vm1, %v484_v49, %v4387_v54  ;;  %v506_v18 = vsel %vm502_vm2, %v4379_v53, %v505_v58  ;;  %v6968_v16 = vshll.u32 %v4521_v24, 16  ;;  %v1307_v32 = vand.u32 65535, %v4616_v8  ;;  %v6971_v58 = vld [vmem:[#allocation14_spill] sm:$0xff] }
 0x3bd   :  { %v349_v5 = vcvt.s32.f32 %v342_v39  ;;  %v564_v60 = vadd.s32 1, %v560_v50  ;;  %v1329_v21 = vand.u32 65535, %v4622_v52  ;;  %v1660_v6 = vadd.s32 1, %v3326_v36 }
 0x3be   :  { %v4678_v37 = vadd.s32 %v4531_v9, %v6968_v16  ;;  %v1909_v54 = vsel %vm4641_vm11, 1, %v6899_v30  ;;  %v1306_v53 = vshrl.u32 %v4624_v20, 16  ;;  %v1313_v24 = vshll.u32 %v4655_v17, 16 }
 0x3bf   :  { %vm1556_vm1 = vcmp.lt.s32.totalorder %v4444_v0, 0  ;;  %vm4690_vm2 = vc.u32 %v1910_v29, %v1906_v1  ;;  %v1931_v39 = vsel %vm4658_vm4, 1, %v6899_v30  ;;  %v507_v11 = vsel %vm501_vm0, %v504_v7, %v506_v18 }
 0x3c0   :  { %vm563_vm14 = vc.u32 %v4651_v27, %v4678_v37  ;;  %v1335_v43 = vshll.u32 %v4667_v63, 16  ;;  %vm231_vm11 = vcmp.lt.s32.totalorder %v6971_v58, 0  ;;  %v350_v36 = vmul.f32 %v349_v5, %v347_v31 }
 0x3c1   :  { %v6972_v49 = vshll.u32 %v4517_v14, 16  ;;  %v1309_v29 = vmul.u32 %v1307_v32, %v1305_v48  ;;  %v4708_v16 = vmul.u32 %v1307_v32, %v1306_v53  ;;  %v565_v22 = vsel %vm563_vm14, %v564_v60, %v560_v50 }
 0x3c2   :  { %v1331_v59 = vmul.u32 %v1329_v21, %v1305_v48  ;;  %v4710_v42 = vmul.u32 %v1329_v21, %v1306_v53  ;;  %vm1661_vm4 = vcmp.gt.s32.totalorder %v1660_v6, 0  ;;  %v1911_v25 = vadd.s32 %v1909_v54, %v1903_v44 }
 0x3c3   :  { %vm4704_vm5 = vc.u32 %v4663_v26, %v6972_v49  ;;  %v561_v7 = vmul.u32 %v4431_v4, %v507_v11  ;;  %vm1317_vm0 = vc.u32 %v1309_v29, %v1313_v24  ;;  %v1319_v31 = vadd.s32 %v1313_v24, %v1309_v29 }
 0x3c4   :  { %v6975_v18 = vand.u32 2147483647, %v6971_v58  ;;  %v6976_v5 = vmov 0  ;;  %v1913_v32 = vsel %vm4690_vm2, 1, %v6899_v30  ;;  %v1933_v50 = vadd.s32 %v1931_v39, %v1925_v62 }
 0x3c5   :  { %vm1339_vm14 = vc.u32 %v1331_v59, %v1335_v43  ;;  %v4722_v48 = vadd.s32 %v1335_v43, %v1331_v59  ;;  %v1935_v4 = vsel %vm4704_vm5, 1, %v6899_v30  ;;  %v4727_v44 = vadd.s32 %v565_v22, %v561_v7 }
 0x3c6   :  { %vm4715_vm10 = vcmp.le.f32.partialorder %v6975_v18, 0.7853982  ;;  %v1315_v60 = vshll.u32 %v4708_v16, 16  ;;  %v1662_v21 = vsel %vm1661_vm4, %v1660_v6, 0  ;;  %v6979_v54 = vsub.s32 0, %v4448_v34 }
 0x3c7   :  { %v6977_v5 = vsel %vm4715_vm10, 4294967295, %v6976_v5  ;;  %v351_v9 = vxor.u32 2147483648, %v350_v36  ;;  %v1318_v62 = vsel %vm1317_vm0, 1, %v6899_v30  ;;  %v6819_v59 = vshll.u32 %v4710_v42, 16 }
 0x3c8   :  { %6978 = vst [vmem:[#allocation32_spill] sm:$0xff] %v6977_v5  ;;  %v1164_v24 = vsel %vm1162_vm13, %v6979_v54, %v4448_v34  ;;  %v1915_v39 = vadd.s32 %v1913_v32, %v1911_v25  ;;  %v6980_v11 = vshrl.u32 %v4616_v8, 16  ;;  %vm1321_vm5 = vc.u32 %v1319_v31, %v1315_v60 }
 0x3c9   :  { %v1340_v49 = vsel %vm1339_vm14, 1, %v6899_v30  ;;  %v1937_v1 = vadd.s32 %v1935_v4, %v1933_v50  ;;  %v6981_v6 = vshrl.u32 %v4622_v52, 16  ;;  %vm1343_vm13 = vc.u32 %v4722_v48, %v6819_v59 }
 0x3ca   :  { %v1312_v43 = vmul.u32 %v6980_v11, %v1306_v53  ;;  %v1664_v22 = vand.u32 31, %v1662_v21  ;;  %v1165_v7 = vclz %v1164_v24  ;;  %v1905_v18 = vshrl.u32 %v4586_v33, 16 }
 0x3cb   :  { %v1334_v29 = vmul.u32 %v6981_v6, %v1306_v53  ;;  %v567_v25 = vadd.s32 536870912, %v4727_v44  ;;  %v352_v8 = vsel %vm231_vm11, %v351_v9, %v350_v36  ;;  %v1927_v31 = vshrl.u32 %v4511_v40, 16 }
 0x3cc   :  { %v1320_v32 = vadd.s32 %v1318_v62, %v1312_v43  ;;  %v1322_v50 = vsel %vm1321_vm5, 1, %v6899_v30  ;;  %v4753_v53 = vmul.f32 %v4485_v2, %v4273_v10  ;;  %v6983_v4 = vsub.s32 0, %v4444_v0 }
 0x3cd   :  { %v1342_v52 = vadd.s32 %v1340_v49, %v1334_v29  ;;  %v1916_v60 = vadd.s32 %v1915_v39, %v1905_v18  ;;  %v1344_v54 = vsel %vm1343_vm13, 1, %v6899_v30  ;;  %v1863_v40 = vshrl.u32 %v6917_v38, %v4342_v61 }
 0x3ce   :  { %6982 = vst [vmem:[#allocation33_spill] sm:$0xff] %v4753_v53  ;;  %v4760_v33 = vsel %vm1556_vm1, %v6983_v4, %v4444_v0  ;;  %v1884_v36 = vsel %vm1882_vm12, %v4402_v46, 2102212464  ;;  %v1938_v24 = vadd.s32 %v1937_v1, %v1927_v31  ;;  %v4768_v10 = vsub.s32 32, %v1664_v22 }
 0x3cf   :  { %v4773_v2 = vsel %vm4715_vm10, %v6971_v58, %v352_v8  ;;  %v1907_v9 = vshrl.u32 %v4611_v47, 16  ;;  %v4776_v62 = vshrl.u32 %v567_v25, 30  ;;  %v1324_v39 = vadd.s32 %v1322_v50, %v1320_v32 }
 0x3d0   :  { %v4778_v11 = vadd.s32 4294967294, %v1165_v7  ;;  %v4783_v61 = vsel %vm1879_vm7, %v1863_v40, %v4391_v12  ;;  %v1929_v46 = vshrl.u32 %v4517_v14, 16  ;;  %v1346_v43 = vadd.s32 %v1344_v54, %v1342_v52 }
 0x3d1   :  { %6984 = vst [vmem:[#allocation34_spill] sm:$0xff] %v4776_v62  ;;  %v4789_v49 = vsel %vm1881_vm3, %v4400_v45, %v1884_v36  ;;  %v4791_v1 = vadd.s32 %v1916_v60, %v1907_v9  ;;  %v6986_v47 = vshll.u32 %v4517_v14, 16  ;;  %v1314_v29 = vshrl.u32 %v4655_v17, 16  ;;  %v2041_v17 = vpop.permute.xlu1 %2040 }
 0x3d2   :  { %v4801_v12 = vmul.f32 %v4773_v2, %v4773_v2  ;;  %v4803_v7 = vadd.s32 %v1938_v24, %v1929_v46  ;;  %v1336_v18 = vshrl.u32 %v4667_v63, 16  ;;  %v1677_v45 = vshrl.u32 %v6944_v35, %v4768_v10 }
 0x3d3   :  { %6985 = vst [vmem:[#allocation35_spill] sm:$0xff] %v4791_v1  ;;  %v4796_v6 = vadd.s32 %v4663_v26, %v6986_v47  ;;  %v569_v25 = vshll.u32 %v4776_v62, 30  ;;  %v1272_v14 = vshrl.u32 %v6917_v38, %v4497_v3  ;;  %v1316_v26 = vshrl.u32 %v4708_v16, 16 }
 0x3d4   :  { %6988 = vst [vmem:[#allocation37_spill] sm:$0xff] %v4801_v12  ;;  %v1325_v32 = vadd.s32 %v1324_v39, %v1314_v29  ;;  %v1347_v8 = vadd.s32 %v1346_v43, %v1336_v18  ;;  %v6821_v31 = vand.u32 2147483647, %v4572_v23  ;;  %v1676_v50 = vshll.u32 %v6945_v55, %v1664_v22 }
 0x3d5   :  { %6987 = vst [vmem:[#allocation36_spill] sm:$0xff] %v4796_v6  ;;  %v1680_v63 = vshrl.u32 %v6942_v56, %v4768_v10  ;;  %v4816_v52 = vshrl.u32 %v1662_v21, 5  ;;  %v6989_v4 = vmov 2475754826   ;;  %v6990_v54 = vmov 2131351028  }
 0x3d6   :  { %v1668_v60 = vshrl.u32 %v6989_v4, %v4768_v10  ;;  %v1671_v3 = vshrl.u32 %v6990_v54, %v4768_v10  ;;  %v1674_v16 = vshrl.u32 %v6945_v55, %v4768_v10  ;;  %v1338_v40 = vshrl.u32 %v4710_v42, 16 }
 0x3d7   :  { %v1678_v36 = vor.u32 %v1677_v45, %v1676_v50  ;;  %v1679_v24 = vshll.u32 %v6944_v35, %v1664_v22  ;;  %v4827_v9 = vmul.f32 %v4310_v15, %v2041_v17  ;;  %v1293_v21 = vsel %vm1291_vm6, %v4564_v57, 2102212464 }
 0x3d8   :  { %v1667_v39 = vshll.u32 %v6917_v38, %v1664_v22  ;;  %v1670_v46 = vshll.u32 %v6989_v4, %v1664_v22  ;;  %v1673_v43 = vshll.u32 %v6990_v54, %v1664_v22  ;;  %v4835_v47 = vadd.s32 %v1325_v32, %v1316_v26 }
 0x3d9   :  { %6991 = vst [vmem:[#allocation38_spill] sm:$0xff] %v4827_v9  ;;  %v1348_v29 = vadd.s32 %v1347_v8, %v1338_v40  ;;  %v1657_v18 = vand.u32 8388607, %v6821_v31  ;;  %v1681_v45 = vor.u32 %v1680_v63, %v1679_v24  ;;  %vm1685_vm12 = vcmp.lt.s32.totalorder %v4816_v52, 4 }
 0x3da   :  { %v4839_v50 = vor.u32 %v1668_v60, %v1667_v39  ;;  %v4841_v17 = vor.u32 %v1671_v3, %v1670_v46  ;;  %v4843_v59 = vor.u32 %v1674_v16, %v1673_v43  ;;  %v365_v57 = vmul.f32 -0.00019511016, %v4801_v12 }
 0x3db   :  { %v4848_v0 = vsub.s32 %v4727_v44, %v569_v25  ;;  %v1691_v22 = vsel %vm1685_vm12, %v1678_v36, 920167782  ;;  %v2047_v26 = vand.u32 2139095040, %v4827_v9  ;;  %v1943_v32 = vadd.s32 1, %v4803_v7 }
 0x3dc   :  { %v1292_v8 = vsel %vm1288_vm8, %v1272_v14, %v4567_v13  ;;  %v1294_v63 = vsel %vm1290_vm9, %v4562_v28, %v1293_v21  ;;  %v6992_v60 = vshll.u32 %v4710_v42, 16  ;;  %v1352_v25 = vadd.s32 1, %v1348_v29 }
 0x3dd   :  { %vm1682_vm7 = vcmp.lt.s32.totalorder %v4816_v52, 1  ;;  %vm1684_vm3 = vcmp.lt.s32.totalorder %v4816_v52, 3  ;;  %v1695_v3 = vsel %vm1685_vm12, %v1681_v45, 1326507024  ;;  %v1658_v13 = vor.u32 8388608, %v1657_v18 }
 0x3de   :  { %v4863_v44 = vadd.s32 %v4722_v48, %v6992_v60  ;;  %v1690_v28 = vsel %vm1682_vm7, %v4839_v50, %v4841_v17  ;;  %v1692_v42 = vsel %vm1684_vm3, %v4843_v59, %v1691_v22  ;;  %v366_v48 = vadd.f32 0.008332121, %v365_v57 }
 0x3df   :  { %v572_v14 = vsub.s32 0, %v4848_v0  ;;  %vm6993_vm8 = vcmp.lt.s32.totalorder %v4535_v41, 2  ;;  %v2048_v40 = vshrl.u32 %v2047_v26, 23  ;;  %vm571_vm9 = vcmp.lt.s32.totalorder %v4848_v0, 0  ;;  %v2238_v41 = vpop.permute.xlu2 %2237 }
 0x3e0   :  { %vm1351_vm6 = vc.u32 %v4835_v47, %v4863_v44  ;;  %v1295_v16 = vsel %vm6993_vm8, %v1292_v8, %v1294_v63  ;;  %vm1683_vm1 = vcmp.lt.s32.totalorder %v4816_v52, 2  ;;  %v1694_v24 = vsel %vm1682_vm7, %v4841_v17, %v4843_v59 }
 0x3e1   :  { %v1696_v21 = vsel %vm1684_vm3, %v1678_v36, %v1695_v3  ;;  %v1559_v39 = vclz %v4760_v33  ;;  %vm1942_vm2 = vc.u32 %v4791_v1, %v4796_v6  ;;  %v1353_v46 = vsel %vm1351_vm6, %v1352_v25, %v1348_v29  ;;  %v7000_v3 = vld [vmem:[#allocation30_spill] sm:$0xff] }
 0x3e2   :  { %v4894_v43 = vsel %vm1683_vm1, %v1690_v28, %v1692_v42  ;;  %vm3313_vm4 = vcmp.lt.s32.totalorder %v4778_v11, 0  ;;  %vm6994_vm0 = vcmp.lt.s32.totalorder %v4347_v51, 2  ;;  %v1349_v36 = vmul.u32 %v4624_v20, %v1295_v16 }
 0x3e3   :  { %v1886_v18 = vsel %vm6994_vm0, %v4783_v61, %v4789_v49  ;;  %v4902_v45 = vshll.u32 %v1658_v13, 8  ;;  %v367_v33 = vmul.f32 %v366_v48, %v4801_v12  ;;  %v573_v57 = vsel %vm571_vm9, %v572_v14, %v4848_v0  ;;  %v6997_v61 = vld [vmem:[#allocation13_spill] sm:$0xff] }
 0x3e4   :  { %v1697_v29 = vsel %vm1683_vm1, %v1694_v24, %v1696_v21  ;;  %v3336_v22 = vadd.s32 4294967169, %v2048_v40  ;;  %v1944_v26 = vsel %vm1942_vm2, %v1943_v32, %v4803_v7  ;;  %v4910_v8 = vmul.f32 %v4310_v15, %v2238_v41  ;;  %v7004_v24 = vld [vmem:[#allocation27_spill] sm:$0xff]  ;;  %v7005_v21 = vld [vmem:[#allocation29_spill] sm:$0xff] }
 0x3e5   :  { %v4912_v63 = vadd.s32 %v1353_v46, %v1349_v36  ;;  %v6822_v51 = vshrl.u32 %v4894_v43, 16  ;;  %v6998_v49 = vsel %vm4207_vm15, 0, %v6997_v61  ;;  %v1940_v13 = vmul.u32 %v7000_v3, %v1886_v18 }
 0x3e6   :  { %6995 = vst [vmem:[#allocation39_spill] sm:$0xff] %v4910_v8  ;;  %v4919_v60 = vand.u32 3, %v6998_v49  ;;  %v2054_v28 = vadd.s32 1, %v3336_v22  ;;  %v4926_v7 = vsel %vm3313_vm4, 0, %v4778_v11  ;;  %v574_v32 = vclz %v573_v57 }
 0x3e7   :  { %7001 = vst [vmem:[#allocation13_spill] sm:$0xff] %v4926_v7  ;;  %v1699_v42 = vand.u32 65535, %v4902_v45  ;;  %v1702_v48 = vshrl.u32 %v1697_v29, 16  ;;  %v4929_v14 = vadd.s32 4294967294, %v1559_v39  ;;  %v368_v16 = vadd.f32 -0.16666654, %v367_v33 }
 0x3e8   :  { %6999 = vst [vmem:[#allocation25_spill] sm:$0xff] %v4919_v60  ;;  %v4931_v40 = vadd.s32 %v1944_v26, %v1940_v13  ;;  %vm2055_vm15 = vcmp.gt.s32.totalorder %v2054_v28, 0  ;;  %v4935_v41 = vadd.s32 %v7005_v21, %v7004_v24  ;;  %v2244_v46 = vand.u32 2139095040, %v4910_v8 }
 0x3e9   :  { %7002 = vst [vmem:[#allocation30_spill] sm:$0xff] %v4929_v14  ;;  %v1355_v18 = vadd.s32 536870912, %v4912_v63  ;;  %v4941_v11 = vmul.u32 %v6822_v51, %v1699_v42  ;;  %v1701_v39 = vand.u32 65535, %v1697_v29  ;;  %v1723_v33 = vand.u32 65535, %v4894_v43 }
 0x3ea   :  { %7003 = vst [vmem:[#allocation40_spill] sm:$0xff] %v4931_v40  ;;  %v2056_v57 = vsel %vm2055_vm15, %v2054_v28, 0  ;;  %v3297_v26 = vadd.s32 4294967294, %v574_v32  ;;  %v4946_v20 = vmul.u32 %v1702_v48, %v1699_v42  ;;  %v4949_v49 = vmul.f32 %v368_v16, %v4801_v12 }
 0x3eb   :  { %7006 = vst [vmem:[#allocation27_spill] sm:$0xff] %v4935_v41  ;;  %v2058_v61 = vand.u32 31, %v2056_v57  ;;  %v4952_v3 = vadd.s32 536870912, %v4931_v40  ;;  %v1700_v24 = vshrl.u32 %v4902_v45, 16  ;;  %v2245_v29 = vshrl.u32 %v2244_v46, 23 }
 0x3ec   :  { %v4956_v21 = vshrl.u32 %v1355_v18, 30  ;;  %v1729_v28 = vshll.u32 %v4941_v11, 16  ;;  %v1703_v32 = vmul.u32 %v1701_v39, %v1699_v42  ;;  %v1725_v25 = vmul.u32 %v1723_v33, %v1699_v42 }
 0x3ed   :  { %v4959_v22 = vsub.s32 32, %v2058_v61  ;;  %v4961_v36 = vmul.u32 %v1701_v39, %v1700_v24  ;;  %v4963_v16 = vmul.u32 %v1723_v33, %v1700_v24  ;;  %vm3298_vm14 = vcmp.lt.s32.totalorder %v3297_v26, 0 }
 0x3ee   :  { %7007 = vst [vmem:[#allocation29_spill] sm:$0xff] %v4956_v21  ;;  %v1706_v31 = vmul.u32 %v1702_v48, %v1700_v24  ;;  %v1707_v51 = vshll.u32 %v4946_v20, 16  ;;  %v2070_v46 = vshll.u32 %v6945_v55, %v2058_v61  ;;  %vm4976_vm5 = vc.u32 %v1725_v25, %v1729_v28 }
 0x3ef   :  { %v2062_v18 = vshrl.u32 %v6989_v4, %v4959_v22  ;;  %v2065_v6 = vshrl.u32 %v6990_v54, %v4959_v22  ;;  %v2068_v39 = vshrl.u32 %v6945_v55, %v4959_v22  ;;  %v2071_v42 = vshrl.u32 %v6944_v35, %v4959_v22 }
 0x3f0   :  { %v4980_v33 = vadd.s32 %v1729_v28, %v1725_v25  ;;  %v4982_v13 = vshrl.u32 %v2056_v57, 5  ;;  %v2074_v1 = vshrl.u32 %v6942_v56, %v4959_v22  ;;  %v2061_v40 = vshll.u32 %v6917_v38, %v2058_v61 }
 0x3f1   :  { %v2064_v41 = vshll.u32 %v6989_v4, %v2058_v61  ;;  %v2067_v34 = vshll.u32 %v6990_v54, %v2058_v61  ;;  %v2072_v7 = vor.u32 %v2071_v42, %v2070_v46  ;;  %vm1711_vm13 = vc.u32 %v1703_v32, %v1707_v51 }
 0x3f2   :  { %v1713_v14 = vadd.s32 %v1707_v51, %v1703_v32  ;;  %v7010_v53 = vand.u32 2147483647, %v4827_v9  ;;  %v2073_v25 = vshll.u32 %v6944_v35, %v2058_v61  ;;  %v1731_v57 = vshll.u32 %v4963_v16, 16 }
 0x3f3   :  { %v4993_v28 = vor.u32 %v2062_v18, %v2061_v40  ;;  %v4995_v5 = vor.u32 %v2065_v6, %v2064_v41  ;;  %v4997_v23 = vor.u32 %v2068_v39, %v2067_v34  ;;  %v1709_v62 = vshll.u32 %v4961_v36, 16 }
 0x3f4   :  { %v2051_v60 = vand.u32 8388607, %v7010_v53  ;;  %v1734_v46 = vsel %vm4976_vm5, 1, %v6899_v30  ;;  %v2075_v51 = vor.u32 %v2074_v1, %v2073_v25  ;;  %vm2079_vm6 = vcmp.lt.s32.totalorder %v4982_v13, 4 }
 0x3f5   :  { %v1712_v53 = vsel %vm1711_vm13, 1, %v6899_v30  ;;  %v7011_v61 = vshrl.u32 %v4894_v43, 16  ;;  %vm1737_vm8 = vc.u32 %v4980_v33, %v1731_v57  ;;  %v2085_v34 = vsel %vm2079_vm6, %v2072_v7, 920167782 }
 0x3f6   :  { %vm1715_vm9 = vc.u32 %v1713_v14, %v1709_v62  ;;  %v2052_v6 = vor.u32 8388608, %v2051_v60  ;;  %vm2076_vm2 = vcmp.lt.s32.totalorder %v4982_v13, 1  ;;  %vm2078_vm4 = vcmp.lt.s32.totalorder %v4982_v13, 3 }
 0x3f7   :  { %v1728_v32 = vmul.u32 %v7011_v61, %v1700_v24  ;;  %v1357_v1 = vshll.u32 %v4956_v21, 30  ;;  %v2084_v43 = vsel %vm2076_vm2, %v4993_v28, %v4995_v5  ;;  %v2086_v41 = vsel %vm2078_vm4, %v4997_v23, %v2085_v34 }
 0x3f8   :  { %v1714_v24 = vadd.s32 %v1712_v53, %v1706_v31  ;;  %v1738_v62 = vsel %vm1737_vm8, 1, %v6899_v30  ;;  %v2088_v60 = vsel %vm2076_vm2, %v4995_v5, %v4997_v23  ;;  %v2089_v14 = vsel %vm2079_vm6, %v2075_v51, 1326507024  ;;  %v2435_v51 = vpop.permute.xlu1 %2434  ;;  %v7013_v53 = vld [vmem:[#allocation21_spill] sm:$0xff] }
 0x3f9   :  { %v1736_v40 = vadd.s32 %v1734_v46, %v1728_v32  ;;  %v5030_v18 = vsel %vm3298_vm14, 0, %v3297_v26  ;;  %v1716_v39 = vsel %vm1715_vm9, 1, %v6899_v30  ;;  %vm2077_vm0 = vcmp.lt.s32.totalorder %v4982_v13, 2 }
 0x3fa   :  { %v2090_v31 = vsel %vm2078_vm4, %v2072_v7, %v2089_v14  ;;  %v7012_v42 = vand.u32 2147483647, %v4910_v8  ;;  %v5042_v25 = vsel %vm2077_vm0, %v2084_v43, %v2086_v41  ;;  %v5048_v26 = vshll.u32 %v2052_v6, 8 }
 0x3fb   :  { %v5046_v46 = vsel %vm2077_vm0, %v2088_v60, %v2090_v31  ;;  %v3341_v32 = vadd.s32 4294967169, %v2245_v29  ;;  %v5052_v7 = vsub.s32 %v4912_v63, %v1357_v1  ;;  %v1740_v34 = vadd.s32 %v1738_v62, %v1736_v40 }
 0x3fc   :  { %v5038_v48 = vand.u32 8388607, %v7012_v42  ;;  %v5055_v14 = vshrl.u32 %v4952_v3, 30  ;;  %v582_v43 = vsub.s32 4294967266, %v5030_v18  ;;  %v1718_v41 = vadd.s32 %v1716_v39, %v1714_v24 }
 0x3fd   :  { %v6839_v42 = vshrl.u32 %v5046_v46, 16  ;;  %v5060_v60 = vadd.f32 1.0, %v4949_v49  ;;  %v1730_v6 = vshrl.u32 %v4941_v11, 16  ;;  %v6838_v31 = vshrl.u32 %v5042_v25, 16 }
 0x3fe   :  { %7014 = vst [vmem:[#allocation21_spill] sm:$0xff] %v5055_v14  ;;  %v5065_v29 = vmul.f32 %v4310_v15, %v2435_v51  ;;  %v578_v63 = vsub.s32 32, %v5030_v18  ;;  %v1708_v1 = vshrl.u32 %v4946_v20, 16  ;;  %v2093_v40 = vand.u32 65535, %v5048_v26 }
 0x3ff   :  { %v562_v24 = vadd.s32 %v4678_v37, %v4651_v27  ;;  %v5073_v49 = vadd.s32 1, %v3341_v32  ;;  %v1360_v11 = vsub.s32 0, %v5052_v7  ;;  %v1741_v62 = vadd.s32 %v1740_v34, %v1730_v6 }
 0x400   :  { %7015 = vst [vmem:[#allocation41_spill] sm:$0xff] %v5065_v29  ;;  %v583_v39 = vadd.s32 127, %v582_v43  ;;  %vm1359_vm15 = vcmp.lt.s32.totalorder %v5052_v7, 0  ;;  %v1719_v15 = vadd.s32 %v1718_v41, %v1708_v1  ;;  %v5079_v51 = vmul.u32 %v6839_v42, %v2093_v40 }
 0x401   :  { %v579_v20 = vshll.u32 %v4848_v0, %v5030_v18  ;;  %v1732_v3 = vshrl.u32 %v4963_v16, 16  ;;  %v5086_v27 = vmul.u32 %v6838_v31, %v2093_v40  ;;  %v2441_v37 = vand.u32 2139095040, %v5065_v29 }
 0x402   :  { %v580_v32 = vshrl.u32 %v562_v24, %v578_v63  ;;  %v1687_v34 = vsel %vm1685_vm12, %v4843_v59, 2102212464  ;;  %v1710_v43 = vshrl.u32 %v4961_v36, 16  ;;  %v2095_v41 = vand.u32 65535, %v5046_v46 }
 0x403   :  { %v1361_v6 = vsel %vm1359_vm15, %v1360_v11, %v5052_v7  ;;  %v1666_v0 = vshrl.u32 %v6917_v38, %v4768_v10  ;;  %v1742_v18 = vadd.s32 %v1741_v62, %v1732_v3  ;;  %v2117_v1 = vand.u32 65535, %v5042_v25 }
 0x404   :  { %v584_v61 = vshll.u32 %v583_v39, 23  ;;  %v5098_v31 = vadd.s32 %v1719_v15, %v1710_v43  ;;  %v2094_v63 = vshrl.u32 %v5048_v26, 16  ;;  %v2101_v24 = vshll.u32 %v5079_v51, 16 }
 0x405   :  { %v1686_v59 = vsel %vm1682_vm7, %v1666_v0, %v4839_v50  ;;  %v1688_v36 = vsel %vm1684_vm3, %v4841_v17, %v1687_v34  ;;  %v2123_v10 = vshll.u32 %v5086_v27, 16  ;;  %v2442_v3 = vshrl.u32 %v2441_v37, 23 }
 0x406   :  { %v1362_v11 = vclz %v1361_v6  ;;  %v5112_v62 = vadd.s32 %v4980_v33, %v1731_v57  ;;  %v2097_v39 = vmul.u32 %v2095_v41, %v2093_v40  ;;  %v5114_v15 = vmul.u32 %v2095_v41, %v2094_v63 }
 0x407   :  { %v1746_v43 = vadd.s32 1, %v1742_v18  ;;  %v2119_v42 = vmul.u32 %v2117_v1, %v2093_v40  ;;  %v5116_v8 = vmul.u32 %v2117_v1, %v2094_v63  ;;  %v3346_v50 = vadd.s32 4294967169, %v2442_v3 }
 0x408   :  { %v1689_v17 = vsel %vm1683_vm1, %v1686_v59, %v1688_v36  ;;  %vm1745_vm12 = vc.u32 %v5098_v31, %v5112_v62  ;;  %v2107_v37 = vadd.s32 %v2101_v24, %v2097_v39  ;;  %v6842_v16 = vand.u32 2147483647, %v5065_v29 }
 0x409   :  { %v581_v34 = vor.u32 %v580_v32, %v579_v20  ;;  %vm2105_vm7 = vc.u32 %v2097_v39, %v2101_v24  ;;  %v5123_v33 = vadd.s32 %v2123_v10, %v2119_v42  ;;  %v2448_v57 = vadd.s32 1, %v3346_v50 }
 0x40a   :  { %v585_v41 = vor.u32 4788187, %v584_v61  ;;  %v3317_v6 = vadd.s32 4294967294, %v1362_v11  ;;  %v2103_v40 = vshll.u32 %v5114_v15, 16  ;;  %vm2127_vm3 = vc.u32 %v2119_v42, %v2123_v10 }
 0x40b   :  { %v1743_v0 = vmul.u32 %v4902_v45, %v1689_v17  ;;  %v1747_v52 = vsel %vm1745_vm12, %v1746_v43, %v1742_v18  ;;  %v6843_v1 = vshll.u32 %v5116_v8, 16  ;;  %vm2449_vm1 = vcmp.gt.s32.totalorder %v2448_v57, 0 }
 0x40c   :  { %v2106_v59 = vsel %vm2105_vm7, 1, %v6899_v30  ;;  %vm2109_vm14 = vc.u32 %v2107_v37, %v2103_v40  ;;  %v2445_v20 = vand.u32 8388607, %v6842_v16  ;;  %v2450_v32 = vsel %vm2449_vm1, %v2448_v57, 0 }
 0x40d   :  { %v7016_v24 = vshrl.u32 %v5046_v46, 16  ;;  %v2128_v36 = vsel %vm2127_vm3, 1, %v6899_v30  ;;  %vm2131_vm5 = vc.u32 %v5123_v33, %v6843_v1  ;;  %v2452_v45 = vand.u32 31, %v2450_v32 }
 0x40e   :  { %v586_v42 = vand.u32 2147483647, %v585_v41  ;;  %v588_v18 = vcvt.s32.f32 %v581_v34  ;;  %vm3318_vm13 = vcmp.lt.s32.totalorder %v3317_v6, 0  ;;  %v7017_v10 = vshrl.u32 %v5042_v25, 16 }
 0x40f   :  { %v2100_v61 = vmul.u32 %v7016_v24, %v2094_v63  ;;  %v5139_v11 = vadd.s32 %v1747_v52, %v1743_v0  ;;  %v2110_v43 = vsel %vm2109_vm14, 1, %v6899_v30  ;;  %v5142_v46 = vsub.s32 32, %v2452_v45 }
 0x410   :  { %v2122_v3 = vmul.u32 %v7017_v10, %v2094_v63  ;;  %v2132_v17 = vsel %vm2131_vm5, 1, %v6899_v30  ;;  %v2446_v37 = vor.u32 8388608, %v2445_v20  ;;  %v5145_v57 = vshrl.u32 %v2450_v32, 5 }
 0x411   :  { %v2108_v39 = vadd.s32 %v2106_v59, %v2100_v61  ;;  %v2455_v41 = vshll.u32 %v6917_v38, %v2452_v45  ;;  %v2456_v34 = vshrl.u32 %v6989_v4, %v5142_v46  ;;  %v2458_v25 = vshll.u32 %v6989_v4, %v2452_v45 }
 0x412   :  { %v2130_v50 = vadd.s32 %v2128_v36, %v2122_v3  ;;  %v2459_v63 = vshrl.u32 %v6990_v54, %v5142_v46  ;;  %v2461_v40 = vshll.u32 %v6990_v54, %v2452_v45  ;;  %v2462_v0 = vshrl.u32 %v6945_v55, %v5142_v46 }
 0x413   :  { %v2464_v52 = vshll.u32 %v6945_v55, %v2452_v45  ;;  %v2465_v59 = vshrl.u32 %v6944_v35, %v5142_v46  ;;  %v5159_v20 = vor.u32 %v2456_v34, %v2455_v41  ;;  %v2467_v24 = vshll.u32 %v6944_v35, %v2452_v45 }
 0x414   :  { %v5161_v32 = vor.u32 %v2459_v63, %v2458_v25  ;;  %v2468_v61 = vshrl.u32 %v6942_v56, %v5142_v46  ;;  %v5166_v36 = vmul.f32 %v588_v18, %v586_v42  ;;  %v5169_v10 = vsel %vm3318_vm13, 0, %v3317_v6 }
 0x415   :  { %v2112_v3 = vadd.s32 %v2110_v43, %v2108_v39  ;;  %v2466_v16 = vor.u32 %v2465_v59, %v2464_v52  ;;  %v1749_v1 = vadd.s32 536870912, %v5139_v11  ;;  %v2134_v29 = vadd.s32 %v2132_v17, %v2130_v50  ;;  %v2829_v43 = vpop.permute.xlu1 %2828 }
 0x416   :  { %v5172_v9 = vor.u32 %v2462_v0, %v2461_v40  ;;  %v2469_v41 = vor.u32 %v2468_v61, %v2467_v24  ;;  %v2060_v34 = vshrl.u32 %v6917_v38, %v4959_v22  ;;  %v2102_v45 = vshrl.u32 %v5079_v51, 16 }
 0x417   :  { %vm2470_vm8 = vcmp.lt.s32.totalorder %v5145_v57, 1  ;;  %vm2473_vm9 = vcmp.lt.s32.totalorder %v5145_v57, 4  ;;  %v2124_v6 = vshrl.u32 %v5086_v27, 16  ;;  %v5186_v39 = vshll.u32 %v2446_v37, 8 }
 0x418   :  { %v2478_v42 = vsel %vm2470_vm8, %v5159_v20, %v5161_v32  ;;  %v2479_v18 = vsel %vm2473_vm9, %v2466_v16, 920167782  ;;  %v2081_v22 = vsel %vm2079_vm6, %v4997_v23, 2102212464  ;;  %v2104_v51 = vshrl.u32 %v5114_v15, 16 }
 0x419   :  { %v2113_v50 = vadd.s32 %v2112_v3, %v2102_v45  ;;  %vm2472_vm15 = vcmp.lt.s32.totalorder %v5145_v57, 3  ;;  %v2135_v27 = vadd.s32 %v2134_v29, %v2124_v6  ;;  %vm2471_vm12 = vcmp.lt.s32.totalorder %v5145_v57, 2  ;;  %v5209_v29 = vld [vmem:[%s6735_s8] ss:$0 sm:$0xff] }
 0x41a   :  { %v2480_v17 = vsel %vm2472_vm15, %v5172_v9, %v2479_v18  ;;  %v2483_v37 = vsel %vm2473_vm9, %v2469_v41, 1326507024  ;;  %v2126_v25 = vshrl.u32 %v5116_v8, 16  ;;  %v2482_v15 = vsel %vm2470_vm8, %v5161_v32, %v5172_v9 }
 0x41b   :  { %v2481_v23 = vsel %vm2471_vm12, %v2478_v42, %v2480_v17  ;;  %v5212_v63 = vmul.f32 %v5209_v29, %v2829_v43  ;;  %v2484_v40 = vsel %vm2472_vm15, %v2466_v16, %v2483_v37  ;;  %v2487_v0 = vand.u32 65535, %v5186_v39 }
 0x41c   :  { %v2511_v52 = vand.u32 65535, %v2481_v23  ;;  %v2512_v59 = vshrl.u32 %v2481_v23, 16  ;;  %v1370_v24 = vsub.s32 4294967266, %v5169_v10  ;;  %v5218_v61 = vshrl.u32 %v1749_v1, 30 }
 0x41d   :  { %7018 = vst [vmem:[#allocation42_spill] sm:$0xff] %v5212_v63  ;;  %v2080_v3 = vsel %vm2076_vm2, %v2060_v34, %v4993_v28  ;;  %v5223_v41 = vadd.s32 %v2113_v50, %v2104_v51  ;;  %v2136_v45 = vadd.s32 %v2135_v27, %v2126_v25  ;;  %v2485_v6 = vsel %vm2471_vm12, %v2482_v15, %v2484_v40 }
 0x41e   :  { %7019 = vst [vmem:[#allocation43_spill] sm:$0xff] %v5218_v61  ;;  %v2488_v16 = vshrl.u32 %v5186_v39, 16  ;;  %v5228_v42 = vmul.u32 %v2512_v59, %v2487_v0  ;;  %v2082_v18 = vsel %vm2078_vm4, %v4995_v5, %v2081_v22  ;;  %v2489_v1 = vand.u32 65535, %v2485_v6 }
 0x41f   :  { %v2490_v43 = vshrl.u32 %v2485_v6, 16  ;;  %v2835_v17 = vand.u32 2139095040, %v5212_v63  ;;  %v1366_v28 = vsub.s32 32, %v5169_v10  ;;  %v7020_v34 = vshll.u32 %v5116_v8, 16 }
 0x420   :  { %v5240_v50 = vmul.u32 %v2511_v52, %v2488_v16  ;;  %v2517_v27 = vshll.u32 %v5228_v42, 16  ;;  %v1371_v37 = vadd.s32 127, %v1370_v24  ;;  %v1751_v25 = vshll.u32 %v5218_v61, 30 }
 0x421   :  { %v5238_v51 = vadd.s32 %v5123_v33, %v7020_v34  ;;  %v2492_v23 = vmul.u32 %v2490_v43, %v2487_v0  ;;  %v5244_v5 = vmul.u32 %v2489_v1, %v2488_v16  ;;  %v2083_v22 = vsel %vm2077_vm0, %v2080_v3, %v2082_v18  ;;  %v7021_v18 = vld [vmem:[#allocation23_spill] sm:$0xff] }
 0x422   :  { %v2140_v8 = vadd.s32 1, %v2136_v45  ;;  %v2513_v15 = vmul.u32 %v2511_v52, %v2487_v0  ;;  %v2491_v33 = vmul.u32 %v2489_v1, %v2487_v0  ;;  %v2516_v6 = vmul.u32 %v2512_v59, %v2488_v16 }
 0x423   :  { %vm2139_vm6 = vc.u32 %v5223_v41, %v5238_v51  ;;  %v2495_v40 = vshll.u32 %v2492_v23, 16  ;;  %v2836_v34 = vshrl.u32 %v2835_v17, 23  ;;  %v2494_v21 = vmul.u32 %v2490_v43, %v2488_v16 }
 0x424   :  { %v2519_v24 = vshll.u32 %v5240_v50, 16  ;;  %vm2521_vm2 = vc.u32 %v2513_v15, %v2517_v27  ;;  %v5251_v61 = vadd.s32 %v2517_v27, %v2513_v15  ;;  %v2497_v12 = vshll.u32 %v5244_v5, 16  ;;  %v5288_v15 = vld [vmem:[%s6736_s9 + $0x18] sm:$0xff] }
 0x425   :  { %vm2499_vm4 = vc.u32 %v2491_v33, %v2495_v40  ;;  %v2501_v13 = vadd.s32 %v2495_v40, %v2491_v33  ;;  %v2522_v3 = vsel %vm2521_vm2, 1, %v6899_v30  ;;  %vm470_vm0 = vcmp.lt.s32.totalorder %v7021_v18, 0  ;;  %7023 = vst [vmem:[#allocation23_spill] sm:$0xff] %v5288_v15  ;;  %419 = vmatpush.bf16.msrb.mxu2 %v5288_v15  ;;  %630 = vmatpush.bf16.msrb.mxu0 %v5288_v15 }
 0x426   :  { %v1350_v0 = vadd.s32 %v4863_v44, %v4835_v47  ;;  %v5259_v52 = vsub.s32 %v5139_v11, %v1751_v25  ;;  %v2141_v59 = vsel %vm2139_vm6, %v2140_v8, %v2136_v45  ;;  %v2500_v16 = vsel %vm2499_vm4, 1, %v6899_v30 }
 0x427   :  { %v2502_v1 = vadd.s32 %v2500_v16, %v2494_v21  ;;  %vm2503_vm7 = vc.u32 %v2501_v13, %v2497_v12  ;;  %v2524_v43 = vadd.s32 %v2522_v3, %v2516_v6  ;;  %vm2525_vm3 = vc.u32 %v5251_v61, %v2519_v24 }
 0x428   :  { %v1368_v17 = vshrl.u32 %v1350_v0, %v1366_v28  ;;  %v2137_v27 = vmul.u32 %v5048_v26, %v2083_v22  ;;  %v2504_v47 = vsel %vm2503_vm7, 1, %v6899_v30  ;;  %v2526_v44 = vsel %vm2525_vm3, 1, %v6899_v30 }
 0x429   :  { %v7022_v11 = vsub.s32 4, %v7013_v53  ;;  %v1372_v21 = vshll.u32 %v1371_v37, 23  ;;  %v3356_v25 = vadd.s32 4294967169, %v2836_v34  ;;  %v590_v8 = vxor.u32 2147483648, %v5166_v36 }
 0x42a   :  { %v1367_v26 = vshll.u32 %v5052_v7, %v5169_v10  ;;  %v1754_v28 = vsub.s32 0, %v5259_v52  ;;  %v5283_v22 = vadd.s32 %v2141_v59, %v2137_v27  ;;  %v2528_v33 = vadd.s32 %v2526_v44, %v2524_v43  ;;  %v5313_v59 = vld [vmem:[%s6736_s9 + $0x10] sm:$0xff] }
 0x42b   :  { %v5276_v45 = vsel %vm231_vm11, %v7022_v11, %v7013_v53  ;;  %vm1753_vm11 = vcmp.lt.s32.totalorder %v5259_v52, 0  ;;  %v2506_v53 = vadd.s32 %v2504_v47, %v2502_v1  ;;  %v2842_v37 = vadd.s32 1, %v3356_v25  ;;  %7026 = vst [vmem:[#allocation45_spill] sm:$0xff] %v5313_v59  ;;  %420 = vmatpush.bf16.msrb.mxu2 %v5313_v59  ;;  %631 = vmatpush.bf16.msrb.mxu0 %v5313_v59 }
 0x42c   :  { %v5293_v40 = vmul.f32 %v5060_v60, %v4773_v2  ;;  %vm2252_vm1 = vcmp.gt.s32.totalorder %v5073_v49, 0  ;;  %v7024_v7 = vor.u32 8388608, %v5038_v48  ;;  %v5300_v6 = vor.u32 %v1368_v17, %v1367_v26 }
 0x42d   :  { %v5304_v34 = vor.u32 4788187, %v1372_v21  ;;  %v2496_v13 = vshrl.u32 %v2492_v23, 16  ;;  %v2518_v3 = vshrl.u32 %v5228_v42, 16  ;;  %vm2843_vm14 = vcmp.gt.s32.totalorder %v2842_v37, 0 }
 0x42e   :  { %v5298_v10 = vshll.u32 %v7024_v7, 8  ;;  %v1755_v2 = vsel %vm1753_vm11, %v1754_v28, %v5259_v52  ;;  %v2143_v60 = vadd.s32 536870912, %v5283_v22  ;;  %v6854_v48 = vand.u32 2147483647, %v5212_v63 }
 0x42f   :  { %v2844_v0 = vsel %vm2843_vm14, %v2842_v37, 0  ;;  %v591_v16 = vsel %vm470_vm0, %v590_v8, %v5166_v36  ;;  %v5319_v23 = vsel %vm2252_vm1, %v5073_v49, 0  ;;  %v2507_v42 = vadd.s32 %v2506_v53, %v2496_v13 }
 0x430   :  { %7025 = vst [vmem:[#allocation44_spill] sm:$0xff] %v5298_v10  ;;  %v2529_v1 = vadd.s32 %v2528_v33, %v2518_v3  ;;  %v1376_v43 = vcvt.s32.f32 %v5300_v6  ;;  %v2454_v17 = vshrl.u32 %v6917_v38, %v5142_v46  ;;  %v2475_v27 = vsel %vm2473_vm9, %v5172_v9, 2102212464 }
 0x431   :  { %v2846_v47 = vand.u32 31, %v2844_v0  ;;  %v1374_v36 = vand.u32 2147483647, %v5304_v34  ;;  %v1756_v49 = vclz %v1755_v2  ;;  %v2498_v44 = vshrl.u32 %v5244_v5, 16  ;;  %v5350_v5 = vld [vmem:[%s6736_s9 + $0x8] sm:$0xff] }
 0x432   :  { %v2520_v11 = vshrl.u32 %v5240_v50, 16  ;;  %v7027_v21 = vand.u32 2147483647, %v7021_v18  ;;  %v7028_v46 = vmov 0  ;;  %v5338_v25 = vshrl.u32 %v2143_v60, 30  ;;  %7032 = vst [vmem:[#allocation48_spill] sm:$0xff] %v5350_v5  ;;  %421 = vmatpush.bf16.msrb.mxu2 %v5350_v5  ;;  %632 = vmatpush.bf16.msrb.mxu0 %v5350_v5 }
 0x433   :  { %v2474_v9 = vsel %vm2470_vm8, %v2454_v17, %v5159_v20  ;;  %v2839_v8 = vand.u32 8388607, %v6854_v48  ;;  %v5345_v26 = vsub.s32 32, %v2846_v47  ;;  %v2476_v28 = vsel %vm2472_vm15, %v5161_v32, %v2475_v27  ;;  %v5385_v17 = vld [vmem:[%s6736_s9] sm:$0xff] }
 0x434   :  { %vm5334_vm5 = vcmp.le.f32.partialorder %v7027_v21, 0.7853982  ;;  %7031 = vst [vmem:[#allocation47_spill] sm:$0xff] %v5338_v25  ;;  %v5355_v53 = vadd.s32 %v2507_v42, %v2498_v44  ;;  %v2530_v33 = vadd.s32 %v2529_v1, %v2520_v11  ;;  %v2849_v37 = vshll.u32 %v6917_v38, %v2846_v47 }
 0x435   :  { %v7029_v46 = vsel %vm5334_vm5, 4294967295, %v7028_v46  ;;  %v5358_v20 = vshrl.u32 %v2844_v0, 5  ;;  %v2850_v7 = vshrl.u32 %v6989_v4, %v5345_v26  ;;  %v2852_v6 = vshll.u32 %v6989_v4, %v2846_v47  ;;  %7035 = vst [vmem:[#allocation51_spill] sm:$0xff] %v5385_v17 }
 0x436   :  { %7030 = vst [vmem:[#allocation46_spill] sm:$0xff] %v7029_v46  ;;  %v2855_v34 = vshll.u32 %v6990_v54, %v2846_v47  ;;  %v2853_v32 = vshrl.u32 %v6990_v54, %v5345_v26  ;;  %v2856_v13 = vshrl.u32 %v6945_v55, %v5345_v26  ;;  %v2858_v3 = vshll.u32 %v6945_v55, %v2846_v47 }
 0x437   :  { %7033 = vst [vmem:[#allocation49_spill] sm:$0xff] %v5355_v53  ;;  %v2859_v2 = vshrl.u32 %v6944_v35, %v5345_v26  ;;  %v5376_v60 = vadd.s32 %v5251_v61, %v2519_v24  ;;  %v2840_v0 = vor.u32 8388608, %v2839_v8  ;;  %v5378_v42 = vor.u32 %v2850_v7, %v2849_v37  ;;  %422 = vmatpush.bf16.msrb.mxu2 %v5385_v17 }
 0x438   :  { %v2862_v1 = vshrl.u32 %v6942_v56, %v5345_v26  ;;  %v5387_v27 = vor.u32 %v2853_v32, %v2852_v6  ;;  %v5389_v44 = vor.u32 %v2856_v13, %v2855_v34  ;;  %v2861_v50 = vshll.u32 %v6944_v35, %v2846_v47  ;;  %633 = vmatpush.bf16.msrb.mxu0 %v5385_v17  ;;  %v2632_v32 = vpop.permute.xlu2 %2631 }
 0x439   :  { %7034 = vst [vmem:[#allocation50_spill] sm:$0xff] %v5376_v60  ;;  %v2860_v11 = vor.u32 %v2859_v2, %v2858_v3  ;;  %v3327_v61 = vadd.s32 4294967294, %v1756_v49  ;;  %v2145_v24 = vshll.u32 %v5338_v25, 30  ;;  %v2534_v21 = vadd.s32 1, %v2530_v33 }
 0x43a   :  { %vm2867_vm13 = vcmp.lt.s32.totalorder %v5358_v20, 4  ;;  %vm2533_vm8 = vc.u32 %v5355_v53, %v5376_v60  ;;  %v2863_v8 = vor.u32 %v2862_v1, %v2861_v50  ;;  %vm2864_vm9 = vcmp.lt.s32.totalorder %v5358_v20, 1 }
 0x43b   :  { %v2873_v37 = vsel %vm2867_vm13, %v2860_v11, 920167782  ;;  %1024 = vmatpush.bf16.msra.mxu2 %v5288_v15  ;;  %v5403_v47 = vshrl.u32 %v5319_v23, 5  ;;  %v2477_v49 = vsel %vm2471_vm12, %v2474_v9, %v2476_v28  ;;  %vm2866_vm15 = vcmp.lt.s32.totalorder %v5358_v20, 3 }
 0x43c   :  { %v2872_v7 = vsel %vm2864_vm9, %v5378_v42, %v5387_v27  ;;  %v5415_v6 = vsel %vm5334_vm5, %v7021_v18, %v591_v16  ;;  %v1377_v34 = vmul.f32 %v1376_v43, %v1374_v36  ;;  %v2874_v13 = vsel %vm2866_vm15, %v5389_v44, %v2873_v37 }
 0x43d   :  { %v5420_v57 = vshll.u32 %v2840_v0, 8  ;;  %vm1258_vm12 = vcmp.lt.s32.totalorder %v4313_v19, 0  ;;  %vm3328_vm6 = vcmp.lt.s32.totalorder %v3327_v61, 0  ;;  %v2535_v9 = vsel %vm2533_vm8, %v2534_v21, %v2530_v33 }
 0x43e   :  { %vm2865_vm2 = vcmp.lt.s32.totalorder %v5358_v20, 2  ;;  %v2876_v16 = vsel %vm2864_vm9, %v5387_v27, %v5389_v44  ;;  %v5432_v43 = vsub.s32 %v5283_v22, %v2145_v24  ;;  %v2531_v36 = vmul.u32 %v5186_v39, %v2477_v49 }
 0x43f   :  { %v2875_v28 = vsel %vm2865_vm2, %v2872_v7, %v2874_v13  ;;  %v2877_v3 = vsel %vm2867_vm13, %v2863_v8, 1326507024  ;;  %1025 = vmatpush.bf16.msra.mxu2 %v5313_v59  ;;  %v5442_v33 = vmul.f32 %v5415_v6, %v5415_v6  ;;  %v5445_v2 = vand.u32 31, %v5319_v23 }
 0x440   :  { %v5448_v22 = vmul.f32 %v5209_v29, %v2632_v32  ;;  %v2878_v39 = vsel %vm2866_vm15, %v2860_v11, %v2877_v3  ;;  %v5452_v0 = vadd.s32 %v2535_v9, %v2531_v36  ;;  %v2881_v50 = vand.u32 65535, %v5420_v57 }
 0x441   :  { %v2879_v1 = vsel %vm2865_vm2, %v2876_v16, %v2878_v39  ;;  %v2906_v24 = vshrl.u32 %v2875_v28, 16  ;;  %v5458_v21 = vsel %vm3328_vm6, 0, %v3327_v61  ;;  %v2882_v23 = vshrl.u32 %v5420_v57, 16 }
 0x442   :  { %7036 = vst [vmem:[#allocation52_spill] sm:$0xff] %v5448_v22  ;;  %v2883_v8 = vand.u32 65535, %v2879_v1  ;;  %v2884_v37 = vshrl.u32 %v2879_v1, 16  ;;  %v1378_v29 = vxor.u32 2147483648, %v1377_v34  ;;  %v2148_v49 = vsub.s32 0, %v5432_v43 }
 0x443   :  { %v2905_v7 = vand.u32 65535, %v2875_v28  ;;  %v5462_v11 = vmul.u32 %v2906_v24, %v2881_v50  ;;  %1026 = vmatpush.bf16.msra.mxu2 %v5350_v5  ;;  %v5466_v32 = vsub.s32 32, %v5445_v2  ;;  %v7037_v13 = vand.u32 2147483647, %v4313_v19 }
 0x444   :  { %vm2147_vm7 = vcmp.lt.s32.totalorder %v5432_v43, 0  ;;  %v2886_v9 = vmul.u32 %v2884_v37, %v2881_v50  ;;  %v2887_v16 = vmul.u32 %v2883_v8, %v2882_v23  ;;  %v5477_v36 = vshll.u32 %v6917_v38, %v5445_v2 }
 0x445   :  { %vm5470_vm4 = vcmp.le.f32.partialorder %v7037_v13, 0.7853982  ;;  %v5481_v28 = vshll.u32 %v6989_v4, %v5445_v2  ;;  %v1764_v3 = vsub.s32 4294967266, %v5458_v21  ;;  %v2537_v39 = vadd.s32 536870912, %v5452_v0 }
 0x446   :  { %v604_v1 = vmul.f32 -0.00019511016, %v5442_v33  ;;  %v2885_v13 = vmul.u32 %v2883_v8, %v2881_v50  ;;  %v2889_v12 = vshll.u32 %v2886_v9, 16  ;;  %v2911_v48 = vshll.u32 %v5462_v11, 16 }
 0x447   :  { %v1379_v14 = vsel %vm1258_vm12, %v1378_v29, %v1377_v34  ;;  %v2149_v63 = vsel %vm2147_vm7, %v2148_v49, %v5432_v43  ;;  %v2907_v25 = vmul.u32 %v2905_v7, %v2881_v50  ;;  %v2909_v10 = vmul.u32 %v2905_v7, %v2882_v23  ;;  %1027 = vmatpush.bf16.msra.mxu2 %v5385_v17 }
 0x448   :  { %v2888_v22 = vmul.u32 %v2884_v37, %v2882_v23  ;;  %v2891_v5 = vshll.u32 %v2887_v16, 16  ;;  %vm2893_vm3 = vc.u32 %v2885_v13, %v2889_v12  ;;  %v2895_v59 = vadd.s32 %v2889_v12, %v2885_v13 }
 0x449   :  { %v1760_v60 = vsub.s32 32, %v5458_v21  ;;  %v1765_v53 = vadd.s32 127, %v1764_v3  ;;  %v5492_v8 = vshrl.u32 %v2537_v39, 30  ;;  %v2894_v15 = vsel %vm2893_vm3, 1, %v6899_v30  ;;  %v150_v39 = vpop.xlane.xlu0 %149 }
 0x44a   :  { %v2896_v58 = vadd.s32 %v2894_v15, %v2888_v22  ;;  %vm2897_vm11 = vc.u32 %v2895_v59, %v2891_v5  ;;  %v2910_v34 = vmul.u32 %v2906_v24, %v2882_v23  ;;  %vm2915_vm1 = vc.u32 %v2907_v25, %v2911_v48 }
 0x44b   :  { %v2150_v29 = vclz %v2149_v63  ;;  %v2890_v50 = vshrl.u32 %v2886_v9, 16  ;;  %v2898_v49 = vsel %vm2897_vm11, 1, %v6899_v30  ;;  %v2916_v37 = vsel %vm2915_vm1, 1, %v6899_v30 }
 0x44c   :  { %v2900_v7 = vadd.s32 %v2898_v49, %v2896_v58  ;;  %v2913_v17 = vshll.u32 %v2909_v10, 16  ;;  %v2917_v12 = vadd.s32 %v2911_v48, %v2907_v25  ;;  %v2918_v13 = vadd.s32 %v2916_v37, %v2910_v34  ;;  %v7040_v58 = vld [vmem:[#allocation37_spill] sm:$0xff] }
 0x44d   :  { %v605_v46 = vadd.f32 0.008332121, %v604_v1  ;;  %v5500_v3 = vsel %vm5470_vm4, %v4313_v19, %v1379_v14  ;;  %v1744_v15 = vadd.s32 %v5112_v62, %v5098_v31  ;;  %v2539_v63 = vshll.u32 %v5492_v8, 30 }
 0x44e   :  { %v2869_v59 = vsel %vm2867_vm13, %v5389_v44, 2102212464  ;;  %v2901_v5 = vadd.s32 %v2900_v7, %v2890_v50  ;;  %vm2919_vm14 = vc.u32 %v2917_v12, %v2913_v17  ;;  %v358_v48 = vmul.f32 -0.001358992, %v7040_v58 }
 0x44f   :  { %v1766_v25 = vshll.u32 %v1765_v53, 23  ;;  %v2848_v22 = vshrl.u32 %v6917_v38, %v5345_v26  ;;  %v2892_v24 = vshrl.u32 %v2887_v16, 16  ;;  %v2920_v14 = vsel %vm2919_vm14, 1, %v6899_v30 }
 0x450   :  { %v1762_v23 = vshrl.u32 %v1744_v15, %v1760_v60  ;;  %v3337_v9 = vadd.s32 4294967294, %v2150_v29  ;;  %v2912_v31 = vshrl.u32 %v5462_v11, 16  ;;  %v2922_v62 = vadd.s32 %v2920_v14, %v2918_v13 }
 0x451   :  { %v5514_v1 = vsub.s32 %v5452_v0, %v2539_v63  ;;  %v2868_v44 = vsel %vm2864_vm9, %v2848_v22, %v5378_v42  ;;  %v2870_v26 = vsel %vm2866_vm15, %v5387_v27, %v2869_v59  ;;  %v5522_v53 = vadd.s32 %v2901_v5, %v2892_v24 }
 0x452   :  { %v5526_v60 = vshll.u32 %v6990_v54, %v5445_v2  ;;  %v2914_v11 = vshrl.u32 %v2909_v10, 16  ;;  %v2923_v16 = vadd.s32 %v2922_v62, %v2912_v31  ;;  %v359_v34 = vadd.f32 0.041655596, %v358_v48 }
 0x453   :  { %v606_v0 = vmul.f32 %v605_v46, %v5442_v33  ;;  %v1761_v29 = vshll.u32 %v5259_v52, %v5458_v21  ;;  %v1767_v50 = vor.u32 4788187, %v1766_v25  ;;  %v5531_v42 = vadd.s32 %v2917_v12, %v2913_v17  ;;  %v3418_v46 = vld [vmem:[%s6734_s7] ss:$0 sm:$0xff] }
 0x454   :  { %v5535_v27 = vmul.f32 %v5500_v3, %v5500_v3  ;;  %v151_v49 = vsub.f32 0.0, %v150_v39  ;;  %v2871_v37 = vsel %vm2865_vm2, %v2868_v44, %v2870_v26  ;;  %v2924_v7 = vadd.s32 %v2923_v16, %v2914_v11  ;;  %v7041_v39 = vld [vmem:[#allocation19_spill] sm:$0xff]  ;;  %v179_v16 = vpop.f32.mrf.mxu2 }
 0x455   :  { %v1763_v10 = vor.u32 %v1762_v23, %v1761_v29  ;;  %vm3338_vm13 = vcmp.lt.s32.totalorder %v3337_v9, 0  ;;  %v2542_v52 = vsub.s32 0, %v5514_v1  ;;  %vm2927_vm8 = vc.u32 %v5522_v53, %v5531_v42 }
 0x456   :  { %v2267_v17 = vshll.u32 %v6945_v55, %v5445_v2  ;;  %vm2541_vm9 = vcmp.lt.s32.totalorder %v5514_v1, 0  ;;  %v2928_v21 = vadd.s32 1, %v2924_v7  ;;  %v360_v20 = vmul.f32 %v359_v34, %v7040_v58  ;;  %v7042_v34 = vld [vmem:[#allocation34_spill] sm:$0xff] }
 0x457   :  { %v2268_v12 = vshrl.u32 %v6944_v35, %v5466_v32  ;;  %v2270_v13 = vshll.u32 %v6944_v35, %v5445_v2  ;;  %v1768_v15 = vand.u32 2147483647, %v1767_v50  ;;  %v2925_v63 = vmul.u32 %v5420_v57, %v2871_v37 }
 0x458   :  { %v607_v59 = vadd.f32 -0.16666654, %v606_v0  ;;  %v1392_v5 = vmul.f32 -0.00019511016, %v5535_v27  ;;  %v5555_v48 = vsel %vm3338_vm13, 0, %v3337_v9  ;;  %v2929_v25 = vsel %vm2927_vm8, %v2928_v21, %v2924_v7 }
 0x459   :  { %v1770_v22 = vcvt.s32.f32 %v1763_v10  ;;  %v157_v24 = vmul.f32 %v3418_v46, %v151_v49  ;;  %v2543_v14 = vsel %vm2541_vm9, %v2542_v52, %v5514_v1  ;;  %v2930_v23 = vadd.s32 %v2929_v25, %v2925_v63 }
 0x45a   :  { %v2259_v31 = vshrl.u32 %v6989_v4, %v5466_v32  ;;  %v2262_v2 = vshrl.u32 %v6990_v54, %v5466_v32  ;;  %v361_v62 = vadd.f32 -0.4999988, %v360_v20  ;;  %v991_v57 = vmul.f32 -0.001358992, %v7041_v39 }
 0x45b   :  { %v2271_v44 = vshrl.u32 %v6942_v56, %v5466_v32  ;;  %v1771_v9 = vmul.f32 %v1770_v22, %v1768_v15  ;;  %v2158_v26 = vsub.s32 4294967266, %v5555_v48  ;;  %v2931_v11 = vadd.s32 536870912, %v2930_v23  ;;  %v7045_v22 = vld [vmem:[#allocation31_spill] sm:$0xff] }
 0x45c   :  { %v592_v0 = vsub.s32 4, %v7042_v34  ;;  %v608_v29 = vmul.f32 %v607_v59, %v5442_v33  ;;  %v2265_v50 = vshrl.u32 %v6945_v55, %v5466_v32  ;;  %v2544_v49 = vclz %v2543_v14 }
 0x45d   :  { %v5570_v37 = vor.u32 %v2268_v12, %v2267_v17  ;;  %v1393_v7 = vadd.f32 0.008332121, %v1392_v5  ;;  %v180_v10 = vadd.f32 %v179_v16, %v157_v24  ;;  %v5572_v46 = vshrl.u32 %v2931_v11, 30  ;;  %v7051_v24 = vld [vmem:[#allocation14_spill] sm:$0xff] }
 0x45e   :  { %v5575_v52 = vor.u32 %v2259_v31, %v5477_v36  ;;  %v5578_v21 = vor.u32 %v2262_v2, %v5481_v28  ;;  %v362_v20 = vmul.f32 %v361_v62, %v7040_v58  ;;  %v992_v15 = vadd.f32 0.041655596, %v991_v57 }
 0x45f   :  { %7043 = vst [vmem:[#allocation37_spill] sm:$0xff] %v5572_v46  ;;  %v2272_v63 = vor.u32 %v2271_v44, %v2270_v13  ;;  %vm2276_vm15 = vcmp.lt.s32.totalorder %v5403_v47, 4  ;;  %v1772_v59 = vxor.u32 2147483648, %v1771_v9  ;;  %v2159_v25 = vadd.s32 127, %v2158_v26 }
 0x460   :  { %7044 = vst [vmem:[#allocation19_spill] sm:$0xff] %v5578_v21  ;;  %v609_v17 = vadd.f32 1.0, %v608_v29  ;;  %v3347_v12 = vadd.s32 4294967294, %v2544_v49  ;;  %v2933_v5 = vshll.u32 %v5572_v46, 30  ;;  %vm182_vm6 = vcmask 140288  }
 0x461   :  { %v593_v36 = vsel %vm470_vm0, %v592_v0, %v7042_v34  ;;  %v5587_v28 = vor.u32 %v2265_v50, %v5526_v60  ;;  %v5592_v58 = vsel %vm2276_vm15, %v5570_v37, 920167782  ;;  %v1394_v13 = vmul.f32 %v1393_v7, %v5535_v27  ;;  %183 = vst.msk [vmem:[#allocation4] sm:$0x3] %vm182_vm6, %v180_v10 }
 0x462   :  { %vm1652_vm2 = vcmp.lt.s32.totalorder %v7045_v22, 0  ;;  %v356_v14 = vsel %vm4715_vm10, 0, %v5276_v45  ;;  %v363_v31 = vadd.f32 1.0, %v362_v20  ;;  %v993_v2 = vmul.f32 %v992_v15, %v7041_v39 }
 0x463   :  { %v5602_v60 = vsel %vm2276_vm15, %v2272_v63, 1326507024  ;;  %v1773_v62 = vsel %vm1652_vm2, %v1772_v59, %v1771_v9  ;;  %v2154_v57 = vsub.s32 32, %v5555_v48  ;;  %v2160_v44 = vshll.u32 %v2159_v25, 23 }
 0x464   :  { %v5608_v26 = vmul.f32 %v609_v17, %v5415_v6  ;;  %vm3348_vm0 = vcmp.lt.s32.totalorder %v3347_v12, 0  ;;  %v5610_v11 = vsub.s32 %v2930_v23, %v2933_v5  ;;  %v597_v45 = vmul.f32 -0.001358992, %v5442_v33 }
 0x465   :  { %vm2273_vm10 = vcmp.lt.s32.totalorder %v5403_v47, 1  ;;  %v1395_v16 = vadd.f32 -0.16666654, %v1394_v13  ;;  %v7047_v34 = vand.u32 2147483647, %v7045_v22  ;;  %v2138_v9 = vadd.s32 %v5238_v51, %v5223_v41  ;;  %v7054_v51 = vld [vmem:[#allocation10_spill] sm:$0xff] }
 0x466   :  { %v373_v29 = vand.u32 3, %v356_v14  ;;  %v379_v23 = vxor.u32 2147483648, %v363_v31  ;;  %v598_v50 = vadd.f32 0.041655596, %v597_v45  ;;  %v994_v49 = vadd.f32 -0.4999988, %v993_v2 }
 0x467   :  { %vm5616_vm7 = vcmp.le.f32.partialorder %v7047_v34, 0.7853982  ;;  %v2155_v7 = vshll.u32 %v5432_v43, %v5555_v48  ;;  %v2156_v10 = vshrl.u32 %v2138_v9, %v2154_v57  ;;  %v2161_v20 = vor.u32 4788187, %v2160_v44 }
 0x468   :  { %v5625_v6 = vsel %vm5616_vm7, %v7045_v22, %v1773_v62  ;;  %v5629_v15 = vsel %vm3348_vm0, 0, %v3347_v12  ;;  %v2936_v63 = vsub.s32 0, %v5610_v11  ;;  %v376_v41 = vxor.u32 2147483648, %v5293_v40 }
 0x469   :  { %v595_v59 = vsel %vm5334_vm5, 0, %v593_v36  ;;  %v599_v25 = vmul.f32 %v598_v50, %v5442_v33  ;;  %vm2935_vm3 = vcmp.lt.s32.totalorder %v5610_v11, 0  ;;  %vm374_vm11 = vcmp.lt.s32.totalorder %v373_v29, 2 }
 0x46a   :  { %vm375_vm1 = vcmp.eq.s32.totalorder %v373_v29, 0  ;;  %vm378_vm14 = vcmp.eq.s32.totalorder %v373_v29, 2  ;;  %v995_v12 = vmul.f32 %v994_v49, %v7041_v39  ;;  %v5641_v5 = vmul.f32 %v5625_v6, %v5625_v6  ;;  %v7052_v29 = vld [vmem:[#allocation29_spill] sm:$0xff] }
 0x46b   :  { %v377_v17 = vsel %vm375_vm1, %v363_v31, %v376_v41  ;;  %v380_v43 = vsel %vm378_vm14, %v379_v23, %v5293_v40  ;;  %v600_v48 = vadd.f32 -0.4999988, %v599_v25  ;;  %v2157_v13 = vor.u32 %v2156_v10, %v2155_v7 }
 0x46c   :  { %vm372_vm5 = vweird.f32 %v7051_v24  ;;  %v381_v36 = vsel %vm374_vm11, %v377_v17, %v380_v43  ;;  %v2552_v14 = vsub.s32 4294967266, %v5629_v15  ;;  %v2937_v2 = vsel %vm2935_vm3, %v2936_v63, %v5610_v11  ;;  %v7053_v63 = vld [vmem:[#allocation23_spill] sm:$0xff]  ;;  %v7056_v24 = vld [vmem:[#allocation49_spill] sm:$0xff] }
 0x46d   :  { %v382_v62 = vsel %vm372_vm5, nan, %v381_v36  ;;  %v612_v57 = vand.u32 3, %v595_v59  ;;  %vm411_vm13 = vcmask 523264   ;;  %v601_v40 = vmul.f32 %v600_v48, %v5442_v33  ;;  %v7057_v36 = vld [vmem:[#allocation50_spill] sm:$0xff] }
 0x46e   :  { %v383_v31 = vpack.c.bf16 %v382_v62, %v382_v62  ;;  %v615_v39 = vxor.u32 2147483648, %v5608_v26  ;;  %vm2275_vm8 = vcmp.lt.s32.totalorder %v5403_v47, 3  ;;  %v2281_v44 = vsel %vm2273_vm10, %v5575_v52, %v5578_v21 }
 0x46f   :  { %v2162_v45 = vand.u32 2147483647, %v2161_v20  ;;  %v996_v34 = vadd.f32 1.0, %v995_v12  ;;  %v1385_v9 = vmul.f32 -0.001358992, %v5535_v27  ;;  %v1380_v23 = vsub.s32 4, %v7052_v29 }
 0x470   :  { %v1396_v50 = vmul.f32 %v1395_v16, %v5535_v27  ;;  %v1786_v49 = vmul.f32 -0.00019511016, %v5641_v5  ;;  %3286 = vmatmul.msk.bf16.vlgmr.msrb.gmra.mxu2 %vm411_vm13, %v383_v31  ;;  %v602_v33 = vadd.f32 1.0, %v601_v40  ;;  %v2164_v7 = vcvt.s32.f32 %v2157_v13  ;;  %v7055_v13 = vld [vmem:[#allocation25_spill] sm:$0xff] }
 0x471   :  { %v2938_v10 = vclz %v2937_v2  ;;  %vm614_vm9 = vcmp.eq.s32.totalorder %v612_v57, 0  ;;  %1418 = vmatpush.bf16.msrb.mxu2 %v7053_v63  ;;  %v1386_v41 = vadd.f32 0.041655596, %v1385_v9  ;;  %vm1005_vm6 = vweird.f32 %v7054_v51  ;;  %v7058_v31 = vld [vmem:[#allocation33_spill] sm:$0xff] }
 0x472   :  { %v2553_v20 = vadd.s32 127, %v2552_v14  ;;  %vm611_vm0 = vweird.f32 %v7021_v18  ;;  %v616_v59 = vsel %vm614_vm9, %v602_v33, %v615_v39  ;;  %v618_v25 = vxor.u32 2147483648, %v602_v33 }
 0x473   :  { %vm2274_vm3 = vcmp.lt.s32.totalorder %v5403_v47, 2  ;;  %v2165_v16 = vmul.f32 %v2164_v7, %v2162_v45  ;;  %vm617_vm11 = vcmp.eq.s32.totalorder %v612_v57, 2  ;;  %v1012_v17 = vxor.u32 2147483648, %v996_v34  ;;  %v7060_v45 = vld [vmem:[#allocation45_spill] sm:$0xff] }
 0x474   :  { %v1387_v43 = vmul.f32 %v1386_v41, %v5535_v27  ;;  %v2548_v48 = vsub.s32 32, %v5629_v15  ;;  %vm613_vm1 = vcmp.lt.s32.totalorder %v612_v57, 2  ;;  %v619_v12 = vsel %vm617_vm11, %v618_v25, %v5608_v26 }
 0x475   :  { %vm1008_vm14 = vcmp.eq.s32.totalorder %v7055_v13, 0  ;;  %v2532_v14 = vadd.s32 %v7057_v36, %v7056_v24  ;;  %v3357_v2 = vadd.s32 4294967294, %v2938_v10  ;;  %v620_v62 = vsel %vm613_vm1, %v616_v59, %v619_v12  ;;  %1419 = vmatpush.bf16.msrb.mxu2 %v7060_v45  ;;  %v7062_v12 = vld [vmem:[#allocation38_spill] sm:$0xff] }
 0x476   :  { %v7059_v40 = vxor.u32 2147483648, %v7058_v31  ;;  %v2554_v9 = vshll.u32 %v2553_v20, 23  ;;  %v621_v33 = vsel %vm611_vm0, nan, %v620_v62  ;;  %vm1007_vm5 = vcmp.lt.s32.totalorder %v7055_v13, 2 }
 0x477   :  { %vm1011_vm9 = vcmp.eq.s32.totalorder %v7055_v13, 2  ;;  %v2166_v26 = vxor.u32 2147483648, %v2165_v16  ;;  %v622_v57 = vpack.c.bf16 %v621_v33, %v621_v33  ;;  %v1388_v41 = vadd.f32 -0.4999988, %v1387_v43  ;;  %v7061_v43 = vld [vmem:[#allocation48_spill] sm:$0xff] }
 0x478   :  { %v1010_v39 = vsel %vm1008_vm14, %v996_v34, %v7059_v40  ;;  %v1013_v7 = vsel %vm1011_vm9, %v1012_v17, %v7058_v31  ;;  %v2283_v34 = vsel %vm2275_vm8, %v5587_v28, %v5592_v58  ;;  %v2285_v18 = vsel %vm2273_vm10, %v5578_v21, %v5587_v28  ;;  %v7071_v21 = vld [vmem:[#allocation41_spill] sm:$0xff] }
 0x479   :  { %v2550_v10 = vshrl.u32 %v2532_v14, %v2548_v48  ;;  %v1014_v20 = vsel %vm1007_vm5, %v1010_v39, %v1013_v7  ;;  %v2287_v59 = vsel %vm2275_vm8, %v5570_v37, %v5602_v60  ;;  %v1397_v25 = vadd.f32 1.0, %v1396_v50  ;;  %3299 = vmatmul.msk.bf16.vlgmr.msrb.gmra.mxu0 %vm411_vm13, %v622_v57  ;;  %1420 = vmatpush.bf16.msrb.mxu2 %v7061_v43  ;;  %v7067_v14 = vld [vmem:[#allocation52_spill] sm:$0xff] }
 0x47a   :  { %v1787_v17 = vadd.f32 0.008332121, %v1786_v49  ;;  %vm3358_vm0 = vcmp.lt.s32.totalorder %v3357_v2, 0  ;;  %v1381_v58 = vsel %vm1258_vm12, %v1380_v23, %v7052_v29  ;;  %vm2046_vm11 = vcmp.lt.s32.totalorder %v7062_v12, 0 }
 0x47b   :  { %v2549_v48 = vshll.u32 %v5514_v1, %v5629_v15  ;;  %v2555_v13 = vor.u32 4788187, %v2554_v9  ;;  %v2167_v37 = vsel %vm2046_vm11, %v2166_v26, %v2165_v16  ;;  %v1015_v60 = vsel %vm1005_vm6, nan, %v1014_v20 }
 0x47c   :  { %v1389_v50 = vmul.f32 %v1388_v41, %v5535_v27  ;;  %v1779_v49 = vmul.f32 -0.001358992, %v5641_v5  ;;  %v5704_v24 = vsel %vm2274_vm3, %v2281_v44, %v2283_v34  ;;  %v5708_v29 = vsel %vm2274_vm3, %v2285_v18, %v2287_v59  ;;  %v7066_v44 = vld [vmem:[#allocation51_spill] sm:$0xff] }
 0x47d   :  { %v2551_v1 = vor.u32 %v2550_v10, %v2549_v48  ;;  %v5710_v15 = vsel %vm3358_vm0, 0, %v3357_v2  ;;  %v1383_v23 = vsel %vm5470_vm4, 0, %v1381_v58  ;;  %v1398_v51 = vmul.f32 %v1397_v25, %v5500_v3  ;;  %1421 = vmatpush.bf16.msrb.mxu2 %v7066_v44  ;;  %v7068_v3 = vld [vmem:[#allocation44_spill] sm:$0xff] }
 0x47e   :  { %v1788_v27 = vmul.f32 %v1787_v17, %v5641_v5  ;;  %v7063_v16 = vand.u32 2147483647, %v7062_v12  ;;  %v2638_v62 = vand.u32 2139095040, %v7067_v14  ;;  %v2556_v61 = vand.u32 2147483647, %v2555_v13 }
 0x47f   :  { %v1016_v31 = vpack.c.bf16 %v1015_v60, %v1015_v60  ;;  %v2290_v40 = vand.u32 65535, %v7068_v3  ;;  %v2946_v39 = vsub.s32 4294967266, %v5710_v15  ;;  %v1390_v9 = vadd.f32 1.0, %v1389_v50 }
 0x480   :  { %vm5718_vm12 = vcmp.le.f32.partialorder %v7063_v16, 0.7853982  ;;  %v1780_v33 = vadd.f32 0.041655596, %v1779_v49  ;;  %v6875_v26 = vshrl.u32 %v5708_v29, 16  ;;  %v2314_v57 = vand.u32 65535, %v5704_v24 }
 0x481   :  { %v5727_v2 = vsel %vm5718_vm12, %v7062_v12, %v2167_v37  ;;  %v1400_v7 = vand.u32 3, %v1383_v23  ;;  %v2558_v41 = vcvt.s32.f32 %v2551_v1  ;;  %3309 = vmatmul.msk.bf16.vlgmr.msra.gmra.mxu2 %vm411_vm13, %v1016_v31  ;;  %v5735_v34 = vshrl.u32 %v7068_v3, 16  ;;  %v7069_v1 = vld [vmem:[#allocation43_spill] sm:$0xff] }
 0x482   :  { %v1403_v18 = vxor.u32 2147483648, %v1398_v51  ;;  %v1789_v10 = vadd.f32 -0.16666654, %v1788_v27  ;;  %v5739_v20 = vmul.f32 %v5727_v2, %v5727_v2  ;;  %1812 = vmatpush.bf16.msra.mxu2 %v7053_v63  ;;  %v5744_v59 = vshrl.u32 %v6917_v38, %v5466_v32 }
 0x483   :  { %vm1399_vm4 = vweird.f32 %v4313_v19  ;;  %v2639_v17 = vshrl.u32 %v2638_v62, 23  ;;  %v2559_v58 = vmul.f32 %v2558_v41, %v2556_v61  ;;  %v2292_v48 = vand.u32 65535, %v5708_v29 }
 0x484   :  { %v2947_v13 = vadd.s32 127, %v2946_v39  ;;  %v1406_v37 = vxor.u32 2147483648, %v1390_v9  ;;  %v1781_v60 = vmul.f32 %v1780_v33, %v5641_v5  ;;  %v5752_v50 = vmul.u32 %v6875_v26, %v2290_v40 }
 0x485   :  { %v2316_v49 = vmul.u32 %v2314_v57, %v2290_v40  ;;  %v1774_v32 = vsub.s32 4, %v7069_v1  ;;  %vm1402_vm6 = vcmp.eq.s32.totalorder %v1400_v7, 0  ;;  %v1790_v23 = vmul.f32 %v1789_v10, %v5641_v5 }
 0x486   :  { %v2180_v27 = vmul.f32 -0.00019511016, %v5739_v20  ;;  %v2942_v16 = vsub.s32 32, %v5710_v15  ;;  %v1404_v62 = vsel %vm1402_vm6, %v1390_v9, %v1403_v18  ;;  %1813 = vmatpush.bf16.msra.mxu2 %v7060_v45  ;;  %v3351_v61 = vadd.s32 4294967169, %v2639_v17 }
 0x487   :  { %v2560_v31 = vxor.u32 2147483648, %v2559_v58  ;;  %v2926_v39 = vadd.s32 %v5531_v42, %v5522_v53  ;;  %vm1405_vm1 = vcmp.eq.s32.totalorder %v1400_v7, 2  ;;  %v2948_v33 = vshll.u32 %v2947_v13, 23 }
 0x488   :  { %vm1401_vm14 = vcmp.lt.s32.totalorder %v1400_v7, 2  ;;  %v1407_v41 = vsel %vm1405_vm1, %v1406_v37, %v1398_v51  ;;  %v1782_v26 = vadd.f32 -0.4999988, %v1781_v60  ;;  %v2298_v25 = vshll.u32 %v5752_v50, 16 }
 0x489   :  { %v7070_v10 = vshrl.u32 %v5704_v24, 16  ;;  %v1775_v9 = vsel %vm1652_vm2, %v1774_v32, %v7069_v1  ;;  %v1408_v18 = vsel %vm1401_vm14, %v1404_v62, %v1407_v41  ;;  %v1791_v17 = vadd.f32 1.0, %v1790_v23 }
 0x48a   :  { %v2181_v46 = vadd.f32 0.008332121, %v2180_v27  ;;  %vm2440_vm5 = vcmp.lt.s32.totalorder %v7071_v21, 0  ;;  %v2944_v53 = vshrl.u32 %v2926_v39, %v2942_v16  ;;  %1814 = vmatpush.bf16.msra.mxu2 %v7061_v43  ;;  %v2294_v42 = vmul.u32 %v2292_v48, %v2290_v40 }
 0x48b   :  { %v5764_v3 = vmul.u32 %v7070_v10, %v2290_v40  ;;  %v2645_v51 = vadd.s32 1, %v3351_v61  ;;  %v2561_v7 = vsel %vm2440_vm5, %v2560_v31, %v2559_v58  ;;  %v2943_v13 = vshll.u32 %v5610_v11, %v5710_v15 }
 0x48c   :  { %v2949_v37 = vor.u32 4788187, %v2948_v33  ;;  %v1409_v60 = vsel %vm1399_vm4, nan, %v1408_v18  ;;  %v1783_v1 = vmul.f32 %v1782_v26, %v5641_v5  ;;  %v2173_v32 = vmul.f32 -0.001358992, %v5739_v20 }
 0x48d   :  { %vm5779_vm2 = vc.u32 %v2294_v42, %v2298_v25  ;;  %v5784_v40 = vmul.u32 %v2314_v57, %v5735_v34  ;;  %v2320_v58 = vshll.u32 %v5764_v3, 16  ;;  %v1777_v11 = vsel %vm5616_vm7, 0, %v1775_v9 }
 0x48e   :  { %v1792_v15 = vmul.f32 %v1791_v17, %v5625_v6  ;;  %v2182_v19 = vmul.f32 %v2181_v46, %v5739_v20  ;;  %v7074_v5 = vand.u32 2147483647, %v7071_v21  ;;  %v2945_v27 = vor.u32 %v2944_v53, %v2943_v13  ;;  %1815 = vmatpush.bf16.msra.mxu2 %v7066_v44 }
 0x48f   :  { %v5799_v57 = vmul.u32 %v2292_v48, %v5735_v34  ;;  %v7077_v0 = vshrl.u32 %v5708_v29, 16  ;;  %v1410_v6 = vpack.c.bf16 %v1409_v60, %v1409_v60  ;;  %vm2646_vm7 = vcmp.gt.s32.totalorder %v2645_v51, 0 }
 0x490   :  { %vm5793_vm9 = vcmp.le.f32.partialorder %v7074_v5, 0.7853982  ;;  %v2950_v62 = vand.u32 2147483647, %v2949_v37  ;;  %v1784_v61 = vadd.f32 1.0, %v1783_v1  ;;  %v2303_v39 = vsel %vm5779_vm2, 1, %v6899_v30  ;;  %v3026_v37 = vpop.permute.xlu2 %3025 }
 0x491   :  { %v2297_v16 = vmul.u32 %v7077_v0, %v5735_v34  ;;  %v5807_v46 = vsel %vm5793_vm9, %v7071_v21, %v2561_v7  ;;  %v2174_v31 = vadd.f32 0.041655596, %v2173_v32  ;;  %v2304_v48 = vadd.s32 %v2298_v25, %v2294_v42  ;;  %3319 = vmatmul.msk.bf16.vlgmr.msrb.gmra.mxu2 %vm411_vm13, %v1410_v6 }
 0x492   :  { %vm5812_vm0 = vc.u32 %v2316_v49, %v2320_v58  ;;  %v1794_v29 = vand.u32 3, %v1777_v11  ;;  %v1797_v41 = vxor.u32 2147483648, %v1792_v15  ;;  %v2183_v10 = vadd.f32 -0.16666654, %v2182_v19  ;;  %2206 = vmatpush.bf16.msrb.mxu2 %v7053_v63  ;;  %v3429_v19 = vld [vmem:[%s6735_s8] ss:$0 sm:$0xff] }
 0x493   :  { %v5819_v9 = vmul.f32 %v5807_v46, %v5807_v46  ;;  %v2952_v18 = vcvt.s32.f32 %v2945_v27  ;;  %v2300_v17 = vshll.u32 %v5799_v57, 16  ;;  %v7080_v25 = vshrl.u32 %v5704_v24, 16  ;;  %v7083_v27 = vld [vmem:[#allocation47_spill] sm:$0xff] }
 0x494   :  { %v5826_v42 = vadd.s32 %v2320_v58, %v2316_v49  ;;  %v2647_v7 = vsel %vm2646_vm7, %v2645_v51, 0  ;;  %v2305_v13 = vadd.s32 %v2303_v39, %v2297_v16  ;;  %v1800_v1 = vxor.u32 2147483648, %v1784_v61 }
 0x495   :  { %v2319_v53 = vmul.u32 %v7080_v25, %v5735_v34  ;;  %v2953_v60 = vmul.f32 %v2952_v18, %v2950_v62  ;;  %v2175_v32 = vmul.f32 %v2174_v31, %v5739_v20  ;;  %vm5830_vm4 = vc.u32 %v2304_v48, %v2300_v17  ;;  %v7084_v17 = vld [vmem:[#allocation42_spill] sm:$0xff] }
 0x496   :  { %v2322_v11 = vshll.u32 %v5784_v40, 16  ;;  %v2325_v24 = vsel %vm5812_vm0, 1, %v6899_v30  ;;  %vm1796_vm6 = vcmp.eq.s32.totalorder %v1794_v29, 0  ;;  %v2649_v34 = vand.u32 31, %v2647_v7  ;;  %2207 = vmatpush.bf16.msrb.mxu2 %v7060_v45 }
 0x497   :  { %v2184_v49 = vmul.f32 %v2183_v10, %v5739_v20  ;;  %v2574_v51 = vmul.f32 -0.00019511016, %v5819_v9  ;;  %v1798_v58 = vsel %vm1796_vm6, %v1784_v61, %v1797_v41  ;;  %v5847_v5 = vmul.f32 %v3429_v19, %v3026_v37 }
 0x498   :  { %vm2328_vm1 = vc.u32 %v5826_v42, %v2322_v11  ;;  %v2168_v0 = vsub.s32 4, %v7083_v27  ;;  %vm1799_vm14 = vcmp.eq.s32.totalorder %v1794_v29, 2  ;;  %v2954_v16 = vxor.u32 2147483648, %v2953_v60 }
 0x499   :  { %vm1795_vm2 = vcmp.lt.s32.totalorder %v1794_v29, 2  ;;  %v1801_v6 = vsel %vm1799_vm14, %v1800_v1, %v1792_v15  ;;  %v2176_v62 = vadd.f32 -0.4999988, %v2175_v32  ;;  %v2307_v61 = vsel %vm5830_vm4, 1, %v6899_v30 }
 0x49a   :  { %v2327_v31 = vadd.s32 %v2325_v24, %v2319_v53  ;;  %v6882_v39 = vand.u32 2147483647, %v7067_v14  ;;  %v1802_v48 = vsel %vm1795_vm2, %v1798_v58, %v1801_v6  ;;  %v2329_v33 = vsel %vm2328_vm1, 1, %v6899_v30  ;;  %2208 = vmatpush.bf16.msrb.mxu2 %v7061_v43 }
 0x49b   :  { %v5855_v41 = vsub.s32 32, %v2649_v34  ;;  %v2185_v10 = vadd.f32 1.0, %v2184_v49  ;;  %v2575_v18 = vadd.f32 0.008332121, %v2574_v51  ;;  %vm1793_vm7 = vweird.f32 %v7045_v22 }
 0x49c   :  { %v3032_v15 = vand.u32 2139095040, %v5847_v5  ;;  %v2169_v29 = vsel %vm2046_vm11, %v2168_v0, %v7083_v27  ;;  %vm2834_vm0 = vcmp.lt.s32.totalorder %v7084_v17, 0  ;;  %v1803_v53 = vsel %vm1793_vm7, nan, %v1802_v48 }
 0x49d   :  { %v2955_v25 = vsel %vm2834_vm0, %v2954_v16, %v2953_v60  ;;  %v2177_v37 = vmul.f32 %v2176_v62, %v5739_v20  ;;  %v2567_v1 = vmul.f32 -0.001358992, %v5819_v9  ;;  %v5871_v22 = vsel %vm2276_vm15, %v5587_v28, 2102212464 }
 0x49e   :  { %v5873_v32 = vadd.s32 %v2307_v61, %v2305_v13  ;;  %v5875_v23 = vadd.s32 %v2329_v33, %v2327_v31  ;;  %v5879_v24 = vand.u32 8388607, %v6882_v39  ;;  %v2171_v60 = vsel %vm5718_vm12, 0, %v2169_v29  ;;  %2209 = vmatpush.bf16.msrb.mxu2 %v7066_v44 }
 0x49f   :  { %v2186_v20 = vmul.f32 %v2185_v10, %v5727_v2  ;;  %v2576_v49 = vmul.f32 %v2575_v18, %v5819_v9  ;;  %v7085_v51 = vand.u32 2147483647, %v7084_v17  ;;  %v2662_v13 = vshrl.u32 %v6944_v35, %v5855_v41 }
 0x4a0   :  { %v3033_v58 = vshrl.u32 %v3032_v15, 23  ;;  %v1804_v2 = vpack.c.bf16 %v1803_v53, %v1803_v53  ;;  %v5899_v19 = vshrl.u32 %v2647_v7, 5  ;;  %v2661_v27 = vshll.u32 %v6945_v55, %v2649_v34 }
 0x4a1   :  { %vm5887_vm11 = vcmp.le.f32.partialorder %v7085_v51, 0.7853982  ;;  %v2178_v0 = vadd.f32 1.0, %v2177_v37  ;;  %v2568_v16 = vadd.f32 0.041655596, %v2567_v1  ;;  %v2653_v6 = vshrl.u32 %v6989_v4, %v5855_v41 }
 0x4a2   :  { %v5897_v36 = vsel %vm5887_vm11, %v7084_v17, %v2955_v25  ;;  %v2656_v62 = vshrl.u32 %v6990_v54, %v5855_v41  ;;  %v2659_v61 = vshrl.u32 %v6945_v55, %v5855_v41  ;;  %v2188_v31 = vand.u32 3, %v2171_v60  ;;  %3329 = vmatmul.msk.bf16.vlgmr.msra.gmra.mxu2 %vm411_vm13, %v1804_v2 }
 0x4a3   :  { %v2652_v48 = vshll.u32 %v6917_v38, %v2649_v34  ;;  %v2191_v7 = vxor.u32 2147483648, %v2186_v20  ;;  %v2577_v33 = vadd.f32 -0.16666654, %v2576_v49  ;;  %v5912_v10 = vmul.f32 %v5897_v36, %v5897_v36  ;;  %2600 = vmatpush.bf16.msra.mxu2 %v7053_v63 }
 0x4a4   :  { %v2655_v18 = vshll.u32 %v6989_v4, %v2649_v34  ;;  %v2658_v15 = vshll.u32 %v6990_v54, %v2649_v34  ;;  %v2663_v29 = vor.u32 %v2662_v13, %v2661_v27  ;;  %v3361_v25 = vadd.s32 4294967169, %v3033_v58 }
 0x4a5   :  { %v2664_v53 = vshll.u32 %v6944_v35, %v2649_v34  ;;  %v2665_v37 = vshrl.u32 %v6942_v56, %v5855_v41  ;;  %v2194_v1 = vxor.u32 2147483648, %v2178_v0  ;;  %v2569_v60 = vmul.f32 %v2568_v16, %v5819_v9 }
 0x4a6   :  { %v5921_v49 = vor.u32 %v2653_v6, %v2652_v48  ;;  %v5923_v51 = vor.u32 %v2656_v62, %v2655_v18  ;;  %v5925_v2 = vor.u32 %v2659_v61, %v2658_v15  ;;  %vm2190_vm15 = vcmp.eq.s32.totalorder %v2188_v31, 0 }
 0x4a7   :  { %vm2670_vm12 = vcmp.lt.s32.totalorder %v5899_v19, 4  ;;  %v2578_v63 = vmul.f32 %v2577_v33, %v5819_v9  ;;  %v2968_v13 = vmul.f32 -0.00019511016, %v5912_v10  ;;  %v2192_v34 = vsel %vm2190_vm15, %v2178_v0, %v2191_v7  ;;  %2601 = vmatpush.bf16.msra.mxu2 %v7060_v45 }
 0x4a8   :  { %v2676_v58 = vsel %vm2670_vm12, %v2663_v29, 920167782  ;;  %v3039_v27 = vadd.s32 1, %v3361_v25  ;;  %v2562_v16 = vsub.s32 4, %v5492_v8  ;;  %vm2193_vm4 = vcmp.eq.s32.totalorder %v2188_v31, 2 }
 0x4a9   :  { %v2666_v6 = vor.u32 %v2665_v37, %v2664_v53  ;;  %vm2189_vm6 = vcmp.lt.s32.totalorder %v2188_v31, 2  ;;  %v2195_v62 = vsel %vm2193_vm4, %v2194_v1, %v2186_v20  ;;  %v2570_v61 = vadd.f32 -0.4999988, %v2569_v60 }
 0x4aa   :  { %v2643_v48 = vor.u32 8388608, %v5879_v24  ;;  %vm2667_vm1 = vcmp.lt.s32.totalorder %v5899_v19, 1  ;;  %vm2669_vm14 = vcmp.lt.s32.totalorder %v5899_v19, 3  ;;  %v2196_v0 = vsel %vm2189_vm6, %v2192_v34, %v2195_v62 }
 0x4ab   :  { %v2675_v45 = vsel %vm2667_vm1, %v5921_v49, %v5923_v51  ;;  %v2677_v7 = vsel %vm2669_vm14, %v5925_v2, %v2676_v58  ;;  %v2579_v33 = vadd.f32 1.0, %v2578_v63  ;;  %v2969_v31 = vadd.f32 0.008332121, %v2968_v13  ;;  %2602 = vmatpush.bf16.msra.mxu2 %v7061_v43 }
 0x4ac   :  { %vm2668_vm2 = vcmp.lt.s32.totalorder %v5899_v19, 2  ;;  %vm3040_vm7 = vcmp.gt.s32.totalorder %v3039_v27, 0  ;;  %vm2187_vm15 = vweird.f32 %v7062_v12  ;;  %v2563_v24 = vsel %vm2440_vm5, %v2562_v16, %v5492_v8 }
 0x4ad   :  { %v2680_v20 = vsel %vm2670_vm12, %v2666_v6, 1326507024  ;;  %v2197_v18 = vsel %vm2187_vm15, nan, %v2196_v0  ;;  %v2571_v15 = vmul.f32 %v2570_v61, %v5819_v9  ;;  %v2961_v25 = vmul.f32 -0.001358992, %v5912_v10 }
 0x4ae   :  { %v2299_v53 = vshrl.u32 %v5752_v50, 16  ;;  %v2301_v43 = vshrl.u32 %v5799_v57, 16  ;;  %v2321_v37 = vshrl.u32 %v5764_v3, 16  ;;  %v2678_v12 = vsel %vm2668_vm2, %v2675_v45, %v2677_v7 }
 0x4af   :  { %v3041_v1 = vsel %vm3040_vm7, %v3039_v27, 0  ;;  %v2565_v8 = vsel %vm5793_vm9, 0, %v2563_v24  ;;  %v2580_v60 = vmul.f32 %v2579_v33, %v5807_v46  ;;  %v2970_v63 = vmul.f32 %v2969_v31, %v5912_v10  ;;  %2603 = vmatpush.bf16.msra.mxu2 %v7066_v44 }
 0x4b0   :  { %v2310_v9 = vadd.s32 %v5873_v32, %v2299_v53  ;;  %v2679_v3 = vsel %vm2667_vm1, %v5923_v51, %v5925_v2  ;;  %v2681_v50 = vsel %vm2669_vm14, %v2663_v29, %v2680_v20  ;;  %v2198_v57 = vpack.c.bf16 %v2197_v18, %v2197_v18 }
 0x4b1   :  { %v2332_v26 = vadd.s32 %v5875_v23, %v2321_v37  ;;  %v5972_v13 = vshll.u32 %v2643_v48, 8  ;;  %v2572_v46 = vadd.f32 1.0, %v2571_v15  ;;  %v2962_v34 = vadd.f32 0.041655596, %v2961_v25  ;;  %v5983_v23 = vld [vmem:[%s6736_s9 + $0x18] sm:$0xff]  ;;  %v6021_v15 = vld [vmem:[%s6736_s9 + $0x10] sm:$0xff] }
 0x4b2   :  { %v2323_v58 = vshrl.u32 %v5784_v40, 16  ;;  %v2708_v44 = vand.u32 65535, %v2678_v12  ;;  %v3043_v27 = vand.u32 31, %v3041_v1  ;;  %v2582_v32 = vand.u32 3, %v2565_v8  ;;  %3339 = vmatmul.msk.bf16.vlgmr.msrb.gmra.mxu2 %vm411_vm13, %v2198_v57  ;;  %v7088_v48 = vld [vmem:[#allocation19_spill] sm:$0xff] }
 0x4b3   :  { %v5978_v16 = vsel %vm2668_vm2, %v2679_v3, %v2681_v50  ;;  %v2709_v6 = vshrl.u32 %v2678_v12, 16  ;;  %v2585_v29 = vxor.u32 2147483648, %v2580_v60  ;;  %v2971_v62 = vadd.f32 -0.16666654, %v2970_v63  ;;  %2994 = vmatpush.bf16.msrb.mxu2 %v5983_v23 }
 0x4b4   :  { %v5990_v61 = vsel %vm2273_vm10, %v5744_v59, %v5575_v52  ;;  %v5996_v0 = vsel %vm2275_vm8, %v7088_v48, %v5871_v22  ;;  %v5998_v45 = vadd.s32 %v2310_v9, %v2301_v43  ;;  %v6003_v7 = vadd.s32 %v5826_v42, %v2322_v11  ;;  %v7089_v43 = vld [vmem:[#allocation37_spill] sm:$0xff] }
 0x4b5   :  { %v6005_v33 = vadd.s32 %v2332_v26, %v2323_v58  ;;  %v2684_v31 = vand.u32 65535, %v5972_v13  ;;  %v2588_v24 = vxor.u32 2147483648, %v2572_v46  ;;  %v2963_v52 = vmul.f32 %v2962_v34, %v5912_v10 }
 0x4b6   :  { %v6010_v59 = vshrl.u32 %v5972_v13, 16  ;;  %v2687_v22 = vshrl.u32 %v5978_v16, 16  ;;  %v6013_v20 = vsub.s32 32, %v3043_v27  ;;  %vm2584_vm10 = vcmp.eq.s32.totalorder %v2582_v32, 0 }
 0x4b7   :  { %v2710_v18 = vmul.u32 %v2708_v44, %v2684_v31  ;;  %v6015_v40 = vmul.u32 %v2709_v6, %v2684_v31  ;;  %v2972_v42 = vmul.f32 %v2971_v62, %v5912_v10  ;;  %v2586_v11 = vsel %vm2584_vm10, %v2572_v46, %v2585_v29  ;;  %2995 = vmatpush.bf16.msrb.mxu2 %v6021_v15 }
 0x4b8   :  { %v2686_v25 = vand.u32 65535, %v5978_v16  ;;  %v6026_v53 = vmul.u32 %v2708_v44, %v6010_v59  ;;  %v2956_v37 = vsub.s32 4, %v7089_v43  ;;  %vm2587_vm8 = vcmp.eq.s32.totalorder %v2582_v32, 2 }
 0x4b9   :  { %v6030_v12 = vmul.u32 %v2709_v6, %v6010_v59  ;;  %vm2583_vm5 = vcmp.lt.s32.totalorder %v2582_v32, 2  ;;  %v2589_v8 = vsel %vm2587_vm8, %v2588_v24, %v2580_v60  ;;  %v2964_v63 = vadd.f32 -0.4999988, %v2963_v52  ;;  %v6047_v60 = vld [vmem:[%s6736_s9 + $0x8] sm:$0xff] }
 0x4ba   :  { %v6034_v9 = vmul.u32 %v2687_v22, %v2684_v31  ;;  %v6881_v3 = vand.u32 2147483647, %v5847_v5  ;;  %v3056_v50 = vshrl.u32 %v6944_v35, %v6013_v20  ;;  %v2590_v57 = vsel %vm2583_vm5, %v2586_v11, %v2589_v8 }
 0x4bb   :  { %v6039_v26 = vshrl.u32 %v3041_v1, 5  ;;  %v3055_v46 = vshll.u32 %v6945_v55, %v3043_v27  ;;  %v3059_v34 = vshrl.u32 %v6942_v56, %v6013_v20  ;;  %v2973_v58 = vadd.f32 1.0, %v2972_v42  ;;  %2996 = vmatpush.bf16.msrb.mxu2 %v6047_v60 }
 0x4bc   :  { %v3047_v44 = vshrl.u32 %v6989_v4, %v6013_v20  ;;  %v3050_v1 = vshrl.u32 %v6990_v54, %v6013_v20  ;;  %vm2581_vm9 = vweird.f32 %v7071_v21  ;;  %v2957_v56 = vsel %vm2834_vm0, %v2956_v37, %v7089_v43 }
 0x4bd   :  { %v3053_v32 = vshrl.u32 %v6945_v55, %v6013_v20  ;;  %v3058_v6 = vshll.u32 %v6944_v35, %v3043_v27  ;;  %v2591_v29 = vsel %vm2581_vm9, nan, %v2590_v57  ;;  %v2965_v62 = vmul.f32 %v2964_v63, %v5912_v10  ;;  %v6072_v35 = vld [vmem:[%s6736_s9] sm:$0xff] }
 0x4be   :  { %v2714_v48 = vshll.u32 %v6015_v40, 16  ;;  %v3046_v24 = vshll.u32 %v6917_v38, %v3043_v27  ;;  %v3049_v52 = vshll.u32 %v6989_v4, %v3043_v27  ;;  %v3057_v42 = vor.u32 %v3056_v50, %v3055_v46  ;;  %v7090_v46 = vld [vmem:[#allocation30_spill] sm:$0xff] }
 0x4bf   :  { %v3052_v21 = vshll.u32 %v6990_v54, %v3043_v27  ;;  %v3060_v11 = vor.u32 %v3059_v34, %v3058_v6  ;;  %v2959_v43 = vsel %vm5887_vm11, 0, %v2957_v56  ;;  %v2974_v55 = vmul.f32 %v2973_v58, %v5897_v36  ;;  %2997 = vmatpush.bf16.msrb.mxu2 %v6072_v35 }
 0x4c0   :  { %v2692_v10 = vshll.u32 %v6034_v9, 16  ;;  %v3036_v4 = vand.u32 8388607, %v6881_v3  ;;  %v6078_v37 = vor.u32 %v3047_v44, %v3046_v24  ;;  %v2592_v54 = vpack.c.bf16 %v2591_v29, %v2591_v29 }
 0x4c1   :  { %v6080_v27 = vor.u32 %v3050_v1, %v3049_v52  ;;  %v6082_v28 = vor.u32 %v3053_v32, %v3052_v21  ;;  %vm3064_vm0 = vcmp.lt.s32.totalorder %v6039_v26, 4  ;;  %v2966_v36 = vadd.f32 1.0, %v2965_v62 }
 0x4c2   :  { %v2688_v8 = vmul.u32 %v2686_v25, %v2684_v31  ;;  %v6086_v63 = vmul.u32 %v2686_v25, %v6010_v59  ;;  %v3070_v50 = vsel %vm3064_vm0, %v3057_v42, 920167782  ;;  %v2976_v57 = vand.u32 3, %v2959_v43  ;;  %3349 = vmatmul.msk.bf16.vlgmr.msra.gmra.mxu2 %vm411_vm13, %v2592_v54  ;;  %v7093_v25 = vld [vmem:[#allocation9_spill] sm:$0xff] }
 0x4c3   :  { %vm3323_vm11 = vcmp.lt.s32.totalorder %v7090_v46, 0  ;;  %v2716_v34 = vshll.u32 %v6026_v53, 16  ;;  %vm6093_vm4 = vc.u32 %v2710_v18, %v2714_v48  ;;  %v3074_v31 = vsel %vm3064_vm0, %v3060_v11, 1326507024 }
 0x4c4   :  { %v2979_v44 = vxor.u32 2147483648, %v2974_v55  ;;  %v7094_v1 = vand.u32 2147483647, %v7093_v25  ;;  %vm2696_vm7 = vc.u32 %v2688_v8, %v2692_v10  ;;  %v6105_v32 = vadd.s32 %v2714_v48, %v2710_v18 }
 0x4c5   :  { %vm3061_vm15 = vcmp.lt.s32.totalorder %v6039_v26, 1  ;;  %vm6880_vm10 = vcmp.lt.s32.totalorder %v6039_v26, 3  ;;  %v3037_v6 = vor.u32 8388608, %v3036_v4  ;;  %v2982_v24 = vxor.u32 2147483648, %v2966_v36 }
 0x4c6   :  { %vm6101_vm6 = vcmp.le.f32.partialorder %v7094_v1, 0.7853982  ;;  %v3069_v29 = vsel %vm3061_vm15, %v6078_v37, %v6080_v27  ;;  %v3071_v62 = vsel %vm6880_vm10, %v6082_v28, %v3070_v50  ;;  %v2698_v52 = vadd.s32 %v2692_v10, %v2688_v8 }
 0x4c7   :  { %v3073_v18 = vsel %vm3061_vm15, %v6080_v27, %v6082_v28  ;;  %v3075_v48 = vsel %vm6880_vm10, %v3057_v42, %v3074_v31  ;;  %vm2978_vm8 = vcmp.eq.s32.totalorder %v2976_v57, 0  ;;  %v2694_v21 = vshll.u32 %v6086_v63, 16 }
 0x4c8   :  { %v2697_v11 = vsel %vm2696_vm7, 1, %v6899_v30  ;;  %vm3062_vm5 = vcmp.lt.s32.totalorder %v6039_v26, 2  ;;  %v2980_v43 = vsel %vm2978_vm8, %v2966_v36, %v2979_v44  ;;  %v2719_v10 = vsel %vm6093_vm4, 1, %v6899_v30 }
 0x4c9   :  { %vm6131_vm9 = vc.u32 %v6105_v32, %v2716_v34  ;;  %v6137_v42 = vsel %vm3062_vm5, %v3069_v29, %v3071_v62  ;;  %vm2981_vm10 = vcmp.eq.s32.totalorder %v2976_v57, 2  ;;  %v6141_v54 = vsel %vm3062_vm5, %v3073_v18, %v3075_v48  ;;  %v7100_v29 = vld [vmem:[#allocation13_spill] sm:$0xff]  ;;  %v7101_v62 = vld [vmem:[#allocation22_spill] sm:$0xff] }
 0x4ca   :  { %v6143_v36 = vshll.u32 %v3037_v6, 8  ;;  %vm2977_vm7 = vcmp.lt.s32.totalorder %v2976_v57, 2  ;;  %v2983_v8 = vsel %vm2981_vm10, %v2982_v24, %v2974_v55  ;;  %v2337_v50 = vadd.s32 1, %v6005_v33 }
 0x4cb   :  { %v2691_v58 = vmul.u32 %v2687_v22, %v6010_v59  ;;  %vm2700_vm4 = vc.u32 %v2698_v52, %v2694_v21  ;;  %v2984_v31 = vsel %vm2977_vm7, %v2980_v43, %v2983_v8  ;;  %v2280_v44 = vsel %vm2274_vm3, %v5990_v61, %v5996_v0  ;;  %v7099_v22 = vld [vmem:[#allocation16_spill] sm:$0xff]  ;;  %v7103_v52 = vld [vmem:[#allocation27_spill] sm:$0xff] }
 0x4cc   :  { %vm2336_vm8 = vc.u32 %v5998_v45, %v6003_v7  ;;  %v2721_v1 = vadd.s32 %v2719_v10, %v6030_v12  ;;  %v3103_v55 = vshrl.u32 %v6137_v42, 16  ;;  %v2723_v16 = vsel %vm6131_vm9, 1, %v6899_v30  ;;  %v7105_v43 = vld [vmem:[#allocation44_spill] sm:$0xff] }
 0x4cd   :  { %v2699_v57 = vadd.s32 %v2697_v11, %v2691_v58  ;;  %v6883_v59 = vshrl.u32 %v6141_v54, 16  ;;  %vm2975_vm10 = vweird.f32 %v7084_v17  ;;  %v6166_v47 = vsel %vm6101_vm6, %v7093_v25, %v7099_v22 }
 0x4ce   :  { %v2701_v61 = vsel %vm2700_vm4, 1, %v6899_v30  ;;  %v3078_v0 = vand.u32 65535, %v6143_v36  ;;  %v2985_v12 = vsel %vm2975_vm10, nan, %v2984_v31  ;;  %v6173_v6 = vsel %vm3323_vm11, 0, %v7090_v46  ;;  %v7106_v46 = vld [vmem:[#allocation21_spill] sm:$0xff]  ;;  %v7108_v31 = vld [vmem:[#allocation40_spill] sm:$0xff] }
 0x4cf   :  { %v1170_v24 = vshll.u32 %v7101_v62, %v7100_v29  ;;  %v7102_v17 = vsub.s32 32, %v7100_v29  ;;  %v2338_v48 = vsel %vm2336_vm8, %v2337_v50, %v6005_v33  ;;  %v7104_v21 = vsub.s32 4294967266, %v7100_v29 }
 0x4d0   :  { %v2334_v10 = vmul.u32 %v7105_v43, %v2280_v44  ;;  %v2725_v4 = vadd.s32 %v2723_v16, %v2721_v1  ;;  %v6186_v8 = vmul.u32 %v3103_v55, %v3078_v0  ;;  %v7107_v58 = vshll.u32 %v7106_v46, 30 }
 0x4d1   :  { %v1171_v18 = vshrl.u32 %v7103_v52, %v7102_v17  ;;  %v1174_v11 = vadd.s32 127, %v7104_v21  ;;  %v2703_v62 = vadd.s32 %v2701_v61, %v2699_v57  ;;  %v6195_v17 = vmul.u32 %v6883_v59, %v3078_v0 }
 0x4d2   :  { %v6191_v22 = vsub.s32 %v7108_v31, %v7107_v58  ;;  %v2986_v33 = vpack.c.bf16 %v2985_v12, %v2985_v12  ;;  %v6199_v50 = vmul.f32 %v6166_v47, %v6166_v47  ;;  %v6201_v44 = vadd.s32 %v2338_v48, %v2334_v10 }
 0x4d3   :  { %v2715_v1 = vshrl.u32 %v6015_v40, 16  ;;  %v3102_v16 = vand.u32 65535, %v6137_v42  ;;  %v1567_v29 = vsub.s32 4294967266, %v6173_v6  ;;  %v1172_v52 = vor.u32 %v1171_v18, %v1170_v24 }
 0x4d4   :  { %v2693_v57 = vshrl.u32 %v6034_v9, 16  ;;  %v3080_v61 = vand.u32 65535, %v6141_v54  ;;  %3359 = vmatmul.msk.bf16.vlgmr.msrb.gmra.mxu2 %vm411_vm13, %v2986_v33  ;;  %v1175_v12 = vshll.u32 %v1174_v11, 23  ;;  %v3079_v43 = vshrl.u32 %v6143_v36, 16 }
 0x4d5   :  { %v2726_v21 = vadd.s32 %v2725_v4, %v2715_v1  ;;  %v3108_v48 = vshll.u32 %v6186_v8, 16  ;;  %vm1950_vm3 = vcmp.lt.s32.totalorder %v6191_v22, 0  ;;  %v1951_v40 = vsub.s32 0, %v6191_v22 }
 0x4d6   :  { %v2704_v10 = vadd.s32 %v2703_v62, %v2693_v57  ;;  %v3086_v58 = vshll.u32 %v6195_v17, 16  ;;  %v2340_v24 = vadd.s32 536870912, %v6201_v44  ;;  %v2717_v9 = vshrl.u32 %v6026_v53, 16 }
 0x4d7   :  { %v3104_v18 = vmul.u32 %v3102_v16, %v3078_v0  ;;  %v6216_v31 = vmul.u32 %v3102_v16, %v3079_v43  ;;  %v2651_v11 = vshrl.u32 %v6917_v38, %v5855_v41  ;;  %v2695_v4 = vshrl.u32 %v6086_v63, 16 }
 0x4d8   :  { %v3082_v33 = vmul.u32 %v3080_v61, %v3078_v0  ;;  %v6221_v1 = vmul.u32 %v3080_v61, %v3079_v43  ;;  %v2672_v62 = vsel %vm2670_vm12, %v5925_v2, 2102212464  ;;  %v2727_v57 = vadd.s32 %v2726_v21, %v2717_v9 }
 0x4d9   :  { %vm3112_vm11 = vc.u32 %v3104_v18, %v3108_v48  ;;  %v6226_v3 = vadd.s32 %v3108_v48, %v3104_v18  ;;  %v1176_v39 = vor.u32 4788187, %v1175_v12  ;;  %v6228_v59 = vadd.s32 %v2704_v10, %v2695_v4 }
 0x4da   :  { %vm3090_vm9 = vc.u32 %v3082_v33, %v3086_v58  ;;  %v3092_v16 = vadd.s32 %v3086_v58, %v3082_v33  ;;  %v1952_v41 = vsel %vm1950_vm3, %v1951_v40, %v6191_v22  ;;  %v6233_v63 = vshrl.u32 %v2340_v24, 30 }
 0x4db   :  { %v2671_v0 = vsel %vm2667_vm1, %v2651_v11, %v5921_v49  ;;  %v3110_v2 = vshll.u32 %v6216_v31, 16  ;;  %v2673_v61 = vsel %vm2669_vm14, %v5923_v51, %v2672_v62  ;;  %v6245_v12 = vadd.s32 %v6105_v32, %v2716_v34  ;;  %v6262_v34 = vld [vmem:[%s6738_s11 + $0x8] sm:$0xff] }
 0x4dc   :  { %v3088_v21 = vshll.u32 %v6221_v1, 16  ;;  %v3113_v48 = vsel %vm3112_vm11, 1, %v6899_v30  ;;  %v2731_v40 = vadd.s32 1, %v2727_v57  ;;  %v3091_v10 = vsel %vm3090_vm9, 1, %v6899_v30  ;;  %455 = vmatpush.bf16.msrb.mxu3 %v6262_v34  ;;  %651 = vmatpush.bf16.msrb.mxu1 %v6262_v34 }
 0x4dd   :  { %v3107_v49 = vmul.u32 %v3103_v55, %v3079_v43  ;;  %vm3116_vm12 = vc.u32 %v6226_v3, %v3110_v2  ;;  %vm2730_vm1 = vc.u32 %v6228_v59, %v6245_v12  ;;  %v7109_v51 = vshrl.u32 %v6141_v54, 16  ;;  %1045 = vmatpush.bf16.msra.mxu0 %v6262_v34 }
 0x4de   :  { %vm3094_vm14 = vc.u32 %v3092_v16, %v3088_v21  ;;  %v1177_v32 = vand.u32 2147483647, %v1176_v39  ;;  %v1953_v58 = vclz %v1952_v41  ;;  %v2674_v42 = vsel %vm2668_vm2, %v2671_v0, %v2673_v61 }
 0x4df   :  { %v3085_v53 = vmul.u32 %v7109_v51, %v3079_v43  ;;  %v3115_v55 = vadd.s32 %v3113_v48, %v3107_v49  ;;  %v801_v24 = vmul.f32 -0.00019511016, %v6199_v50  ;;  %v1568_v9 = vadd.s32 127, %v1567_v29  ;;  %v6278_v29 = vld [vmem:[%s6738_s11] sm:$0xff] }
 0x4e0   :  { %v3117_v11 = vsel %vm3116_vm12, 1, %v6899_v30  ;;  %v1179_v54 = vcvt.s32.f32 %v1172_v52  ;;  %v2342_v43 = vshll.u32 %v6233_v63, 30  ;;  %v2732_v39 = vsel %vm2730_vm1, %v2731_v40, %v2727_v57  ;;  %456 = vmatpush.bf16.msrb.mxu3 %v6278_v29  ;;  %652 = vmatpush.bf16.msrb.mxu1 %v6278_v29  ;;  %v7111_v48 = vld [vmem:[#allocation28_spill] sm:$0xff] }
 0x4e1   :  { %v3093_v18 = vadd.s32 %v3091_v10, %v3085_v53  ;;  %v3095_v19 = vsel %vm3094_vm14, 1, %v6899_v30  ;;  %v2728_v4 = vmul.u32 %v5972_v13, %v2674_v42  ;;  %v3332_v62 = vadd.s32 4294967294, %v1953_v58  ;;  %1046 = vmatpush.bf16.msra.mxu0 %v6278_v29  ;;  %v7110_v13 = vld [vmem:[#allocation26_spill] sm:$0xff]  ;;  %v7112_v53 = vld [vmem:[#allocation15_spill] sm:$0xff] }
 0x4e2   :  { %v1180_v33 = vmul.f32 %v1179_v54, %v1177_v32  ;;  %v3119_v52 = vadd.s32 %v3117_v11, %v3115_v55  ;;  %v1563_v16 = vsub.s32 32, %v6173_v6  ;;  %v802_v30 = vadd.f32 0.008332121, %v801_v24  ;;  %v7113_v24 = vld [vmem:[#allocation18_spill] sm:$0xff] }
 0x4e3   :  { %v6283_v41 = vadd.s32 %v2732_v39, %v2728_v4  ;;  %v3097_v0 = vadd.s32 %v3095_v19, %v3093_v18  ;;  %v1569_v57 = vshll.u32 %v1568_v9, 23  ;;  %v6288_v61 = vsub.s32 %v6201_v44, %v2342_v43 }
 0x4e4   :  { %v3109_v21 = vshrl.u32 %v6186_v8, 16  ;;  %827 = vmatpush.bf16.msra.mxu3 %v5983_v23  ;;  %v1547_v40 = vadd.s32 %v7111_v48, %v7110_v13  ;;  %v3087_v10 = vshrl.u32 %v6195_v17, 16  ;;  %848 = vmatpush.bf16.msra.mxu1 %v6262_v34  ;;  %v1181_v49 = vxor.u32 2147483648, %v1180_v33 }
 0x4e5   :  { %1439 = vmatpush.bf16.msrb.mxu0 %v6262_v34  ;;  %vm3333_vm2 = vcmp.lt.s32.totalorder %v3332_v62, 0  ;;  %vm1061_vm7 = vcmp.lt.s32.totalorder %v7112_v53, 0  ;;  %v2734_v8 = vadd.s32 536870912, %v6283_v41  ;;  %v803_v58 = vmul.f32 %v802_v30, %v6199_v50 }
 0x4e6   :  { %v3120_v51 = vadd.s32 %v3119_v52, %v3109_v21  ;;  %v1565_v44 = vshrl.u32 %v1547_v40, %v1563_v16  ;;  %v3098_v32 = vadd.s32 %v3097_v0, %v3087_v10  ;;  %v1570_v42 = vor.u32 4788187, %v1569_v57 }
 0x4e7   :  { %v2345_v55 = vsub.s32 0, %v6288_v61  ;;  %v3111_v17 = vshrl.u32 %v6216_v31, 16  ;;  %v1564_v9 = vshll.u32 %v7113_v24, %v6173_v6  ;;  %v6306_v18 = vsel %vm3333_vm2, 0, %v3332_v62  ;;  %v6371_v24 = vld [vmem:[%s6737_s10] ss:$0 sm:$0xff] }
 0x4e8   :  { %828 = vmatpush.bf16.msra.mxu3 %v6021_v15  ;;  %vm2344_vm4 = vcmp.lt.s32.totalorder %v6288_v61, 0  ;;  %v3089_v11 = vshrl.u32 %v6221_v1, 16  ;;  %849 = vmatpush.bf16.msra.mxu1 %v6278_v29  ;;  %v1182_v54 = vsel %vm1061_vm7, %v1181_v49, %v1180_v33  ;;  %v3066_v43 = vsel %vm3064_vm0, %v6082_v28, 2102212464 }
 0x4e9   :  { %1440 = vmatpush.bf16.msrb.mxu0 %v6278_v29  ;;  %v3121_v39 = vadd.s32 %v3120_v51, %v3111_v17  ;;  %v794_v6 = vmul.f32 -0.001358992, %v6199_v50  ;;  %v1566_v19 = vor.u32 %v1565_v44, %v1564_v9  ;;  %v6318_v4 = vshrl.u32 %v2734_v8, 30  ;;  %v7120_v9 = vld [vmem:[#allocation12_spill] sm:$0xff] }
 0x4ea   :  { %v3045_v1 = vshrl.u32 %v6917_v38, %v6013_v20  ;;  %v6322_v62 = vadd.s32 %v3098_v32, %v3089_v11  ;;  %v1571_v52 = vand.u32 2147483647, %v1570_v42  ;;  %v7114_v16 = vand.u32 2147483647, %v7112_v53  ;;  %v7118_v32 = vld [vmem:[#allocation35_spill] sm:$0xff] }
 0x4eb   :  { %v1961_v28 = vsub.s32 4294967266, %v6306_v18  ;;  %v2346_v0 = vsel %vm2344_vm4, %v2345_v55, %v6288_v61  ;;  %vm7117_vm0 = vcmp.lt.s32.totalorder %v6039_v26, 3  ;;  %v6347_v57 = vadd.s32 %v6226_v3, %v3110_v2 }
 0x4ec   :  { %vm6326_vm8 = vcmp.le.f32.partialorder %v7114_v16, 0.7853982  ;;  %829 = vmatpush.bf16.msra.mxu3 %v6047_v60  ;;  %v3065_v38 = vsel %vm3061_vm15, %v3045_v1, %v6078_v37  ;;  %v3067_v20 = vsel %vm7117_vm0, %v6080_v27, %v3066_v43  ;;  %v804_v21 = vadd.f32 -0.16666654, %v803_v58  ;;  %v7119_v58 = vld [vmem:[#allocation36_spill] sm:$0xff] }
 0x4ed   :  { %v6336_v30 = vsel %vm6326_vm8, %v7112_v53, %v1182_v54  ;;  %v3125_v13 = vadd.s32 1, %v3121_v39  ;;  %v795_v48 = vadd.f32 0.041655596, %v794_v6  ;;  %v1573_v40 = vcvt.s32.f32 %v1566_v19 }
 0x4ee   :  { %v2347_v10 = vclz %v2346_v0  ;;  %v2736_v49 = vshll.u32 %v6318_v4, 30  ;;  %vm3124_vm10 = vc.u32 %v6322_v62, %v6347_v57  ;;  %v6354_v37 = vmul.f32 %v6336_v30, %v6336_v30 }
 0x4ef   :  { %v1962_v27 = vadd.s32 127, %v1961_v28  ;;  %v3068_v31 = vsel %vm3062_vm5, %v3065_v38, %v3067_v20  ;;  %v1574_v3 = vmul.f32 %v1573_v40, %v1571_v52  ;;  %v1957_v2 = vsub.s32 32, %v6306_v18  ;;  %v7121_v52 = vld [vmem:[#allocation11_spill] sm:$0xff] }
 0x4f0   :  { %830 = vmatpush.bf16.msra.mxu3 %v6072_v35  ;;  %v805_v51 = vmul.f32 %v804_v21, %v6199_v50  ;;  %v3126_v44 = vsel %vm3124_vm10, %v3125_v13, %v3121_v39  ;;  %v796_v8 = vmul.f32 %v795_v48, %v6199_v50  ;;  %v1941_v42 = vadd.s32 %v7119_v58, %v7118_v32  ;;  %v7126_v32 = vld [vmem:[#allocation8_spill] sm:$0xff] }
 0x4f1   :  { %v3342_v55 = vadd.s32 4294967294, %v2347_v10  ;;  %v6365_v17 = vsub.s32 %v6283_v41, %v2736_v49  ;;  %v3122_v26 = vmul.u32 %v6143_v36, %v3068_v31  ;;  %v789_v11 = vsub.s32 4, %v7120_v9 }
 0x4f2   :  { %v1195_v54 = vmul.f32 -0.00019511016, %v6354_v37  ;;  %v1963_v43 = vshll.u32 %v1962_v27, 23  ;;  %v1575_v39 = vxor.u32 2147483648, %v1574_v3  ;;  %v1959_v6 = vshrl.u32 %v1941_v42, %v1957_v2 }
 0x4f3   :  { %v6375_v19 = vadd.s32 %v3126_v44, %v3122_v26  ;;  %v806_v1 = vadd.f32 1.0, %v805_v51  ;;  %v7122_v41 = vand.u32 2147483647, %v7121_v52  ;;  %vm1455_vm5 = vcmp.lt.s32.totalorder %v7121_v52, 0  ;;  %v424_v36 = vpop.f32.mrf.mxu2 }
 0x4f4   :  { %v797_v28 = vadd.f32 -0.4999988, %v796_v8  ;;  %v1958_v0 = vshll.u32 %v6191_v22, %v6306_v18  ;;  %vm3343_vm3 = vcmp.lt.s32.totalorder %v3342_v55, 0  ;;  %v2739_v38 = vsub.s32 0, %v6365_v17 }
 0x4f5   :  { %vm6379_vm15 = vcmp.le.f32.partialorder %v7122_v41, 0.7853982  ;;  %v425_v20 = vadd.f32 %v6371_v24, %v424_v36  ;;  %vm7125_vm11 = vcmp.lt.s32.totalorder %v7093_v25, 0  ;;  %v1196_v13 = vadd.f32 0.008332121, %v1195_v54 }
 0x4f6   :  { %v790_v21 = vsel %vm7125_vm11, %v789_v11, %v7120_v9  ;;  %v1964_v48 = vor.u32 4788187, %v1963_v43  ;;  %vm2738_vm9 = vcmp.lt.s32.totalorder %v6365_v17, 0  ;;  %v1576_v40 = vsel %vm1455_vm5, %v1575_v39, %v1574_v3  ;;  %v635_v18 = vpop.f32.mrf.mxu0 }
 0x4f7   :  { %v1960_v10 = vor.u32 %v1959_v6, %v1958_v0  ;;  %v3128_v49 = vadd.s32 536870912, %v6375_v19  ;;  %v428_v22 = vmax.f32 %v425_v20, 0.0  ;;  %v6395_v27 = vsel %vm3343_vm3, 0, %v3342_v55 }
 0x4f8   :  { %v636_v31 = vadd.f32 %v6371_v24, %v635_v18  ;;  %v798_v2 = vmul.f32 %v797_v28, %v6199_v50  ;;  %v1188_v51 = vmul.f32 -0.001358992, %v6354_v37  ;;  %v792_v44 = vsel %vm6101_vm6, 0, %v790_v21  ;;  %v7129_v18 = vld [vmem:[#allocation20_spill] sm:$0xff] }
 0x4f9   :  { %v807_v8 = vmul.f32 %v806_v1, %v6166_v47  ;;  %v2740_v3 = vsel %vm2738_vm9, %v2739_v38, %v6365_v17  ;;  %v429_v58 = vmul.f32 %v428_v22, %v7126_v32  ;;  %v6408_v42 = vsel %vm6379_vm15, %v7121_v52, %v1576_v40 }
 0x4fa   :  { %v1197_v55 = vmul.f32 %v1196_v13, %v6354_v37  ;;  %v1965_v26 = vand.u32 2147483647, %v1964_v48  ;;  %v639_v50 = vmax.f32 %v636_v31, 0.0  ;;  %v1967_v9 = vcvt.s32.f32 %v1960_v10 }
 0x4fb   :  { %v2355_v11 = vsub.s32 4294967266, %v6395_v27  ;;  %v6412_v56 = vshrl.u32 %v3128_v49, 30  ;;  %v430_v54 = vpack.c.bf16 %v429_v58, %v429_v58  ;;  %v2741_v47 = vclz %v2740_v3  ;;  %v426_v39 = vpop.f32.mrf.mxu2 }
 0x4fc   :  { %v640_v43 = vmul.f32 %v639_v50, %v7126_v32  ;;  %v799_v6 = vadd.f32 1.0, %v798_v2  ;;  %v1189_v1 = vadd.f32 0.041655596, %v1188_v51  ;;  %v809_v41 = vand.u32 3, %v792_v44  ;;  %v7130_v2 = vld [vmem:[#allocation24_spill] sm:$0xff] }
 0x4fd   :  { %v6417_v36 = vmul.f32 %v6408_v42, %v6408_v42  ;;  %vm7127_vm6 = vcmask 261120   ;;  %v812_v28 = vxor.u32 2147483648, %v807_v8  ;;  %v1198_v0 = vadd.f32 -0.16666654, %v1197_v55 }
 0x4fe   :  { %3295 = vmatmul.msk.bf16.vlgmr.msrb.gmra.mxu3 %vm7127_vm6, %v430_v54  ;;  %v1968_v38 = vmul.f32 %v1967_v9, %v1965_v26  ;;  %v641_v20 = vpack.c.bf16 %v640_v43, %v640_v43  ;;  %v2356_v21 = vadd.s32 127, %v2355_v11  ;;  %v3130_v13 = vshll.u32 %v6412_v56, 30  ;;  %v637_v48 = vpop.f32.mrf.mxu0  ;;  %vm7128_vm1 = vmmov %vm7127_vm6 }
 0x4ff   :  { %1221 = vmatpush.bf16.msrb.mxu3 %v5983_v23  ;;  %vm808_vm12 = vweird.f32 %v7093_v25  ;;  %v3352_v40 = vadd.s32 4294967294, %v2741_v47  ;;  %v815_v10 = vxor.u32 2147483648, %v799_v6  ;;  %v1190_v49 = vmul.f32 %v1189_v1, %v6354_v37 }
 0x500   :  { %3300 = vmatmul.msk.bf16.vlgmr.msrb.gmra.mxu1 %vm7128_vm1, %v641_v20  ;;  %v1589_v22 = vmul.f32 -0.00019511016, %v6417_v36  ;;  %v1183_v31 = vsub.s32 4, %v7129_v18  ;;  %vm1849_vm14 = vcmp.lt.s32.totalorder %v7130_v2, 0  ;;  %vm811_vm2 = vcmp.eq.s32.totalorder %v809_v41, 0 }
 0x501   :  { %1242 = vmatpush.bf16.msrb.mxu1 %v6262_v34  ;;  %v1199_v51 = vmul.f32 %v1198_v0, %v6354_v37  ;;  %v1969_v44 = vxor.u32 2147483648, %v1968_v38  ;;  %v2351_v3 = vsub.s32 32, %v6395_v27  ;;  %v813_v58 = vsel %vm811_vm2, %v799_v6, %v812_v28 }
 0x502   :  { %v2335_v55 = vadd.s32 %v6003_v7, %v5998_v45  ;;  %v2357_v26 = vshll.u32 %v2356_v21, 23  ;;  %v6435_v50 = vsub.s32 %v6375_v19, %v3130_v13  ;;  %vm814_vm4 = vcmp.eq.s32.totalorder %v809_v41, 2 }
 0x503   :  { %1222 = vmatpush.bf16.msrb.mxu3 %v6021_v15  ;;  %vm3353_vm0 = vcmp.lt.s32.totalorder %v3352_v40, 0  ;;  %vm810_vm10 = vcmp.lt.s32.totalorder %v809_v41, 2  ;;  %v816_v11 = vsel %vm814_vm4, %v815_v10, %v807_v8  ;;  %v1191_v54 = vadd.f32 -0.4999988, %v1190_v49 }
 0x504   :  { %v1029_v9 = vpop.f32.mrf.mxu2  ;;  %v1590_v47 = vadd.f32 0.008332121, %v1589_v22  ;;  %v1184_v43 = vsel %vm1061_vm7, %v1183_v31, %v7129_v18  ;;  %v817_v6 = vsel %vm810_vm10, %v813_v58, %v816_v11  ;;  %v1200_v45 = vadd.f32 1.0, %v1199_v51 }
 0x505   :  { %v1030_v39 = vadd.f32 %v6371_v24, %v1029_v9  ;;  %1243 = vmatpush.bf16.msrb.mxu1 %v6278_v29  ;;  %v1970_v7 = vsel %vm1849_vm14, %v1969_v44, %v1968_v38  ;;  %v2352_v19 = vshll.u32 %v6288_v61, %v6395_v27  ;;  %v2353_v1 = vshrl.u32 %v2335_v55, %v2351_v3 }
 0x506   :  { %v2358_v8 = vor.u32 4788187, %v2357_v26  ;;  %v6448_v41 = vsel %vm3353_vm0, 0, %v3352_v40  ;;  %v3133_v28 = vsub.s32 0, %v6435_v50  ;;  %vm3132_vm7 = vcmp.lt.s32.totalorder %v6435_v50, 0 }
 0x507   :  { %1223 = vmatpush.bf16.msrb.mxu3 %v6047_v60  ;;  %v1033_v0 = vmax.f32 %v1030_v39, 0.0  ;;  %v818_v20 = vsel %vm808_vm12, nan, %v817_v6  ;;  %v1192_v38 = vmul.f32 %v1191_v54, %v6354_v37  ;;  %v1582_v21 = vmul.f32 -0.001358992, %v6417_v36  ;;  %v7135_v6 = vld [vmem:[#allocation17_spill] sm:$0xff] }
 0x508   :  { %v1591_v61 = vmul.f32 %v1590_v47, %v6417_v36  ;;  %v7131_v27 = vand.u32 2147483647, %v7130_v2  ;;  %v1186_v40 = vsel %vm6326_vm8, 0, %v1184_v43  ;;  %v1201_v25 = vmul.f32 %v1200_v45, %v6336_v30  ;;  %vm7134_vm8 = vmmov %vm7128_vm1 }
 0x509   :  { %v1034_v48 = vmul.f32 %v1033_v0, %v7126_v32  ;;  %v2354_v10 = vor.u32 %v2353_v1, %v2352_v19  ;;  %v2749_v49 = vsub.s32 4294967266, %v6448_v41  ;;  %v3134_v22 = vsel %vm3132_vm7, %v3133_v28, %v6435_v50 }
 0x50a   :  { %vm6459_vm3 = vcmp.le.f32.partialorder %v7131_v27, 0.7853982  ;;  %v819_v31 = vpack.c.bf16 %v818_v20, %v818_v20  ;;  %v2359_v51 = vand.u32 2147483647, %v2358_v8  ;;  %v1193_v33 = vadd.f32 1.0, %v1192_v38 }
 0x50b   :  { %v6470_v37 = vsel %vm6459_vm3, %v7130_v2, %v1970_v7  ;;  %1224 = vmatpush.bf16.msrb.mxu3 %v6072_v35  ;;  %v1035_v18 = vpack.c.bf16 %v1034_v48, %v1034_v48  ;;  %v1583_v3 = vadd.f32 0.041655596, %v1582_v21  ;;  %v1592_v58 = vadd.f32 -0.16666654, %v1591_v61 }
 0x50c   :  { %v1031_v44 = vpop.f32.mrf.mxu2  ;;  %v1203_v30 = vand.u32 3, %v1186_v40  ;;  %v1206_v55 = vxor.u32 2147483648, %v1201_v25  ;;  %v6479_v26 = vmul.f32 %v6470_v37, %v6470_v37  ;;  %v2361_v9 = vcvt.s32.f32 %v2354_v10 }
 0x50d   :  { %3310 = vmatmul.msk.bf16.vlgmr.msra.gmra.mxu0 %vm7134_vm8, %v1035_v18  ;;  %v3135_v11 = vclz %v3134_v22  ;;  %v2750_v54 = vadd.s32 127, %v2749_v49  ;;  %v1209_v43 = vxor.u32 2147483648, %v1193_v33  ;;  %v1584_v39 = vmul.f32 %v1583_v3, %v6417_v36 }
 0x50e   :  { %3304 = vmatmul.msk.bf16.vlgmr.msra.gmra.mxu3 %vm411_vm13, %v819_v31  ;;  %1833 = vmatpush.bf16.msra.mxu0 %v6262_v34  ;;  %v2362_v47 = vmul.f32 %v2361_v9, %v2359_v51  ;;  %v1577_v45 = vsub.s32 4, %v7135_v6  ;;  %v2745_v7 = vsub.s32 32, %v6448_v41  ;;  %vm1205_vm11 = vcmp.eq.s32.totalorder %v1203_v30, 0 }
 0x50f   :  { %1615 = vmatpush.bf16.msra.mxu3 %v5983_v23  ;;  %v1593_v19 = vmul.f32 %v1592_v58, %v6417_v36  ;;  %v1983_v1 = vmul.f32 -0.00019511016, %v6479_v26  ;;  %v3362_v8 = vadd.s32 4294967294, %v3135_v11  ;;  %v1207_v28 = vsel %vm1205_vm11, %v1193_v33, %v1206_v55 }
 0x510   :  { %v2729_v0 = vadd.s32 %v6245_v12, %v6228_v59  ;;  %v2751_v20 = vshll.u32 %v2750_v54, 23  ;;  %vm1208_vm9 = vcmp.eq.s32.totalorder %v1203_v30, 2  ;;  %v2363_v38 = vxor.u32 2147483648, %v2362_v47  ;;  %v7136_v59 = vld [vmem:[#allocation39_spill] sm:$0xff] }
 0x511   :  { %vm1204_vm6 = vcmp.lt.s32.totalorder %v1203_v30, 2  ;;  %v1210_v61 = vsel %vm1208_vm9, %v1209_v43, %v1201_v25  ;;  %v1585_v27 = vadd.f32 -0.4999988, %v1584_v39  ;;  %vm1202_vm12 = vweird.f32 %v7112_v53 }
 0x512   :  { %1834 = vmatpush.bf16.msra.mxu0 %v6278_v29  ;;  %v2747_v48 = vshrl.u32 %v2729_v0, %v2745_v7  ;;  %v1211_v10 = vsel %vm1204_vm6, %v1207_v28, %v1210_v61  ;;  %v1578_v49 = vsel %vm1455_vm5, %v1577_v45, %v7135_v6  ;;  %v1594_v22 = vadd.f32 1.0, %v1593_v19 }
 0x513   :  { %1616 = vmatpush.bf16.msra.mxu3 %v6021_v15  ;;  %v1984_v18 = vadd.f32 0.008332121, %v1983_v1  ;;  %vm3363_vm1 = vcmp.lt.s32.totalorder %v3362_v8, 0  ;;  %vm2243_vm2 = vcmp.lt.s32.totalorder %v7136_v59, 0  ;;  %v2746_v12 = vshll.u32 %v6365_v17, %v6448_v41 }
 0x514   :  { %v1423_v21 = vpop.f32.mrf.mxu2  ;;  %v2752_v25 = vor.u32 4788187, %v2751_v20  ;;  %v2364_v31 = vsel %vm2243_vm2, %v2363_v38, %v2362_v47  ;;  %v1212_v51 = vsel %vm1202_vm12, nan, %v1211_v10  ;;  %v1586_v44 = vmul.f32 %v1585_v27, %v6417_v36 }
 0x515   :  { %v1424_v40 = vadd.f32 %v6371_v24, %v1423_v21  ;;  %v1976_v33 = vmul.f32 -0.001358992, %v6479_v26  ;;  %v2748_v3 = vor.u32 %v2747_v48, %v2746_v12  ;;  %v6505_v58 = vsel %vm3363_vm1, 0, %v3362_v8 }
 0x516   :  { %v1580_v55 = vsel %vm6379_vm15, 0, %v1578_v49  ;;  %v1595_v17 = vmul.f32 %v1594_v22, %v6408_v42  ;;  %v1985_v41 = vmul.f32 %v1984_v18, %v6479_v26  ;;  %v7137_v9 = vand.u32 2147483647, %v7136_v59  ;;  %vm7140_vm15 = vmmov %vm7134_vm8 }
 0x517   :  { %1617 = vmatpush.bf16.msra.mxu3 %v6047_v60  ;;  %v1427_v53 = vmax.f32 %v1424_v40, 0.0  ;;  %v2753_v54 = vand.u32 2147483647, %v2752_v25  ;;  %v1213_v47 = vpack.c.bf16 %v1212_v51, %v1212_v51  ;;  %v3143_v42 = vsub.s32 4294967266, %v6505_v58 }
 0x518   :  { %vm6514_vm5 = vcmp.le.f32.partialorder %v7137_v9, 0.7853982  ;;  %v1587_v39 = vadd.f32 1.0, %v1586_v44  ;;  %v1977_v6 = vadd.f32 0.041655596, %v1976_v33  ;;  %v1597_v45 = vand.u32 3, %v1580_v55 }
 0x519   :  { %v1428_v30 = vmul.f32 %v1427_v53, %v7126_v32  ;;  %v6522_v36 = vsel %vm6514_vm5, %v7136_v59, %v2364_v31  ;;  %v2755_v7 = vcvt.s32.f32 %v2748_v3  ;;  %v1600_v19 = vxor.u32 2147483648, %v1595_v17 }
 0x51a   :  { %v1986_v1 = vadd.f32 -0.16666654, %v1985_v41  ;;  %v6529_v8 = vmul.f32 %v6522_v36, %v6522_v36  ;;  %v3144_v0 = vadd.s32 127, %v3143_v42  ;;  %v1603_v20 = vxor.u32 2147483648, %v1587_v39 }
 0x51b   :  { %1618 = vmatpush.bf16.msra.mxu3 %v6072_v35  ;;  %v1429_v16 = vpack.c.bf16 %v1428_v30, %v1428_v30  ;;  %v2756_v28 = vmul.f32 %v2755_v7, %v2753_v54  ;;  %v1978_v38 = vmul.f32 %v1977_v6, %v6479_v26  ;;  %v1971_v21 = vsub.s32 4, %v7106_v46 }
 0x51c   :  { %v1425_v43 = vpop.f32.mrf.mxu2  ;;  %vm1599_vm4 = vcmp.eq.s32.totalorder %v1597_v45, 0  ;;  %v1987_v61 = vmul.f32 %v1986_v1, %v6479_v26  ;;  %v2377_v27 = vmul.f32 -0.00019511016, %v6529_v8  ;;  %v3139_v48 = vsub.s32 32, %v6505_v58 }
 0x51d   :  { %3320 = vmatmul.msk.bf16.vlgmr.msrb.gmra.mxu0 %vm7140_vm15, %v1429_v16  ;;  %v1601_v40 = vsel %vm1599_vm4, %v1587_v39, %v1600_v19  ;;  %v2757_v10 = vxor.u32 2147483648, %v2756_v28  ;;  %v3123_v49 = vadd.s32 %v6347_v57, %v6322_v62  ;;  %vm1602_vm0 = vcmp.eq.s32.totalorder %v1597_v45, 2 }
 0x51e   :  { %3314 = vmatmul.msk.bf16.vlgmr.msrb.gmra.mxu3 %vm411_vm13, %v1213_v47  ;;  %2227 = vmatpush.bf16.msrb.mxu0 %v6262_v34  ;;  %v3145_v22 = vshll.u32 %v3144_v0, 23  ;;  %vm1598_vm10 = vcmp.lt.s32.totalorder %v1597_v45, 2  ;;  %v1604_v12 = vsel %vm1602_vm0, %v1603_v20, %v1595_v17  ;;  %v1979_v25 = vadd.f32 -0.4999988, %v1978_v38 }
 0x51f   :  { %2009 = vmatpush.bf16.msrb.mxu3 %v5983_v23  ;;  %v1972_v53 = vsel %vm1849_vm14, %v1971_v21, %v7106_v46  ;;  %v1605_v51 = vsel %vm1598_vm10, %v1601_v40, %v1604_v12  ;;  %v1988_v44 = vadd.f32 1.0, %v1987_v61  ;;  %v2378_v33 = vadd.f32 0.008332121, %v2377_v27 }
 0x520   :  { %vm2637_vm7 = vcmp.lt.s32.totalorder %v7067_v14, 0  ;;  %v3141_v3 = vshrl.u32 %v3123_v49, %v3139_v48  ;;  %vm1596_vm8 = vweird.f32 %v7121_v52  ;;  %v3140_v57 = vshll.u32 %v6435_v50, %v6505_v58 }
 0x521   :  { %v2758_v62 = vsel %vm2637_vm7, %v2757_v10, %v2756_v28  ;;  %v3146_v46 = vor.u32 4788187, %v3145_v22  ;;  %v1606_v55 = vsel %vm1596_vm8, nan, %v1605_v51  ;;  %v1980_v17 = vmul.f32 %v1979_v25, %v6479_v26 }
 0x522   :  { %2228 = vmatpush.bf16.msrb.mxu0 %v6278_v29  ;;  %v2370_v41 = vmul.f32 -0.001358992, %v6529_v8  ;;  %v1974_v9 = vsel %vm6459_vm3, 0, %v1972_v53  ;;  %v1989_v52 = vmul.f32 %v1988_v44, %v6470_v37  ;;  %v2379_v16 = vmul.f32 %v2378_v33, %v6529_v8  ;;  %vm7144_vm3 = vmmov %vm7140_vm15 }
 0x523   :  { %2010 = vmatpush.bf16.msrb.mxu3 %v6021_v15  ;;  %v7141_v47 = vand.u32 2147483647, %v7067_v14  ;;  %v3142_v58 = vor.u32 %v3141_v3, %v3140_v57  ;;  %v1607_v42 = vpack.c.bf16 %v1606_v55, %v1606_v55  ;;  %v3147_v43 = vand.u32 2147483647, %v3146_v46 }
 0x524   :  { %v1981_v39 = vadd.f32 1.0, %v1980_v17  ;;  %v2371_v6 = vadd.f32 0.041655596, %v2370_v41  ;;  %v1991_v45 = vand.u32 3, %v1974_v9  ;;  %v1994_v7 = vxor.u32 2147483648, %v1989_v52 }
 0x525   :  { %v1817_v18 = vpop.f32.mrf.mxu2  ;;  %vm6562_vm14 = vcmp.le.f32.partialorder %v7141_v47, 0.7853982  ;;  %v2380_v19 = vadd.f32 -0.16666654, %v2379_v16  ;;  %v3149_v28 = vcvt.s32.f32 %v3142_v58  ;;  %v2365_v48 = vsub.s32 4, %v6233_v63 }
 0x526   :  { %v1818_v31 = vadd.f32 %v6371_v24, %v1817_v18  ;;  %v6570_v13 = vsel %vm6562_vm14, %v7067_v14, %v2758_v62  ;;  %v1997_v20 = vxor.u32 2147483648, %v1981_v39  ;;  %v2372_v38 = vmul.f32 %v2371_v6, %v6529_v8 }
 0x527   :  { %2011 = vmatpush.bf16.msrb.mxu3 %v6047_v60  ;;  %v6576_v1 = vmul.f32 %v6570_v13, %v6570_v13  ;;  %v3150_v0 = vmul.f32 %v3149_v28, %v3147_v43  ;;  %vm1993_vm11 = vcmp.eq.s32.totalorder %v1991_v45, 0  ;;  %v2381_v21 = vmul.f32 %v2380_v19, %v6529_v8 }
 0x528   :  { %v1821_v30 = vmax.f32 %v1818_v31, 0.0  ;;  %v1995_v27 = vsel %vm1993_vm11, %v1981_v39, %v1994_v7  ;;  %vm1996_vm9 = vcmp.eq.s32.totalorder %v1991_v45, 2  ;;  %vm1992_vm6 = vcmp.lt.s32.totalorder %v1991_v45, 2 }
 0x529   :  { %v2771_v61 = vmul.f32 -0.00019511016, %v6576_v1  ;;  %v1998_v10 = vsel %vm1996_vm9, %v1997_v20, %v1989_v52  ;;  %v2373_v49 = vadd.f32 -0.4999988, %v2372_v38  ;;  %v2382_v12 = vadd.f32 1.0, %v2381_v21 }
 0x52a   :  { %v1822_v54 = vmul.f32 %v1821_v30, %v7126_v32  ;;  %v1999_v18 = vsel %vm1992_vm6, %v1995_v27, %v1998_v10  ;;  %vm1990_vm12 = vweird.f32 %v7130_v2  ;;  %vm3031_vm1 = vcmp.lt.s32.totalorder %v5847_v5, 0 }
 0x52b   :  { %2012 = vmatpush.bf16.msrb.mxu3 %v6072_v35  ;;  %v2772_v25 = vadd.f32 0.008332121, %v2771_v61  ;;  %v2000_v51 = vsel %vm1990_vm12, nan, %v1999_v18  ;;  %v2374_v44 = vmul.f32 %v2373_v49, %v6529_v8  ;;  %v2764_v33 = vmul.f32 -0.001358992, %v6576_v1 }
 0x52c   :  { %v1823_v26 = vpack.c.bf16 %v1822_v54, %v1822_v54  ;;  %v2383_v2 = vmul.f32 %v2382_v12, %v6522_v36  ;;  %v7145_v62 = vand.u32 2147483647, %v5847_v5  ;;  %v2001_v11 = vpack.c.bf16 %v2000_v51, %v2000_v51  ;;  %v3434_v54 = vld [vmem:[%s6736_s9 + $0x18] sm:$0xff] }
 0x52d   :  { %v1819_v37 = vpop.f32.mrf.mxu2  ;;  %v2375_v55 = vadd.f32 1.0, %v2374_v44  ;;  %v2765_v36 = vadd.f32 0.041655596, %v2764_v33  ;;  %v2759_v43 = vsub.s32 4, %v6318_v4  ;;  %vm2384_vm10 = vweird.f32 %v7136_v59  ;;  %v3437_v59 = vld [vmem:[%s6736_s9] sm:$0xff] }
 0x52e   :  { %3324 = vmatmul.msk.bf16.vlgmr.msra.gmra.mxu3 %vm411_vm13, %v1607_v42  ;;  %3330 = vmatmul.msk.bf16.vlgmr.msra.gmra.mxu0 %vm7144_vm3, %v1823_v26  ;;  %v2388_v41 = vxor.u32 2147483648, %v2383_v2  ;;  %v3435_v42 = vld [vmem:[%s6736_s9 + $0x10] sm:$0xff]  ;;  %v3153_v51 = vsub.s32 4, %v6412_v56  ;;  %vm2778_vm11 = vweird.f32 %v7067_v14 }
 0x52f   :  { %2403 = vmatpush.bf16.msra.mxu3 %v5983_v23  ;;  %2621 = vmatpush.bf16.msra.mxu0 %v6262_v34  ;;  %v3151_v23 = vxor.u32 2147483648, %v3150_v0  ;;  %v2391_v52 = vxor.u32 2147483648, %v2375_v55  ;;  %v2766_v16 = vmul.f32 %v2765_v36, %v6576_v1  ;;  %v2760_v20 = vsel %vm2637_vm7, %v2759_v43, %v6318_v4  ;;  %vm7149_vm7 = vmmov %vm7144_vm3 }
 0x531   :  { %v3152_v31 = vsel %vm3031_vm1, %v3151_v23, %v3150_v0  ;;  %v2767_v6 = vadd.f32 -0.4999988, %v2766_v16  ;;  %v3436_v0 = vld [vmem:[%s6736_s9 + $0x8] sm:$0xff]  ;;  %v2762_v23 = vsel %vm6562_vm14, 0, %v2760_v20 }
 0x532   :  { %v2779_v12 = vand.u32 3, %v2762_v23 }
 0x533   :  { %2404 = vmatpush.bf16.msra.mxu3 %v6021_v15  ;;  %2622 = vmatpush.bf16.msra.mxu0 %v6278_v29  ;;  %v2366_v15 = vsel %vm2243_vm2, %v2365_v48, %v6233_v63  ;;  %v2773_v63 = vmul.f32 %v2772_v25, %v6576_v1  ;;  %vm6604_vm2 = vcmp.le.f32.partialorder %v7145_v62, 0.7853982  ;;  %v2768_v61 = vmul.f32 %v2767_v6, %v6576_v1 }
 0x534   :  { %v6612_v8 = vsel %vm6604_vm2, %v5847_v5, %v3152_v31  ;;  %vm2781_vm8 = vcmp.eq.s32.totalorder %v2779_v12, 0  ;;  %vm2784_vm14 = vcmp.eq.s32.totalorder %v2779_v12, 2  ;;  %v3154_v62 = vsel %vm3031_vm1, %v3153_v51, %v6412_v56 }
 0x535   :  { %v2211_v40 = vpop.f32.mrf.mxu2  ;;  %v2774_v9 = vadd.f32 -0.16666654, %v2773_v63  ;;  %v3156_v36 = vsel %vm6604_vm2, 0, %v3154_v62  ;;  %vm3172_vm2 = vweird.f32 %v5847_v5 }
 0x536   :  { %v2212_v22 = vadd.f32 %v6371_v24, %v2211_v40 }
 0x537   :  { %2405 = vmatpush.bf16.msra.mxu3 %v6047_v60  ;;  %v2368_v60 = vsel %vm6514_vm5, 0, %v2366_v15  ;;  %vm7148_vm5 = vmmov %vm7144_vm3  ;;  %v2775_v47 = vmul.f32 %v2774_v9, %v6576_v1  ;;  %v2769_v1 = vadd.f32 1.0, %v2768_v61  ;;  %vm2780_vm3 = vcmp.lt.s32.totalorder %v2779_v12, 2 }
 0x538   :  { %v2215_v53 = vmax.f32 %v2212_v22, 0.0  ;;  %v2385_v17 = vand.u32 3, %v2368_v60  ;;  %vm7150_vm9 = vmmov %vm7148_vm5 }
 0x539   :  { %v2776_v19 = vadd.f32 1.0, %v2775_v47 }
 0x53a   :  { %v2216_v3 = vmul.f32 %v2215_v53, %v7126_v32  ;;  %vm2387_vm15 = vcmp.eq.s32.totalorder %v2385_v17, 0  ;;  %vm2390_vm4 = vcmp.eq.s32.totalorder %v2385_v17, 2  ;;  %vm2386_vm0 = vcmp.lt.s32.totalorder %v2385_v17, 2 }
 0x53b   :  { %2406 = vmatpush.bf16.msra.mxu3 %v6072_v35  ;;  %v6618_v35 = vmul.f32 %v6612_v8, %v6612_v8  ;;  %v2389_v26 = vsel %vm2387_vm15, %v2375_v55, %v2388_v41  ;;  %v2392_v39 = vsel %vm2390_vm4, %v2391_v52, %v2383_v2  ;;  %v2777_v40 = vmul.f32 %v2776_v19, %v6570_v13  ;;  %vm7152_vm15 = vmmov %vm7148_vm5 }
 0x53c   :  { %v2217_v30 = vpack.c.bf16 %v2216_v3, %v2216_v3  ;;  %v2393_v7 = vsel %vm2386_vm0, %v2389_v26, %v2392_v39  ;;  %v2785_v13 = vxor.u32 2147483648, %v2769_v1  ;;  %v3173_v52 = vand.u32 3, %v3156_v36  ;;  %v6672_v26 = vld [vmem:[%s6739_s12] ss:$0 sm:$0xff]  ;;  %vm7153_vm4 = vmmov %vm7148_vm5 }
 0x53d   :  { %v2213_v46 = vpop.f32.mrf.mxu2  ;;  %v3165_v58 = vmul.f32 -0.00019511016, %v6618_v35  ;;  %v2394_v21 = vsel %vm2384_vm10, nan, %v2393_v7  ;;  %v3158_v27 = vmul.f32 -0.001358992, %v6618_v35  ;;  %v2782_v50 = vxor.u32 2147483648, %v2777_v40  ;;  %vm7154_vm0 = vmmov %vm7153_vm4 }
 0x53e   :  { %3334 = vmatmul.msk.bf16.vlgmr.msrb.gmra.mxu3 %vm411_vm13, %v2001_v11  ;;  %3340 = vmatmul.msk.bf16.vlgmr.msrb.gmra.mxu0 %vm7148_vm5, %v2217_v30  ;;  %v2395_v49 = vpack.c.bf16 %v2394_v21, %v2394_v21  ;;  %v2786_v33 = vsel %vm2784_vm14, %v2785_v13, %v2777_v40  ;;  %vm3175_vm6 = vcmp.eq.s32.totalorder %v3173_v52, 0  ;;  %vm3178_vm12 = vcmp.eq.s32.totalorder %v3173_v52, 2  ;;  %vm7155_vm10 = vmmov %vm7154_vm0 }
 0x53f   :  { %2797 = vmatpush.bf16.msrb.mxu3 %v3434_v54  ;;  %3015 = vmatpush.bf16.msrb.mxu0 %v6262_v34  ;;  %v3166_v28 = vadd.f32 0.008332121, %v3165_v58  ;;  %v3159_v18 = vadd.f32 0.041655596, %v3158_v27  ;;  %v2783_v31 = vsel %vm2781_vm8, %v2769_v1, %v2782_v50  ;;  %vm3174_vm1 = vcmp.lt.s32.totalorder %v3173_v52, 2 }
 0x540   :  { %v2787_v2 = vsel %vm2780_vm3, %v2783_v31, %v2786_v33 }
 0x541   :  { %v3167_v10 = vmul.f32 %v3166_v28, %v6618_v35  ;;  %v3160_v15 = vmul.f32 %v3159_v18, %v6618_v35  ;;  %v2788_v11 = vsel %vm2778_vm11, nan, %v2787_v2 }
 0x542   :  { %v2789_v9 = vpack.c.bf16 %v2788_v11, %v2788_v11 }
 0x543   :  { %2798 = vmatpush.bf16.msrb.mxu3 %v3435_v42  ;;  %3016 = vmatpush.bf16.msrb.mxu0 %v6278_v29  ;;  %v3168_v25 = vadd.f32 -0.16666654, %v3167_v10  ;;  %v3161_v3 = vadd.f32 -0.4999988, %v3160_v15 }
 0x545   :  { %v2605_v37 = vpop.f32.mrf.mxu2  ;;  %v3169_v53 = vmul.f32 %v3168_v25, %v6618_v35  ;;  %v3162_v46 = vmul.f32 %v3161_v3, %v6618_v35 }
 0x546   :  { %v2606_v45 = vadd.f32 %v6371_v24, %v2605_v37 }
 0x547   :  { %2799 = vmatpush.bf16.msrb.mxu3 %v3436_v0  ;;  %v3170_v63 = vadd.f32 1.0, %v3169_v53  ;;  %v3163_v14 = vadd.f32 1.0, %v3162_v46 }
 0x548   :  { %v2609_v38 = vmax.f32 %v2606_v45, 0.0 }
 0x549   :  { %v3171_v17 = vmul.f32 %v3170_v63, %v6612_v8  ;;  %v3179_v16 = vxor.u32 2147483648, %v3163_v14 }
 0x54a   :  { %v2610_v48 = vmul.f32 %v2609_v38, %v7126_v32 }
 0x54b   :  { %2800 = vmatpush.bf16.msrb.mxu3 %v3437_v59  ;;  %v3176_v56 = vxor.u32 2147483648, %v3171_v17  ;;  %v3180_v57 = vsel %vm3178_vm12, %v3179_v16, %v3171_v17 }
 0x54c   :  { %v2611_v4 = vpack.c.bf16 %v2610_v48, %v2610_v48 }
 0x54d   :  { %v2607_v22 = vpop.f32.mrf.mxu2  ;;  %v3177_v35 = vsel %vm3175_vm6, %v3163_v14, %v3176_v56 }
 0x54e   :  { %3344 = vmatmul.msk.bf16.vlgmr.msra.gmra.mxu3 %vm411_vm13, %v2395_v49  ;;  %3350 = vmatmul.msk.bf16.vlgmr.msra.gmra.mxu0 %vm7149_vm7, %v2611_v4  ;;  %v3181_v47 = vsel %vm3174_vm1, %v3177_v35, %v3180_v57  ;;  %vm7156_vm7 = vmmov %vm7154_vm0 }
 0x54f   :  { %3191 = vmatpush.bf16.msra.mxu3 %v3434_v54  ;;  %v3182_v8 = vsel %vm3172_vm2, nan, %v3181_v47 }
 0x550   :  { %v3183_v58 = vpack.c.bf16 %v3182_v8, %v3182_v8 }
 0x553   :  { %3192 = vmatpush.bf16.msra.mxu3 %v3435_v42 }
 0x557   :  { %v2999_v44 = vpop.f32.mrf.mxu2  ;;  %3193 = vmatpush.bf16.msra.mxu3 %v3436_v0 }
 0x558   :  { %v3000_v60 = vadd.f32 %v6371_v24, %v2999_v44 }
 0x55a   :  { %v3003_v30 = vmax.f32 %v3000_v60, 0.0 }
 0x55b   :  { %3194 = vmatpush.bf16.msra.mxu3 %v3437_v59 }
 0x55c   :  { %v3004_v55 = vmul.f32 %v3003_v30, %v7126_v32 }
 0x55e   :  { %v3005_v41 = vpack.c.bf16 %v3004_v55, %v3004_v55  ;;  %3354 = vmatmul.msk.bf16.vlgmr.msrb.gmra.mxu3 %vm411_vm13, %v2789_v9 }
 0x55f   :  { %v3001_v54 = vpop.f32.mrf.mxu2 }
 0x560   :  { %3360 = vmatmul.msk.bf16.vlgmr.msrb.gmra.mxu0 %vm7150_vm9, %v3005_v41 }
 0x56e   :  { %3364 = vmatmul.msk.bf16.vlgmr.msra.gmra.mxu3 %vm411_vm13, %v3183_v58  ;;  %vm7151_vm13 = vmmov %vm7148_vm5 }
 0x57d   :  { %v654_v42 = vpop.f32.mrf.mxu1 }
 0x57e   :  { %v655_v43 = vadd.f32 %v6672_v26, %v654_v42 }
 0x580   :  { %659 = vst [vmem:[#allocation2 + $0x2] sm:$0x3] %v655_v43 }
 0x581   :  { %v458_v37 = vpop.f32.mrf.mxu3 }
 0x582   :  { %v459_v39 = vadd.f32 %v6672_v26, %v458_v37 }
 0x584   :  { %462 = vst [vmem:[#allocation2] sm:$0x3] %v459_v39 }
 0x585   :  { %v656_v6 = vpop.f32.mrf.mxu1 }
 0x589   :  { %v460_v45 = vpop.f32.mrf.mxu3 }
 0x58a   :  { %v1048_v5 = vpop.f32.mrf.mxu0 }
 0x58b   :  { %v1049_v7 = vadd.f32 %v6672_v26, %v1048_v5 }
 0x58d   :  { %1053 = vst [vmem:[#allocation2 + $0x6] sm:$0x3] %v1049_v7 }
 0x591   :  { %v832_v19 = vpop.f32.mrf.mxu3 }
 0x592   :  { %v833_v28 = vadd.f32 %v6371_v24, %v832_v19  ;;  %v1050_v0 = vpop.f32.mrf.mxu0 }
 0x594   :  { %v836_v20 = vmax.f32 %v833_v28, 0.0 }
 0x596   :  { %v837_v38 = vmul.f32 %v836_v20, %v7126_v32 }
 0x598   :  { %v838_v21 = vpack.c.bf16 %v837_v38, %v837_v38 }
 0x599   :  { %v834_v61 = vpop.f32.mrf.mxu3 }
 0x59a   :  { %3305 = vmatmul.msk.bf16.vlgmr.msra.gmra.mxu1 %vm7151_vm13, %v838_v21  ;;  %v1442_v27 = vpop.f32.mrf.mxu0 }
 0x59b   :  { %1636 = vmatpush.bf16.msra.mxu1 %v6262_v34  ;;  %v1443_v48 = vadd.f32 %v6672_v26, %v1442_v27 }
 0x59d   :  { %1447 = vst [vmem:[#allocation2 + $0xa] sm:$0x3] %v1443_v48 }
 0x59f   :  { %1637 = vmatpush.bf16.msra.mxu1 %v6278_v29 }
 0x5a1   :  { %v1226_v23 = vpop.f32.mrf.mxu3 }
 0x5a2   :  { %v1227_v40 = vadd.f32 %v6371_v24, %v1226_v23  ;;  %v1444_v10 = vpop.f32.mrf.mxu0 }
 0x5a4   :  { %v1230_v59 = vmax.f32 %v1227_v40, 0.0 }
 0x5a6   :  { %v1231_v4 = vmul.f32 %v1230_v59, %v7126_v32 }
 0x5a8   :  { %v1232_v49 = vpack.c.bf16 %v1231_v4, %v1231_v4 }
 0x5a9   :  { %v1228_v22 = vpop.f32.mrf.mxu3 }
 0x5aa   :  { %3315 = vmatmul.msk.bf16.vlgmr.msrb.gmra.mxu1 %vm7148_vm5, %v1232_v49 }
 0x5ab   :  { %v1836_v1 = vpop.f32.mrf.mxu0  ;;  %2030 = vmatpush.bf16.msrb.mxu1 %v6262_v34  ;;  %v3438_v34 = vld [vmem:[%s6738_s11 + $0x8] sm:$0xff] }
 0x5ac   :  { %v1837_v18 = vadd.f32 %v6672_v26, %v1836_v1 }
 0x5ae   :  { %1841 = vst [vmem:[#allocation2 + $0xe] sm:$0x3] %v1837_v18 }
 0x5af   :  { %2031 = vmatpush.bf16.msrb.mxu1 %v6278_v29 }
 0x5b1   :  { %v1620_v12 = vpop.f32.mrf.mxu3 }
 0x5b2   :  { %v1621_v50 = vadd.f32 %v6371_v24, %v1620_v12 }
 0x5b3   :  { %v1838_v25 = vpop.f32.mrf.mxu0 }
 0x5b4   :  { %v1624_v13 = vmax.f32 %v1621_v50, 0.0 }
 0x5b6   :  { %v1625_v15 = vmul.f32 %v1624_v13, %v7126_v32 }
 0x5b8   :  { %v1626_v53 = vpack.c.bf16 %v1625_v15, %v1625_v15 }
 0x5b9   :  { %v1622_v31 = vpop.f32.mrf.mxu3 }
 0x5ba   :  { %3325 = vmatmul.msk.bf16.vlgmr.msra.gmra.mxu1 %vm7152_vm15, %v1626_v53 }
 0x5bb   :  { %v2230_v51 = vpop.f32.mrf.mxu0  ;;  %2424 = vmatpush.bf16.msra.mxu1 %v3438_v34 }
 0x5bc   :  { %v2231_v44 = vadd.f32 %v6672_v26, %v2230_v51 }
 0x5be   :  { %2235 = vst [vmem:[#allocation2 + $0x12] sm:$0x3] %v2231_v44 }
 0x5bf   :  { %2425 = vmatpush.bf16.msra.mxu1 %v6278_v29  ;;  %v3439_v29 = vld [vmem:[%s6738_s11] sm:$0xff]  ;;  %s3513_s11 = smov [#allocation4]  }
 0x5c0   :  { %s3239_s8 = sshll.u32 %s3513_s11, 4  ;;  %s3240_s8 = int_to_ptr.vmem [resolvable:$true] %s3239_s8 }
 0x5c1   :  { %v2014_v33 = vpop.f32.mrf.mxu3  ;;  %3244 = dma.vmem_to_hbm [thread:$0]  %s3240_s8, 32, %s3242_s2, [#allocation5]  }
 0x5c2   :  { %v2015_v3 = vadd.f32 %v6371_v24, %v2014_v33 }
 0x5c3   :  { %v2232_v60 = vpop.f32.mrf.mxu0 }
 0x5c4   :  { %v2018_v2 = vmax.f32 %v2015_v3, 0.0 }
 0x5c6   :  { %v2019_v63 = vmul.f32 %v2018_v2, %v7126_v32 }
 0x5c8   :  { %v2020_v62 = vpack.c.bf16 %v2019_v63, %v2019_v63 }
 0x5c9   :  { %v2016_v30 = vpop.f32.mrf.mxu3 }
 0x5ca   :  { %3335 = vmatmul.msk.bf16.vlgmr.msrb.gmra.mxu1 %vm7153_vm4, %v2020_v62 }
 0x5cb   :  { %v2624_v11 = vpop.f32.mrf.mxu0  ;;  %2818 = vmatpush.bf16.msrb.mxu1 %v3438_v34 }
 0x5cc   :  { %v2625_v46 = vadd.f32 %v6672_v26, %v2624_v11 }
 0x5ce   :  { %2629 = vst [vmem:[#allocation2 + $0x16] sm:$0x3] %v2625_v46 }
 0x5cf   :  { %2819 = vmatpush.bf16.msrb.mxu1 %v3439_v29 }
 0x5d1   :  { %v2408_v55 = vpop.f32.mrf.mxu3 }
 0x5d2   :  { %v2409_v36 = vadd.f32 %v6371_v24, %v2408_v55 }
 0x5d3   :  { %v2626_v17 = vpop.f32.mrf.mxu0 }
 0x5d4   :  { %v2412_v41 = vmax.f32 %v2409_v36, 0.0 }
 0x5d6   :  { %v2413_v9 = vmul.f32 %v2412_v41, %v7126_v32 }
 0x5d8   :  { %v2414_v54 = vpack.c.bf16 %v2413_v9, %v2413_v9 }
 0x5d9   :  { %v2410_v14 = vpop.f32.mrf.mxu3 }
 0x5da   :  { %3345 = vmatmul.msk.bf16.vlgmr.msra.gmra.mxu1 %vm7154_vm0, %v2414_v54 }
 0x5db   :  { %3212 = vmatpush.bf16.msra.mxu1 %v3438_v34 }
 0x5dd   :  { %v3018_v52 = vpop.f32.mrf.mxu0 }
 0x5de   :  { %v3019_v56 = vadd.f32 %v6672_v26, %v3018_v52 }
 0x5df   :  { %3213 = vmatpush.bf16.msra.mxu1 %v3439_v29 }
 0x5e0   :  { %3023 = vst [vmem:[#allocation2 + $0x1a] sm:$0x3] %v3019_v56 }
 0x5e1   :  { %v2802_v16 = vpop.f32.mrf.mxu3 }
 0x5e2   :  { %v2803_v35 = vadd.f32 %v6371_v24, %v2802_v16 }
 0x5e4   :  { %v2806_v47 = vmax.f32 %v2803_v35, 0.0 }
 0x5e5   :  { %v3020_v57 = vpop.f32.mrf.mxu0 }
 0x5e6   :  { %v2807_v8 = vmul.f32 %v2806_v47, %v7126_v32 }
 0x5e8   :  { %v2808_v58 = vpack.c.bf16 %v2807_v8, %v2807_v8 }
 0x5e9   :  { %v2804_v42 = vpop.f32.mrf.mxu3 }
 0x5ea   :  { %3355 = vmatmul.msk.bf16.vlgmr.msrb.gmra.mxu1 %vm7155_vm10, %v2808_v58 }
 0x5f1   :  { %v3196_v43 = vpop.f32.mrf.mxu3 }
 0x5f2   :  { %v3197_v37 = vadd.f32 %v6371_v24, %v3196_v43 }
 0x5f4   :  { %v3200_v39 = vmax.f32 %v3197_v37, 0.0 }
 0x5f6   :  { %v3201_v6 = vmul.f32 %v3200_v39, %v7126_v32 }
 0x5f8   :  { %v3202_v45 = vpack.c.bf16 %v3201_v6, %v3201_v6 }
 0x5f9   :  { %v3198_v5 = vpop.f32.mrf.mxu3 }
 0x5fa   :  { %3365 = vmatmul.msk.bf16.vlgmr.msra.gmra.mxu1 %vm7156_vm7, %v3202_v45 }
 0x617   :  { %v851_v7 = vpop.f32.mrf.mxu1 }
 0x618   :  { %v852_v19 = vadd.f32 %v6672_v26, %v851_v7 }
 0x61a   :  { %856 = vst [vmem:[#allocation2 + $0x4] sm:$0x3] %v852_v19 }
 0x61f   :  { %v853_v24 = vpop.f32.mrf.mxu1 }
 0x627   :  { %v1245_v28 = vpop.f32.mrf.mxu1 }
 0x628   :  { %v1246_v32 = vadd.f32 %v6672_v26, %v1245_v28 }
 0x62a   :  { %1250 = vst [vmem:[#allocation2 + $0x8] sm:$0x3] %v1246_v32 }
 0x62f   :  { %v1247_v0 = vpop.f32.mrf.mxu1 }
 0x637   :  { %v1639_v20 = vpop.f32.mrf.mxu1 }
 0x638   :  { %v1640_v38 = vadd.f32 %v6672_v26, %v1639_v20 }
 0x63a   :  { %1644 = vst [vmem:[#allocation2 + $0xc] sm:$0x3] %v1640_v38 }
 0x63f   :  { %v1641_v21 = vpop.f32.mrf.mxu1 }
 0x647   :  { %v2033_v61 = vpop.f32.mrf.mxu1 }
 0x648   :  { %v2034_v27 = vadd.f32 %v6672_v26, %v2033_v61 }
 0x64a   :  { %2038 = vst [vmem:[#allocation2 + $0x10] sm:$0x3] %v2034_v27 }
 0x64f   :  { %v2035_v48 = vpop.f32.mrf.mxu1 }
 0x657   :  { %v2427_v23 = vpop.f32.mrf.mxu1 }
 0x658   :  { %v2428_v40 = vadd.f32 %v6672_v26, %v2427_v23 }
 0x65a   :  { %2432 = vst [vmem:[#allocation2 + $0x14] sm:$0x3] %v2428_v40 }
 0x65f   :  { %v2429_v10 = vpop.f32.mrf.mxu1 }
 0x667   :  { %v2821_v59 = vpop.f32.mrf.mxu1 }
 0x668   :  { %v2822_v4 = vadd.f32 %v6672_v26, %v2821_v59 }
 0x66a   :  { %2826 = vst [vmem:[#allocation2 + $0x18] sm:$0x3] %v2822_v4 }
 0x66f   :  { %v2823_v49 = vpop.f32.mrf.mxu1 }
 0x677   :  { %v3215_v22 = vpop.f32.mrf.mxu1 }
 0x678   :  { %v3216_v1 = vadd.f32 %v6672_v26, %v3215_v22 }
 0x67a   :  { %3220 = vst [vmem:[#allocation2 + $0x1c] sm:$0x3] %v3216_v1 }
 0x67b   :  { %3233 = dma.vmem_to_hbm [thread:$0]  %s3226_s3, 480, %s3228_s5, [#allocation3], %s3515_s6, %s3515_s6, %s3516_s30  }
 0x67f   :  { %v3217_v18 = vpop.f32.mrf.mxu1 }
 0x680   :  { %3488 = dma.done.wait [#allocation3], 480  }
 0x681   :  { %3489 = vsyncadd [#allocation3], 4294966816 }
 0x682   :  { %3490 = dma.done.wait [#allocation5], 32  }
 0x683   :  { %3491 = vsyncadd [#allocation5], 4294967264 }
 0x684   :  { %3253 = vsyncpa [#allocation3], 1 }
 0x685   :  { %3254 = vsyncpa [#allocation5], 1 }

</bundles_post_ra>
